<compile_context>
chip_gen: v7x
topology: tpu7x:2x2x1
jax: 0.10.0
libtpu: 0.0.40
codegen_flags: <defaults>
</compile_context>

<pallas_src>
import functools

import jax
import jax.numpy as jnp
from jax import lax
from jax.experimental import pallas as pl
from jax.experimental.pallas import tpu as pltpu

LANE = 128


def _round_up(x, m):
    return (x + m - 1) // m * m


def _largest_divisor_at_most(n, cap):
    cap = max(1, min(cap, n))
    for d in range(cap, 0, -1):
        if n % d == 0:
            return d
    return 1


# ---------- fused (BN+ReLU on input) -> conv3x3 band -> batch-stat partials --
def _conv3x3_kernel(xb_ref, xtop_ref, xbot_ref, w_ref, scale_ref, shift_ref,
                    out_ref, stats_ref, xcat_ref, *, apply_input_bnrelu):
    # xb_ref:    (1, BAND, W, Cin)   rows of this band
    # xtop_ref:  (1, 1, W, Cin)      row just above the band (clamped at top)
    # xbot_ref:  (1, 1, W, Cin)      row just below the band (clamped at bottom)
    # w_ref:     (3, 3*Cin, Cout)    bf16, kw taps folded along K
    # scale/shift: (1, Cin) f32      BN+ReLU affine of the previous layer
    # out_ref:   (1, BAND, W, Cout)  bf16
    # stats_ref: (1, 1, 2, Cout) f32 per-(sample, band) [sum, sum of squares]
    # xcat_ref:  VMEM (BAND+2, W, 3*Cin) bf16 scratch: [x(w-1) | x(w) | x(w+1)]
    _, band, W, Cin = xb_ref.shape
    Cout = out_ref.shape[-1]
    i = pl.program_id(1)
    nb = pl.num_programs(1)

    def act(p):  # fused BN+ReLU of the previous layer (f32)
        p = p.astype(jnp.float32)
        if apply_input_bnrelu:
            p = jnp.maximum(p * scale_ref[0] + shift_ref[0], 0.0)
        return p

    # Halo rows outside the image must be zero *after* the activation
    # (the conv zero-pads its post-BN/ReLU input).
    top = act(xtop_ref[0]) * (i > 0).astype(jnp.float32)
    bot = act(xbot_ref[0]) * (i < nb - 1).astype(jnp.float32)
    xf32 = jnp.concatenate([top, act(xb_ref[0]), bot], axis=0)  # (band+2, W, Cin)

    # Hoisted W-shifts: 2 XLU rolls + 2 column masks for the whole band.
    col = lax.broadcasted_iota(jnp.int32, (W, Cin), 0)
    xm_roll = pltpu.roll(xf32, shift=1, axis=1)          # x[w-1]  (kw = 0)
    xp_roll = pltpu.roll(xf32, shift=W - 1, axis=1)      # x[w+1]  (kw = 2)
    xm = jnp.where(col != 0, xm_roll, jnp.zeros_like(xm_roll))
    xp = jnp.where(col != W - 1, xp_roll, jnp.zeros_like(xp_roll))

    xcat_ref[:, :, :Cin] = xm.astype(jnp.bfloat16)
    xcat_ref[:, :, Cin:2 * Cin] = xf32.astype(jnp.bfloat16)
    xcat_ref[:, :, 2 * Cin:] = xp.astype(jnp.bfloat16)

    rows = band * W

    def tap(kh):  # one K = 3*Cin matmul per kernel row
        return jnp.dot(xcat_ref[kh:kh + band].reshape(rows, 3 * Cin),
                       w_ref[kh], preferred_element_type=jnp.float32)

    acc = tap(0) + tap(1) + tap(2)                       # (rows, Cout) f32
    out_ref[0] = acc.reshape(band, W, Cout).astype(out_ref.dtype)
    stats_ref[0, 0] = jnp.concatenate(
        [jnp.sum(acc, axis=0, keepdims=True),
         jnp.sum(acc * acc, axis=0, keepdims=True)], axis=0)


def conv3x3_bn_stats(x, w_folded, scale, shift, *, band, apply_input_bnrelu):
    N, H, W, Cin = x.shape
    Cout = w_folded.shape[-1]
    assert H % band == 0 and W % 8 == 0
    assert Cin % LANE == 0 and Cout % LANE == 0
    nb = H // band
    kernel = functools.partial(_conv3x3_kernel,
                               apply_input_bnrelu=apply_input_bnrelu)

    in_bytes = x.dtype.itemsize
    blk = ((band + 2) * W * Cin * in_bytes          # band + halo rows
           + band * W * Cout * 2 + 2 * Cout * 4     # out + stats blocks
           + 3 * 3 * Cin * Cout * 2                 # folded bf16 weights
           + 2 * Cin * 4)                           # scale / shift
    scratch = (band + 2) * W * 3 * Cin * 2
    vmem_limit = min(2 * blk + scratch + (8 << 20), 64 << 20)

    return pl.pallas_call(
        kernel,
        out_shape=(jax.ShapeDtypeStruct((N, H, W, Cout), jnp.bfloat16),
                   jax.ShapeDtypeStruct((N, nb, 2, Cout), jnp.float32)),
        grid=(N, nb),
        in_specs=[
            pl.BlockSpec((1, band, W, Cin), lambda n, i: (n, i, 0, 0)),
            pl.BlockSpec((1, 1, W, Cin),
                         lambda n, i: (n, jnp.maximum(i * band - 1, 0), 0, 0)),
            pl.BlockSpec((1, 1, W, Cin),
                         lambda n, i: (n, jnp.minimum((i + 1) * band, H - 1), 0, 0)),
            # TODO(synk): pipeline_mode=pl.Buffered(1) on this constant-index
            # weight spec would save one weight buffer of VMEM at VGG-scale
            # channel counts (v7x headroom).
            pl.BlockSpec((3, 3 * Cin, Cout), lambda n, i: (0, 0, 0)),
            pl.BlockSpec((1, Cin), lambda n, i: (0, 0)),
            pl.BlockSpec((1, Cin), lambda n, i: (0, 0)),
        ],
        out_specs=(
            pl.BlockSpec((1, band, W, Cout), lambda n, i: (n, i, 0, 0)),
            pl.BlockSpec((1, 1, 2, Cout), lambda n, i: (n, i, 0, 0)),
        ),
        scratch_shapes=[pltpu.VMEM((band + 2, W, 3 * Cin), jnp.bfloat16)],
        compiler_params=pltpu.CompilerParams(
            dimension_semantics=("parallel", "parallel"),
            vmem_limit_bytes=vmem_limit),
    )(x, x, x, w_folded, scale, shift)


# --------------------- final BN-affine + ReLU (lane-dense bands) -------------
def _bn_relu_kernel(x_ref, scale_ref, shift_ref, out_ref):
    x = x_ref[0].astype(jnp.float32)
    out_ref[0] = jnp.maximum(x * scale_ref[0] + shift_ref[0], 0.0)


def bn_relu(x, scale, shift, *, band):
    N, H, W, C = x.shape
    assert H % band == 0 and C % LANE == 0
    nb = H // band
    blk = band * W * C * (x.dtype.itemsize + 4) + 4 * C
    vmem_limit = min(2 * blk + (8 << 20), 64 << 20)
    return pl.pallas_call(
        _bn_relu_kernel,
        out_shape=jax.ShapeDtypeStruct((N, H, W, C), jnp.float32),
        grid=(N, nb),
        in_specs=[
            pl.BlockSpec((1, band, W, C), lambda n, i: (n, i, 0, 0)),
            pl.BlockSpec((1, C), lambda n, i: (0, 0)),
            pl.BlockSpec((1, C), lambda n, i: (0, 0)),
        ],
        out_specs=pl.BlockSpec((1, band, W, C), lambda n, i: (n, i, 0, 0)),
        compiler_params=pltpu.CompilerParams(
            dimension_semantics=("parallel", "parallel"),
            vmem_limit_bytes=vmem_limit),
    )(x, scale, shift)


# --------------------------------- glue --------------------------------------
def _bn_affine(stats, gamma_p, beta_p, count, eps):
    # stats: (N, nb, 2, Cp) per-(sample, band) [sum, sumsq] -> batch-stat BN affine.
    s = jnp.sum(stats[:, :, 0, :], axis=(0, 1))
    ss = jnp.sum(stats[:, :, 1, :], axis=(0, 1))
    mean = s / count
    # Single-pass E[x^2]-E[x]^2 (clamped); fine at the current tolerance.
    var = jnp.maximum(ss / count - mean * mean, 0.0)
    scale = gamma_p * lax.rsqrt(var + eps)
    shift = beta_p - mean * scale
    return scale.reshape(1, -1), shift.reshape(1, -1)


def _pad_channels(a, target):
    pad = target - a.shape[-1]
    if pad == 0:
        return a
    return jnp.pad(a, [(0, 0)] * (a.ndim - 1) + [(0, pad)])


def _fold_weight(w, cin_p, cout_p):
    # (3, 3, Cin, Cout) -> zero-pad channels -> (3, 3*Cin_p, Cout_p) bf16 with
    # the kw taps folded along K (matches the [x(w-1) | x(w) | x(w+1)] operand).
    w = jnp.pad(w, ((0, 0), (0, 0),
                    (0, cin_p - w.shape[2]), (0, cout_p - w.shape[3])))
    return w.reshape(3, 3 * cin_p, cout_p).astype(jnp.bfloat16)


def vgg_block(x_nchw, params, eps=1e-5, band_rows=None):
    N, Cin, H, W = x_nchw.shape
    Cmid = params["w1"].shape[-1]
    Cout = params["w2"].shape[-1]
    Cin_p, Cmid_p, Cout_p = (_round_up(c, LANE) for c in (Cin, Cmid, Cout))
    assert W % 8 == 0

    if band_rows is None:
        # Largest divisor of H keeping band blocks + scratch around <= 8 MiB
        # (bounds VMEM on v7x's 64 MiB and deepens the DMA/compute pipeline).
        cmax = max(Cin_p, Cmid_p, Cout_p)
        cap = max(1, (8 << 20) // (W * cmax * 12) - 2)
        band_rows = _largest_divisor_at_most(H, cap)
    assert H % band_rows == 0

    # NCHW -> lane-dense NHWC, channels zero-padded to a multiple of 128.
    # TODO(synk): in a full network keep padded NHWC end-to-end; the entry/exit
    # transposes and channel (un)pad below are extra HBM passes.
    x = jnp.transpose(x_nchw, (0, 2, 3, 1)).astype(jnp.float32)
    x = _pad_channels(x, Cin_p)

    w1 = _fold_weight(params["w1"], Cin_p, Cmid_p)
    w2 = _fold_weight(params["w2"], Cmid_p, Cout_p)
    g1 = _pad_channels(params["gamma1"], Cmid_p)   # padded gamma=0 keeps pad lanes 0
    b1 = _pad_channels(params["beta1"], Cmid_p)
    g2 = _pad_channels(params["gamma2"], Cout_p)
    b2 = _pad_channels(params["beta2"], Cout_p)

    count = N * H * W
    one_in = jnp.ones((1, Cin_p), jnp.float32)
    zero_in = jnp.zeros((1, Cin_p), jnp.float32)

    # conv1 (+ per-(sample,band) batch-stat partials); bf16 intermediate in HBM.
    c1, stats1 = conv3x3_bn_stats(x, w1, one_in, zero_in,
                                  band=band_rows, apply_input_bnrelu=False)
    scale1, shift1 = _bn_affine(stats1, g1, b1, count, eps)

    # bn1 + ReLU fused into conv2's input load; conv2 also emits its stats.
    c2, stats2 = conv3x3_bn_stats(c1, w2, scale1, shift1,
                                  band=band_rows, apply_input_bnrelu=True)
    scale2, shift2 = _bn_affine(stats2, g2, b2, count, eps)

    # final bn2 + ReLU on the same lane-dense NHWC band layout (f32 output).
    band_e = _largest_divisor_at_most(H, max(1, (8 << 20) // (W * Cout_p * 6)))
    out = bn_relu(c2, scale2, shift2, band=band_e)
    out = out[..., :Cout]
    return jnp.transpose(out, (0, 3, 1, 2))            # NHWC -> NCHW


def init_params(key, in_ch, mid_ch, out_ch):
    # Conv biases omitted: with training-mode BN right after each conv, the
    # bias is exactly cancelled by the batch mean (mathematical no-op).
    k1, k2 = jax.random.split(key, 2)
    return {
        "w1": jax.random.normal(k1, (3, 3, in_ch, mid_ch), jnp.float32)
              / jnp.sqrt(in_ch * 9.0),
        "gamma1": jnp.ones((mid_ch,), jnp.float32),
        "beta1": jnp.zeros((mid_ch,), jnp.float32),
        "w2": jax.random.normal(k2, (3, 3, mid_ch, out_ch), jnp.float32)
              / jnp.sqrt(mid_ch * 9.0),
        "gamma2": jnp.ones((out_ch,), jnp.float32),
        "beta2": jnp.zeros((out_ch,), jnp.float32),
    }


# ------------------------ plain-XLA reference (for checking) -----------------
def vgg_block_ref(x_nchw, params, eps=1e-5):
    def conv(x, w):
        return jax.lax.conv_general_dilated(
            x, w, window_strides=(1, 1), padding="SAME",
            dimension_numbers=("NCHW", "HWIO", "NCHW"))

    def bn_relu_ref(x, gamma, beta):
        mean = jnp.mean(x, axis=(0, 2, 3), keepdims=True)
        var = jnp.var(x, axis=(0, 2, 3), keepdims=True)
        y = (x - mean) * jax.lax.rsqrt(var + eps)
        y = y * gamma.reshape(1, -1, 1, 1) + beta.reshape(1, -1, 1, 1)
        return jnp.maximum(y, 0.0)

    h = bn_relu_ref(conv(x_nchw, params["w1"]), params["gamma1"], params["beta1"])
    return bn_relu_ref(conv(h, params["w2"]), params["gamma2"], params["beta2"])


if __name__ == "__main__":
    key = jax.random.PRNGKey(0)
    kp, kx = jax.random.split(key)

    in_ch, mid_ch, out_ch = 4, 8, 8
    N, H, W = 2, 16, 16

    params = init_params(kp, in_ch, mid_ch, out_ch)
    x = jax.random.normal(kx, (N, in_ch, H, W), jnp.float32)  # NCHW like PyTorch

    # band_rows=8 -> two H bands per image: exercises the halo-row path.
    fwd = jax.jit(functools.partial(vgg_block, band_rows=8))
    y = fwd(x, params)
    jax.block_until_ready(y)

    assert y.shape == (N, out_ch, H, W), y.shape
    assert bool(jnp.all(y >= 0.0)), "ReLU output must be non-negative"
    assert bool(jnp.all(jnp.isfinite(y))), "non-finite values in output"

    # Check against a plain-XLA f32 reference (bf16 MXU + bf16 intermediates
    # -> loose tolerance).
    y_ref = jax.jit(vgg_block_ref)(x, params)
    err = float(jnp.max(jnp.abs(y - y_ref)))
    assert err < 1e-1, f"max abs err vs reference = {err}"

    print("KERNEL_OK")
</pallas_src>

<mosaic_0001>
module attributes {stable_mosaic.version = 11 : i64} {
  func.func @_conv3x3_kernel(%arg0: i32, %arg1: i32, %arg2: memref<1x8x16x128xf32, #tpu.memory_space<vmem>>, %arg3: memref<1x1x16x128xf32, #tpu.memory_space<vmem>>, %arg4: memref<1x1x16x128xf32, #tpu.memory_space<vmem>>, %arg5: memref<3x384x128xbf16, #tpu.memory_space<vmem>>, %arg6: memref<1x128xf32, #tpu.memory_space<vmem>>, %arg7: memref<1x128xf32, #tpu.memory_space<vmem>>, %arg8: memref<1x8x16x128xbf16, #tpu.memory_space<vmem>>, %arg9: memref<1x1x2x128xf32, #tpu.memory_space<vmem>>, %arg10: memref<10x16x384xbf16, #tpu.memory_space<vmem>>) attributes {dimension_semantics = [#tpu.dimension_semantics<parallel>, #tpu.dimension_semantics<parallel>], iteration_bounds = array<i64: 2, 2>, scalar_prefetch = 0 : i64, scratch_operands = 1 : i64, tpu.core_type = #tpu.core_type<tc>, window_params = [{transform_indices = @transform_0, window_bounds = array<i64: 1, 8, 16, 128>}, {transform_indices = @transform_1, window_bounds = array<i64: 1, 1, 16, 128>}, {transform_indices = @transform_2, window_bounds = array<i64: 1, 1, 16, 128>}, {pipeline_mode = #tpu.pipeline_mode<synchronous>, transform_indices = @transform_3, window_bounds = array<i64: 3, 384, 128>}, {pipeline_mode = #tpu.pipeline_mode<synchronous>, transform_indices = @transform_4, window_bounds = array<i64: 1, 128>}, {pipeline_mode = #tpu.pipeline_mode<synchronous>, transform_indices = @transform_5, window_bounds = array<i64: 1, 128>}, {transform_indices = @transform_6, window_bounds = array<i64: 1, 8, 16, 128>}, {transform_indices = @transform_7, window_bounds = array<i64: 1, 1, 2, 128>}]} {
    %c0 = arith.constant 0 : index
    %c0_0 = arith.constant 0 : index
    %c0_1 = arith.constant 0 : index
    %c0_2 = arith.constant 0 : index
    %0 = vector.load %arg3[%c0, %c0_0, %c0_1, %c0_2] : memref<1x1x16x128xf32, #tpu.memory_space<vmem>>, vector<1x1x16x128xf32>
    %1 = vector.shape_cast %0 : vector<1x1x16x128xf32> to vector<1x16x128xf32>
    %c0_i32 = arith.constant 0 : i32
    %2 = arith.cmpi sgt, %arg1, %c0_i32 : i32
    %3 = arith.extui %2 : i1 to i32
    %4 = arith.sitofp %3 : i32 to f32
    %5 = vector.broadcast %4 : f32 to vector<1x16x128xf32>
    %6 = arith.mulf %1, %5 : vector<1x16x128xf32>
    %c0_3 = arith.constant 0 : index
    %c0_4 = arith.constant 0 : index
    %c0_5 = arith.constant 0 : index
    %c0_6 = arith.constant 0 : index
    %7 = vector.load %arg4[%c0_3, %c0_4, %c0_5, %c0_6] : memref<1x1x16x128xf32, #tpu.memory_space<vmem>>, vector<1x1x16x128xf32>
    %8 = vector.shape_cast %7 : vector<1x1x16x128xf32> to vector<1x16x128xf32>
    %c1_i32 = arith.constant 1 : i32
    %9 = arith.cmpi slt, %arg1, %c1_i32 : i32
    %10 = arith.extui %9 : i1 to i32
    %11 = arith.sitofp %10 : i32 to f32
    %12 = vector.broadcast %11 : f32 to vector<1x16x128xf32>
    %13 = arith.mulf %8, %12 : vector<1x16x128xf32>
    %c0_7 = arith.constant 0 : index
    %c0_8 = arith.constant 0 : index
    %c0_9 = arith.constant 0 : index
    %c0_10 = arith.constant 0 : index
    %14 = vector.load %arg2[%c0_7, %c0_8, %c0_9, %c0_10] : memref<1x8x16x128xf32, #tpu.memory_space<vmem>>, vector<1x8x16x128xf32>
    %15 = vector.shape_cast %14 : vector<1x8x16x128xf32> to vector<8x16x128xf32>
    %16 = tpu.concatenate %6, %15, %13 in 0 : vector<1x16x128xf32>, vector<8x16x128xf32>, vector<1x16x128xf32> -> vector<10x16x128xf32>
    %17 = tpu.iota {dimensions = array<i32: 0>} : vector<16x128xi32>
    %c1_i32_11 = arith.constant 1 : i32
    %18 = tpu.dynamic_rotate %16 by %c1_i32_11 dim 1 : vector<10x16x128xf32>, i32 -> vector<10x16x128xf32>
    %c15_i32 = arith.constant 15 : i32
    %19 = tpu.dynamic_rotate %16 by %c15_i32 dim 1 : vector<10x16x128xf32>, i32 -> vector<10x16x128xf32>
    %c0_i32_12 = arith.constant 0 : i32
    %20 = vector.broadcast %c0_i32_12 : i32 to vector<16x128xi32>
    %21 = arith.cmpi ne, %17, %20 : vector<16x128xi32>
    %cst = arith.constant 0.000000e+00 : f32
    %22 = vector.broadcast %cst : f32 to vector<10x16x128xf32>
    %23 = vector.shape_cast %21 : vector<16x128xi1> to vector<1x16x128xi1>
    %24 = vector.broadcast %23 : vector<1x16x128xi1> to vector<10x16x128xi1>
    %25 = arith.select %24, %18, %22 : vector<10x16x128xi1>, vector<10x16x128xf32>
    %c15_i32_13 = arith.constant 15 : i32
    %26 = vector.broadcast %c15_i32_13 : i32 to vector<16x128xi32>
    %27 = arith.cmpi ne, %17, %26 : vector<16x128xi32>
    %cst_14 = arith.constant 0.000000e+00 : f32
    %28 = vector.broadcast %cst_14 : f32 to vector<10x16x128xf32>
    %29 = vector.shape_cast %27 : vector<16x128xi1> to vector<1x16x128xi1>
    %30 = vector.broadcast %29 : vector<1x16x128xi1> to vector<10x16x128xi1>
    %31 = arith.select %30, %19, %28 : vector<10x16x128xi1>, vector<10x16x128xf32>
    %32 = arith.truncf %25 : vector<10x16x128xf32> to vector<10x16x128xbf16>
    %c0_15 = arith.constant 0 : index
    %c0_16 = arith.constant 0 : index
    %c0_17 = arith.constant 0 : index
    %33 = vector.load %arg10[%c0_15, %c0_16, %c0_17] : memref<10x16x384xbf16, #tpu.memory_space<vmem>>, vector<10x16x128xbf16>
    tpu.vector_store %arg10[%c0_15, %c0_16, %c0_17], %32 {strides = array<i32>} : memref<10x16x384xbf16, #tpu.memory_space<vmem>>, vector<10x16x128xbf16>,
    %34 = arith.truncf %16 : vector<10x16x128xf32> to vector<10x16x128xbf16>
    %c0_18 = arith.constant 0 : index
    %c0_19 = arith.constant 0 : index
    %c128 = arith.constant 128 : index
    %35 = vector.load %arg10[%c0_18, %c0_19, %c128] : memref<10x16x384xbf16, #tpu.memory_space<vmem>>, vector<10x16x128xbf16>
    tpu.vector_store %arg10[%c0_18, %c0_19, %c128], %34 {strides = array<i32>} : memref<10x16x384xbf16, #tpu.memory_space<vmem>>, vector<10x16x128xbf16>,
    %36 = arith.truncf %31 : vector<10x16x128xf32> to vector<10x16x128xbf16>
    %c0_20 = arith.constant 0 : index
    %c0_21 = arith.constant 0 : index
    %c256 = arith.constant 256 : index
    %37 = vector.load %arg10[%c0_20, %c0_21, %c256] : memref<10x16x384xbf16, #tpu.memory_space<vmem>>, vector<10x16x128xbf16>
    tpu.vector_store %arg10[%c0_20, %c0_21, %c256], %36 {strides = array<i32>} : memref<10x16x384xbf16, #tpu.memory_space<vmem>>, vector<10x16x128xbf16>,
    %c0_22 = arith.constant 0 : index
    %c0_23 = arith.constant 0 : index
    %c0_24 = arith.constant 0 : index
    %38 = vector.load %arg10[%c0_22, %c0_23, %c0_24] : memref<10x16x384xbf16, #tpu.memory_space<vmem>>, vector<8x16x384xbf16>
    %39 = vector.shape_cast %38 : vector<8x16x384xbf16> to vector<128x384xbf16>
    %c0_25 = arith.constant 0 : index
    %c0_26 = arith.constant 0 : index
    %c0_27 = arith.constant 0 : index
    %40 = vector.load %arg5[%c0_25, %c0_26, %c0_27] : memref<3x384x128xbf16, #tpu.memory_space<vmem>>, vector<1x384x128xbf16>
    %41 = vector.shape_cast %40 : vector<1x384x128xbf16> to vector<384x128xbf16>
    %cst_28 = arith.constant dense<0.000000e+00> : vector<128x128xf32>
    %42 = tpu.matmul %39, %41, %cst_28 {dimension_numbers = #tpu.dot_dimension_numbers<[1], [0], [0], [1], [0, 0, 1, 1], [], []>} : vector<128x384xbf16>, vector<384x128xbf16>, vector<128x128xf32> -> vector<128x128xf32>
    %c1 = arith.constant 1 : index
    %c0_29 = arith.constant 0 : index
    %c0_30 = arith.constant 0 : index
    %43 = vector.load %arg10[%c1, %c0_29, %c0_30] : memref<10x16x384xbf16, #tpu.memory_space<vmem>>, vector<8x16x384xbf16>
    %44 = vector.shape_cast %43 : vector<8x16x384xbf16> to vector<128x384xbf16>
    %c1_31 = arith.constant 1 : index
    %c0_32 = arith.constant 0 : index
    %c0_33 = arith.constant 0 : index
    %45 = vector.load %arg5[%c1_31, %c0_32, %c0_33] : memref<3x384x128xbf16, #tpu.memory_space<vmem>>, vector<1x384x128xbf16>
    %46 = vector.shape_cast %45 : vector<1x384x128xbf16> to vector<384x128xbf16>
    %cst_34 = arith.constant dense<0.000000e+00> : vector<128x128xf32>
    %47 = tpu.matmul %44, %46, %cst_34 {dimension_numbers = #tpu.dot_dimension_numbers<[1], [0], [0], [1], [0, 0, 1, 1], [], []>} : vector<128x384xbf16>, vector<384x128xbf16>, vector<128x128xf32> -> vector<128x128xf32>
    %48 = arith.addf %42, %47 : vector<128x128xf32>
    %c2 = arith.constant 2 : index
    %c0_35 = arith.constant 0 : index
    %c0_36 = arith.constant 0 : index
    %49 = vector.load %arg10[%c2, %c0_35, %c0_36] : memref<10x16x384xbf16, #tpu.memory_space<vmem>>, vector<8x16x384xbf16>
    %50 = vector.shape_cast %49 : vector<8x16x384xbf16> to vector<128x384xbf16>
    %c2_37 = arith.constant 2 : index
    %c0_38 = arith.constant 0 : index
    %c0_39 = arith.constant 0 : index
    %51 = vector.load %arg5[%c2_37, %c0_38, %c0_39] : memref<3x384x128xbf16, #tpu.memory_space<vmem>>, vector<1x384x128xbf16>
    %52 = vector.shape_cast %51 : vector<1x384x128xbf16> to vector<384x128xbf16>
    %cst_40 = arith.constant dense<0.000000e+00> : vector<128x128xf32>
    %53 = tpu.matmul %50, %52, %cst_40 {dimension_numbers = #tpu.dot_dimension_numbers<[1], [0], [0], [1], [0, 0, 1, 1], [], []>} : vector<128x384xbf16>, vector<384x128xbf16>, vector<128x128xf32> -> vector<128x128xf32>
    %54 = arith.addf %48, %53 : vector<128x128xf32>
    %55 = vector.shape_cast %54 : vector<128x128xf32> to vector<8x16x128xf32>
    %56 = arith.truncf %55 : vector<8x16x128xf32> to vector<8x16x128xbf16>
    %c0_41 = arith.constant 0 : index
    %c0_42 = arith.constant 0 : index
    %c0_43 = arith.constant 0 : index
    %c0_44 = arith.constant 0 : index
    %57 = vector.load %arg8[%c0_41, %c0_42, %c0_43, %c0_44] : memref<1x8x16x128xbf16, #tpu.memory_space<vmem>>, vector<1x8x16x128xbf16>
    %58 = vector.shape_cast %57 : vector<1x8x16x128xbf16> to vector<8x16x128xbf16>
    %59 = vector.shape_cast %56 : vector<8x16x128xbf16> to vector<1x8x16x128xbf16>
    tpu.vector_store %arg8[%c0_41, %c0_42, %c0_43, %c0_44], %59 {strides = array<i32>} : memref<1x8x16x128xbf16, #tpu.memory_space<vmem>>, vector<1x8x16x128xbf16>,
    %cst_45 = arith.constant dense<0.000000e+00> : vector<128xf32>
    %60 = vector.multi_reduction <add>, %54, %cst_45 [0] : vector<128x128xf32> to vector<128xf32>
    %61 = vector.shape_cast %60 : vector<128xf32> to vector<1x128xf32>
    %62 = arith.mulf %54, %54 : vector<128x128xf32>
    %cst_46 = arith.constant dense<0.000000e+00> : vector<128xf32>
    %63 = vector.multi_reduction <add>, %62, %cst_46 [0] : vector<128x128xf32> to vector<128xf32>
    %64 = vector.shape_cast %63 : vector<128xf32> to vector<1x128xf32>
    %65 = tpu.concatenate %61, %64 in 0 : vector<1x128xf32>, vector<1x128xf32> -> vector<2x128xf32>
    %c0_47 = arith.constant 0 : index
    %c0_48 = arith.constant 0 : index
    %c0_49 = arith.constant 0 : index
    %c0_50 = arith.constant 0 : index
    %66 = vector.load %arg9[%c0_47, %c0_48, %c0_49, %c0_50] : memref<1x1x2x128xf32, #tpu.memory_space<vmem>>, vector<1x1x2x128xf32>
    %67 = vector.shape_cast %66 : vector<1x1x2x128xf32> to vector<2x128xf32>
    %68 = vector.shape_cast %65 : vector<2x128xf32> to vector<1x1x2x128xf32>
    tpu.vector_store %arg9[%c0_47, %c0_48, %c0_49, %c0_50], %68 {strides = array<i32>} : memref<1x1x2x128xf32, #tpu.memory_space<vmem>>, vector<1x1x2x128xf32>,
    return
  }
  func.func @transform_0(%arg0: i32, %arg1: i32) -> (i32, i32, i32, i32) {
    %c0_i32 = arith.constant 0 : i32
    %c0_i32_0 = arith.constant 0 : i32
    %c0_i32_1 = arith.constant 0 : i32
    return %arg0, %arg1, %c0_i32, %c0_i32_0 : i32, i32, i32, i32
  }
  func.func @transform_1(%arg0: i32, %arg1: i32) -> (i32, i32, i32, i32) {
    %c8_i32 = arith.constant 8 : i32
    %0 = arith.muli %arg1, %c8_i32 : i32
    %c1_i32 = arith.constant 1 : i32
    %1 = arith.subi %0, %c1_i32 : i32
    %c0_i32 = arith.constant 0 : i32
    %2 = arith.maxsi %1, %c0_i32 : i32
    %c0_i32_0 = arith.constant 0 : i32
    %c0_i32_1 = arith.constant 0 : i32
    %c0_i32_2 = arith.constant 0 : i32
    return %arg0, %2, %c0_i32_0, %c0_i32_1 : i32, i32, i32, i32
  }
  func.func @transform_2(%arg0: i32, %arg1: i32) -> (i32, i32, i32, i32) {
    %c1_i32 = arith.constant 1 : i32
    %0 = arith.addi %arg1, %c1_i32 : i32
    %c8_i32 = arith.constant 8 : i32
    %1 = arith.muli %0, %c8_i32 : i32
    %c15_i32 = arith.constant 15 : i32
    %2 = arith.minsi %1, %c15_i32 : i32
    %c0_i32 = arith.constant 0 : i32
    %c0_i32_0 = arith.constant 0 : i32
    %c0_i32_1 = arith.constant 0 : i32
    return %arg0, %2, %c0_i32, %c0_i32_0 : i32, i32, i32, i32
  }
  func.func @transform_3(%arg0: i32, %arg1: i32) -> (i32, i32, i32) {
    %c0_i32 = arith.constant 0 : i32
    %c0_i32_0 = arith.constant 0 : i32
    %c0_i32_1 = arith.constant 0 : i32
    %c0_i32_2 = arith.constant 0 : i32
    return %c0_i32, %c0_i32_0, %c0_i32_1 : i32, i32, i32
  }
  func.func @transform_4(%arg0: i32, %arg1: i32) -> (i32, i32) {
    %c0_i32 = arith.constant 0 : i32
    %c0_i32_0 = arith.constant 0 : i32
    %c0_i32_1 = arith.constant 0 : i32
    return %c0_i32, %c0_i32_0 : i32, i32
  }
  func.func @transform_5(%arg0: i32, %arg1: i32) -> (i32, i32) {
    %c0_i32 = arith.constant 0 : i32
    %c0_i32_0 = arith.constant 0 : i32
    %c0_i32_1 = arith.constant 0 : i32
    return %c0_i32, %c0_i32_0 : i32, i32
  }
  func.func @transform_6(%arg0: i32, %arg1: i32) -> (i32, i32, i32, i32) {
    %c0_i32 = arith.constant 0 : i32
    %c0_i32_0 = arith.constant 0 : i32
    %c0_i32_1 = arith.constant 0 : i32
    return %arg0, %arg1, %c0_i32, %c0_i32_0 : i32, i32, i32, i32
  }
  func.func @transform_7(%arg0: i32, %arg1: i32) -> (i32, i32, i32, i32) {
    %c0_i32 = arith.constant 0 : i32
    %c0_i32_0 = arith.constant 0 : i32
    %c0_i32_1 = arith.constant 0 : i32
    return %arg0, %arg1, %c0_i32, %c0_i32_0 : i32, i32, i32, i32
  }
}

module attributes {stable_mosaic.version = 11 : i64} {
  func.func @_bn_relu_kernel(%arg0: i32, %arg1: i32, %arg2: memref<1x16x16x128xbf16, #tpu.memory_space<vmem>>, %arg3: memref<1x128xf32, #tpu.memory_space<vmem>>, %arg4: memref<1x128xf32, #tpu.memory_space<vmem>>, %arg5: memref<1x16x16x128xf32, #tpu.memory_space<vmem>>) attributes {dimension_semantics = [#tpu.dimension_semantics<parallel>, #tpu.dimension_semantics<parallel>], iteration_bounds = array<i64: 2, 1>, scalar_prefetch = 0 : i64, scratch_operands = 0 : i64, tpu.core_type = #tpu.core_type<tc>, window_params = [{transform_indices = @transform_0, window_bounds = array<i64: 1, 16, 16, 128>}, {pipeline_mode = #tpu.pipeline_mode<synchronous>, transform_indices = @transform_1, window_bounds = array<i64: 1, 128>}, {pipeline_mode = #tpu.pipeline_mode<synchronous>, transform_indices = @transform_2, window_bounds = array<i64: 1, 128>}, {transform_indices = @transform_3, window_bounds = array<i64: 1, 16, 16, 128>}]} {
    %c0 = arith.constant 0 : index
    %c0_0 = arith.constant 0 : index
    %c0_1 = arith.constant 0 : index
    %c0_2 = arith.constant 0 : index
    %0 = vector.load %arg2[%c0, %c0_0, %c0_1, %c0_2] : memref<1x16x16x128xbf16, #tpu.memory_space<vmem>>, vector<1x16x16x128xbf16>
    %1 = vector.shape_cast %0 : vector<1x16x16x128xbf16> to vector<16x16x128xbf16>
    %2 = arith.extf %1 : vector<16x16x128xbf16> to vector<16x16x128xf32>
    %c0_3 = arith.constant 0 : index
    %c0_4 = arith.constant 0 : index
    %3 = vector.load %arg3[%c0_3, %c0_4] : memref<1x128xf32, #tpu.memory_space<vmem>>, vector<1x128xf32>
    %4 = vector.shape_cast %3 : vector<1x128xf32> to vector<128xf32>
    %5 = vector.shape_cast %4 : vector<128xf32> to vector<1x1x128xf32>
    %6 = vector.broadcast %5 : vector<1x1x128xf32> to vector<16x16x128xf32>
    %7 = arith.mulf %2, %6 : vector<16x16x128xf32>
    %c0_5 = arith.constant 0 : index
    %c0_6 = arith.constant 0 : index
    %8 = vector.load %arg4[%c0_5, %c0_6] : memref<1x128xf32, #tpu.memory_space<vmem>>, vector<1x128xf32>
    %9 = vector.shape_cast %8 : vector<1x128xf32> to vector<128xf32>
    %10 = vector.shape_cast %9 : vector<128xf32> to vector<1x1x128xf32>
    %11 = vector.broadcast %10 : vector<1x1x128xf32> to vector<16x16x128xf32>
    %12 = arith.addf %7, %11 : vector<16x16x128xf32>
    %cst = arith.constant 0.000000e+00 : f32
    %13 = vector.broadcast %cst : f32 to vector<16x16x128xf32>
    %14 = arith.maximumf %12, %13 : vector<16x16x128xf32>
    %c0_7 = arith.constant 0 : index
    %c0_8 = arith.constant 0 : index
    %c0_9 = arith.constant 0 : index
    %c0_10 = arith.constant 0 : index
    %15 = vector.load %arg5[%c0_7, %c0_8, %c0_9, %c0_10] : memref<1x16x16x128xf32, #tpu.memory_space<vmem>>, vector<1x16x16x128xf32>
    %16 = vector.shape_cast %15 : vector<1x16x16x128xf32> to vector<16x16x128xf32>
    %17 = vector.shape_cast %14 : vector<16x16x128xf32> to vector<1x16x16x128xf32>
    tpu.vector_store %arg5[%c0_7, %c0_8, %c0_9, %c0_10], %17 {strides = array<i32>} : memref<1x16x16x128xf32, #tpu.memory_space<vmem>>, vector<1x16x16x128xf32>,
    return
  }
  func.func @transform_0(%arg0: i32, %arg1: i32) -> (i32, i32, i32, i32) {
    %c0_i32 = arith.constant 0 : i32
    %c0_i32_0 = arith.constant 0 : i32
    %c0_i32_1 = arith.constant 0 : i32
    return %arg0, %arg1, %c0_i32, %c0_i32_0 : i32, i32, i32, i32
  }
  func.func @transform_1(%arg0: i32, %arg1: i32) -> (i32, i32) {
    %c0_i32 = arith.constant 0 : i32
    %c0_i32_0 = arith.constant 0 : i32
    %c0_i32_1 = arith.constant 0 : i32
    return %c0_i32, %c0_i32_0 : i32, i32
  }
  func.func @transform_2(%arg0: i32, %arg1: i32) -> (i32, i32) {
    %c0_i32 = arith.constant 0 : i32
    %c0_i32_0 = arith.constant 0 : i32
    %c0_i32_1 = arith.constant 0 : i32
    return %c0_i32, %c0_i32_0 : i32, i32
  }
  func.func @transform_3(%arg0: i32, %arg1: i32) -> (i32, i32, i32, i32) {
    %c0_i32 = arith.constant 0 : i32
    %c0_i32_0 = arith.constant 0 : i32
    %c0_i32_1 = arith.constant 0 : i32
    return %arg0, %arg1, %c0_i32, %c0_i32_0 : i32, i32, i32, i32
  }
}

module attributes {stable_mosaic.version = 11 : i64} {
  func.func @_conv3x3_kernel(%arg0: i32, %arg1: i32, %arg2: memref<1x8x16x128xbf16, #tpu.memory_space<vmem>>, %arg3: memref<1x1x16x128xbf16, #tpu.memory_space<vmem>>, %arg4: memref<1x1x16x128xbf16, #tpu.memory_space<vmem>>, %arg5: memref<3x384x128xbf16, #tpu.memory_space<vmem>>, %arg6: memref<1x128xf32, #tpu.memory_space<vmem>>, %arg7: memref<1x128xf32, #tpu.memory_space<vmem>>, %arg8: memref<1x8x16x128xbf16, #tpu.memory_space<vmem>>, %arg9: memref<1x1x2x128xf32, #tpu.memory_space<vmem>>, %arg10: memref<10x16x384xbf16, #tpu.memory_space<vmem>>) attributes {dimension_semantics = [#tpu.dimension_semantics<parallel>, #tpu.dimension_semantics<parallel>], iteration_bounds = array<i64: 2, 2>, scalar_prefetch = 0 : i64, scratch_operands = 1 : i64, tpu.core_type = #tpu.core_type<tc>, window_params = [{transform_indices = @transform_0, window_bounds = array<i64: 1, 8, 16, 128>}, {transform_indices = @transform_1, window_bounds = array<i64: 1, 1, 16, 128>}, {transform_indices = @transform_2, window_bounds = array<i64: 1, 1, 16, 128>}, {pipeline_mode = #tpu.pipeline_mode<synchronous>, transform_indices = @transform_3, window_bounds = array<i64: 3, 384, 128>}, {pipeline_mode = #tpu.pipeline_mode<synchronous>, transform_indices = @transform_4, window_bounds = array<i64: 1, 128>}, {pipeline_mode = #tpu.pipeline_mode<synchronous>, transform_indices = @transform_5, window_bounds = array<i64: 1, 128>}, {transform_indices = @transform_6, window_bounds = array<i64: 1, 8, 16, 128>}, {transform_indices = @transform_7, window_bounds = array<i64: 1, 1, 2, 128>}]} {
    %c0 = arith.constant 0 : index
    %c0_0 = arith.constant 0 : index
    %c0_1 = arith.constant 0 : index
    %c0_2 = arith.constant 0 : index
    %0 = vector.load %arg3[%c0, %c0_0, %c0_1, %c0_2] : memref<1x1x16x128xbf16, #tpu.memory_space<vmem>>, vector<1x1x16x128xbf16>
    %1 = vector.shape_cast %0 : vector<1x1x16x128xbf16> to vector<1x16x128xbf16>
    %2 = arith.extf %1 : vector<1x16x128xbf16> to vector<1x16x128xf32>
    %c0_3 = arith.constant 0 : index
    %c0_4 = arith.constant 0 : index
    %3 = vector.load %arg6[%c0_3, %c0_4] : memref<1x128xf32, #tpu.memory_space<vmem>>, vector<1x128xf32>
    %4 = vector.shape_cast %3 : vector<1x128xf32> to vector<128xf32>
    %5 = vector.shape_cast %4 : vector<128xf32> to vector<1x1x128xf32>
    %6 = vector.broadcast %5 : vector<1x1x128xf32> to vector<1x16x128xf32>
    %7 = arith.mulf %2, %6 : vector<1x16x128xf32>
    %c0_5 = arith.constant 0 : index
    %c0_6 = arith.constant 0 : index
    %8 = vector.load %arg7[%c0_5, %c0_6] : memref<1x128xf32, #tpu.memory_space<vmem>>, vector<1x128xf32>
    %9 = vector.shape_cast %8 : vector<1x128xf32> to vector<128xf32>
    %10 = vector.shape_cast %9 : vector<128xf32> to vector<1x1x128xf32>
    %11 = vector.broadcast %10 : vector<1x1x128xf32> to vector<1x16x128xf32>
    %12 = arith.addf %7, %11 : vector<1x16x128xf32>
    %cst = arith.constant 0.000000e+00 : f32
    %13 = vector.broadcast %cst : f32 to vector<1x16x128xf32>
    %14 = arith.maximumf %12, %13 : vector<1x16x128xf32>
    %c0_i32 = arith.constant 0 : i32
    %15 = arith.cmpi sgt, %arg1, %c0_i32 : i32
    %16 = arith.extui %15 : i1 to i32
    %17 = arith.sitofp %16 : i32 to f32
    %18 = vector.broadcast %17 : f32 to vector<1x16x128xf32>
    %19 = arith.mulf %14, %18 : vector<1x16x128xf32>
    %c0_7 = arith.constant 0 : index
    %c0_8 = arith.constant 0 : index
    %c0_9 = arith.constant 0 : index
    %c0_10 = arith.constant 0 : index
    %20 = vector.load %arg4[%c0_7, %c0_8, %c0_9, %c0_10] : memref<1x1x16x128xbf16, #tpu.memory_space<vmem>>, vector<1x1x16x128xbf16>
    %21 = vector.shape_cast %20 : vector<1x1x16x128xbf16> to vector<1x16x128xbf16>
    %22 = arith.extf %21 : vector<1x16x128xbf16> to vector<1x16x128xf32>
    %c0_11 = arith.constant 0 : index
    %c0_12 = arith.constant 0 : index
    %23 = vector.load %arg6[%c0_11, %c0_12] : memref<1x128xf32, #tpu.memory_space<vmem>>, vector<1x128xf32>
    %24 = vector.shape_cast %23 : vector<1x128xf32> to vector<128xf32>
    %25 = vector.shape_cast %24 : vector<128xf32> to vector<1x1x128xf32>
    %26 = vector.broadcast %25 : vector<1x1x128xf32> to vector<1x16x128xf32>
    %27 = arith.mulf %22, %26 : vector<1x16x128xf32>
    %c0_13 = arith.constant 0 : index
    %c0_14 = arith.constant 0 : index
    %28 = vector.load %arg7[%c0_13, %c0_14] : memref<1x128xf32, #tpu.memory_space<vmem>>, vector<1x128xf32>
    %29 = vector.shape_cast %28 : vector<1x128xf32> to vector<128xf32>
    %30 = vector.shape_cast %29 : vector<128xf32> to vector<1x1x128xf32>
    %31 = vector.broadcast %30 : vector<1x1x128xf32> to vector<1x16x128xf32>
    %32 = arith.addf %27, %31 : vector<1x16x128xf32>
    %cst_15 = arith.constant 0.000000e+00 : f32
    %33 = vector.broadcast %cst_15 : f32 to vector<1x16x128xf32>
    %34 = arith.maximumf %32, %33 : vector<1x16x128xf32>
    %c1_i32 = arith.constant 1 : i32
    %35 = arith.cmpi slt, %arg1, %c1_i32 : i32
    %36 = arith.extui %35 : i1 to i32
    %37 = arith.sitofp %36 : i32 to f32
    %38 = vector.broadcast %37 : f32 to vector<1x16x128xf32>
    %39 = arith.mulf %34, %38 : vector<1x16x128xf32>
    %c0_16 = arith.constant 0 : index
    %c0_17 = arith.constant 0 : index
    %c0_18 = arith.constant 0 : index
    %c0_19 = arith.constant 0 : index
    %40 = vector.load %arg2[%c0_16, %c0_17, %c0_18, %c0_19] : memref<1x8x16x128xbf16, #tpu.memory_space<vmem>>, vector<1x8x16x128xbf16>
    %41 = vector.shape_cast %40 : vector<1x8x16x128xbf16> to vector<8x16x128xbf16>
    %42 = arith.extf %41 : vector<8x16x128xbf16> to vector<8x16x128xf32>
    %c0_20 = arith.constant 0 : index
    %c0_21 = arith.constant 0 : index
    %43 = vector.load %arg6[%c0_20, %c0_21] : memref<1x128xf32, #tpu.memory_space<vmem>>, vector<1x128xf32>
    %44 = vector.shape_cast %43 : vector<1x128xf32> to vector<128xf32>
    %45 = vector.shape_cast %44 : vector<128xf32> to vector<1x1x128xf32>
    %46 = vector.broadcast %45 : vector<1x1x128xf32> to vector<8x16x128xf32>
    %47 = arith.mulf %42, %46 : vector<8x16x128xf32>
    %c0_22 = arith.constant 0 : index
    %c0_23 = arith.constant 0 : index
    %48 = vector.load %arg7[%c0_22, %c0_23] : memref<1x128xf32, #tpu.memory_space<vmem>>, vector<1x128xf32>
    %49 = vector.shape_cast %48 : vector<1x128xf32> to vector<128xf32>
    %50 = vector.shape_cast %49 : vector<128xf32> to vector<1x1x128xf32>
    %51 = vector.broadcast %50 : vector<1x1x128xf32> to vector<8x16x128xf32>
    %52 = arith.addf %47, %51 : vector<8x16x128xf32>
    %cst_24 = arith.constant 0.000000e+00 : f32
    %53 = vector.broadcast %cst_24 : f32 to vector<8x16x128xf32>
    %54 = arith.maximumf %52, %53 : vector<8x16x128xf32>
    %55 = tpu.concatenate %19, %54, %39 in 0 : vector<1x16x128xf32>, vector<8x16x128xf32>, vector<1x16x128xf32> -> vector<10x16x128xf32>
    %56 = tpu.iota {dimensions = array<i32: 0>} : vector<16x128xi32>
    %c1_i32_25 = arith.constant 1 : i32
    %57 = tpu.dynamic_rotate %55 by %c1_i32_25 dim 1 : vector<10x16x128xf32>, i32 -> vector<10x16x128xf32>
    %c15_i32 = arith.constant 15 : i32
    %58 = tpu.dynamic_rotate %55 by %c15_i32 dim 1 : vector<10x16x128xf32>, i32 -> vector<10x16x128xf32>
    %c0_i32_26 = arith.constant 0 : i32
    %59 = vector.broadcast %c0_i32_26 : i32 to vector<16x128xi32>
    %60 = arith.cmpi ne, %56, %59 : vector<16x128xi32>
    %cst_27 = arith.constant 0.000000e+00 : f32
    %61 = vector.broadcast %cst_27 : f32 to vector<10x16x128xf32>
    %62 = vector.shape_cast %60 : vector<16x128xi1> to vector<1x16x128xi1>
    %63 = vector.broadcast %62 : vector<1x16x128xi1> to vector<10x16x128xi1>
    %64 = arith.select %63, %57, %61 : vector<10x16x128xi1>, vector<10x16x128xf32>
    %c15_i32_28 = arith.constant 15 : i32
    %65 = vector.broadcast %c15_i32_28 : i32 to vector<16x128xi32>
    %66 = arith.cmpi ne, %56, %65 : vector<16x128xi32>
    %cst_29 = arith.constant 0.000000e+00 : f32
    %67 = vector.broadcast %cst_29 : f32 to vector<10x16x128xf32>
    %68 = vector.shape_cast %66 : vector<16x128xi1> to vector<1x16x128xi1>
    %69 = vector.broadcast %68 : vector<1x16x128xi1> to vector<10x16x128xi1>
    %70 = arith.select %69, %58, %67 : vector<10x16x128xi1>, vector<10x16x128xf32>
    %71 = arith.truncf %64 : vector<10x16x128xf32> to vector<10x16x128xbf16>
    %c0_30 = arith.constant 0 : index
    %c0_31 = arith.constant 0 : index
    %c0_32 = arith.constant 0 : index
    %72 = vector.load %arg10[%c0_30, %c0_31, %c0_32] : memref<10x16x384xbf16, #tpu.memory_space<vmem>>, vector<10x16x128xbf16>
    tpu.vector_store %arg10[%c0_30, %c0_31, %c0_32], %71 {strides = array<i32>} : memref<10x16x384xbf16, #tpu.memory_space<vmem>>, vector<10x16x128xbf16>,
    %73 = arith.truncf %55 : vector<10x16x128xf32> to vector<10x16x128xbf16>
    %c0_33 = arith.constant 0 : index
    %c0_34 = arith.constant 0 : index
    %c128 = arith.constant 128 : index
    %74 = vector.load %arg10[%c0_33, %c0_34, %c128] : memref<10x16x384xbf16, #tpu.memory_space<vmem>>, vector<10x16x128xbf16>
    tpu.vector_store %arg10[%c0_33, %c0_34, %c128], %73 {strides = array<i32>} : memref<10x16x384xbf16, #tpu.memory_space<vmem>>, vector<10x16x128xbf16>,
    %75 = arith.truncf %70 : vector<10x16x128xf32> to vector<10x16x128xbf16>
    %c0_35 = arith.constant 0 : index
    %c0_36 = arith.constant 0 : index
    %c256 = arith.constant 256 : index
    %76 = vector.load %arg10[%c0_35, %c0_36, %c256] : memref<10x16x384xbf16, #tpu.memory_space<vmem>>, vector<10x16x128xbf16>
    tpu.vector_store %arg10[%c0_35, %c0_36, %c256], %75 {strides = array<i32>} : memref<10x16x384xbf16, #tpu.memory_space<vmem>>, vector<10x16x128xbf16>,
    %c0_37 = arith.constant 0 : index
    %c0_38 = arith.constant 0 : index
    %c0_39 = arith.constant 0 : index
    %77 = vector.load %arg10[%c0_37, %c0_38, %c0_39] : memref<10x16x384xbf16, #tpu.memory_space<vmem>>, vector<8x16x384xbf16>
    %78 = vector.shape_cast %77 : vector<8x16x384xbf16> to vector<128x384xbf16>
    %c0_40 = arith.constant 0 : index
    %c0_41 = arith.constant 0 : index
    %c0_42 = arith.constant 0 : index
    %79 = vector.load %arg5[%c0_40, %c0_41, %c0_42] : memref<3x384x128xbf16, #tpu.memory_space<vmem>>, vector<1x384x128xbf16>
    %80 = vector.shape_cast %79 : vector<1x384x128xbf16> to vector<384x128xbf16>
    %cst_43 = arith.constant dense<0.000000e+00> : vector<128x128xf32>
    %81 = tpu.matmul %78, %80, %cst_43 {dimension_numbers = #tpu.dot_dimension_numbers<[1], [0], [0], [1], [0, 0, 1, 1], [], []>} : vector<128x384xbf16>, vector<384x128xbf16>, vector<128x128xf32> -> vector<128x128xf32>
    %c1 = arith.constant 1 : index
    %c0_44 = arith.constant 0 : index
    %c0_45 = arith.constant 0 : index
    %82 = vector.load %arg10[%c1, %c0_44, %c0_45] : memref<10x16x384xbf16, #tpu.memory_space<vmem>>, vector<8x16x384xbf16>
    %83 = vector.shape_cast %82 : vector<8x16x384xbf16> to vector<128x384xbf16>
    %c1_46 = arith.constant 1 : index
    %c0_47 = arith.constant 0 : index
    %c0_48 = arith.constant 0 : index
    %84 = vector.load %arg5[%c1_46, %c0_47, %c0_48] : memref<3x384x128xbf16, #tpu.memory_space<vmem>>, vector<1x384x128xbf16>
    %85 = vector.shape_cast %84 : vector<1x384x128xbf16> to vector<384x128xbf16>
    %cst_49 = arith.constant dense<0.000000e+00> : vector<128x128xf32>
    %86 = tpu.matmul %83, %85, %cst_49 {dimension_numbers = #tpu.dot_dimension_numbers<[1], [0], [0], [1], [0, 0, 1, 1], [], []>} : vector<128x384xbf16>, vector<384x128xbf16>, vector<128x128xf32> -> vector<128x128xf32>
    %87 = arith.addf %81, %86 : vector<128x128xf32>
    %c2 = arith.constant 2 : index
    %c0_50 = arith.constant 0 : index
    %c0_51 = arith.constant 0 : index
    %88 = vector.load %arg10[%c2, %c0_50, %c0_51] : memref<10x16x384xbf16, #tpu.memory_space<vmem>>, vector<8x16x384xbf16>
    %89 = vector.shape_cast %88 : vector<8x16x384xbf16> to vector<128x384xbf16>
    %c2_52 = arith.constant 2 : index
    %c0_53 = arith.constant 0 : index
    %c0_54 = arith.constant 0 : index
    %90 = vector.load %arg5[%c2_52, %c0_53, %c0_54] : memref<3x384x128xbf16, #tpu.memory_space<vmem>>, vector<1x384x128xbf16>
    %91 = vector.shape_cast %90 : vector<1x384x128xbf16> to vector<384x128xbf16>
    %cst_55 = arith.constant dense<0.000000e+00> : vector<128x128xf32>
    %92 = tpu.matmul %89, %91, %cst_55 {dimension_numbers = #tpu.dot_dimension_numbers<[1], [0], [0], [1], [0, 0, 1, 1], [], []>} : vector<128x384xbf16>, vector<384x128xbf16>, vector<128x128xf32> -> vector<128x128xf32>
    %93 = arith.addf %87, %92 : vector<128x128xf32>
    %94 = vector.shape_cast %93 : vector<128x128xf32> to vector<8x16x128xf32>
    %95 = arith.truncf %94 : vector<8x16x128xf32> to vector<8x16x128xbf16>
    %c0_56 = arith.constant 0 : index
    %c0_57 = arith.constant 0 : index
    %c0_58 = arith.constant 0 : index
    %c0_59 = arith.constant 0 : index
    %96 = vector.load %arg8[%c0_56, %c0_57, %c0_58, %c0_59] : memref<1x8x16x128xbf16, #tpu.memory_space<vmem>>, vector<1x8x16x128xbf16>
    %97 = vector.shape_cast %96 : vector<1x8x16x128xbf16> to vector<8x16x128xbf16>
    %98 = vector.shape_cast %95 : vector<8x16x128xbf16> to vector<1x8x16x128xbf16>
    tpu.vector_store %arg8[%c0_56, %c0_57, %c0_58, %c0_59], %98 {strides = array<i32>} : memref<1x8x16x128xbf16, #tpu.memory_space<vmem>>, vector<1x8x16x128xbf16>,
    %cst_60 = arith.constant dense<0.000000e+00> : vector<128xf32>
    %99 = vector.multi_reduction <add>, %93, %cst_60 [0] : vector<128x128xf32> to vector<128xf32>
    %100 = vector.shape_cast %99 : vector<128xf32> to vector<1x128xf32>
    %101 = arith.mulf %93, %93 : vector<128x128xf32>
    %cst_61 = arith.constant dense<0.000000e+00> : vector<128xf32>
    %102 = vector.multi_reduction <add>, %101, %cst_61 [0] : vector<128x128xf32> to vector<128xf32>
    %103 = vector.shape_cast %102 : vector<128xf32> to vector<1x128xf32>
    %104 = tpu.concatenate %100, %103 in 0 : vector<1x128xf32>, vector<1x128xf32> -> vector<2x128xf32>
    %c0_62 = arith.constant 0 : index
    %c0_63 = arith.constant 0 : index
    %c0_64 = arith.constant 0 : index
    %c0_65 = arith.constant 0 : index
    %105 = vector.load %arg9[%c0_62, %c0_63, %c0_64, %c0_65] : memref<1x1x2x128xf32, #tpu.memory_space<vmem>>, vector<1x1x2x128xf32>
    %106 = vector.shape_cast %105 : vector<1x1x2x128xf32> to vector<2x128xf32>
    %107 = vector.shape_cast %104 : vector<2x128xf32> to vector<1x1x2x128xf32>
    tpu.vector_store %arg9[%c0_62, %c0_63, %c0_64, %c0_65], %107 {strides = array<i32>} : memref<1x1x2x128xf32, #tpu.memory_space<vmem>>, vector<1x1x2x128xf32>,
    return
  }
  func.func @transform_0(%arg0: i32, %arg1: i32) -> (i32, i32, i32, i32) {
    %c0_i32 = arith.constant 0 : i32
    %c0_i32_0 = arith.constant 0 : i32
    %c0_i32_1 = arith.constant 0 : i32
    return %arg0, %arg1, %c0_i32, %c0_i32_0 : i32, i32, i32, i32
  }
  func.func @transform_1(%arg0: i32, %arg1: i32) -> (i32, i32, i32, i32) {
    %c8_i32 = arith.constant 8 : i32
    %0 = arith.muli %arg1, %c8_i32 : i32
    %c1_i32 = arith.constant 1 : i32
    %1 = arith.subi %0, %c1_i32 : i32
    %c0_i32 = arith.constant 0 : i32
    %2 = arith.maxsi %1, %c0_i32 : i32
    %c0_i32_0 = arith.constant 0 : i32
    %c0_i32_1 = arith.constant 0 : i32
    %c0_i32_2 = arith.constant 0 : i32
    return %arg0, %2, %c0_i32_0, %c0_i32_1 : i32, i32, i32, i32
  }
  func.func @transform_2(%arg0: i32, %arg1: i32) -> (i32, i32, i32, i32) {
    %c1_i32 = arith.constant 1 : i32
    %0 = arith.addi %arg1, %c1_i32 : i32
    %c8_i32 = arith.constant 8 : i32
    %1 = arith.muli %0, %c8_i32 : i32
    %c15_i32 = arith.constant 15 : i32
    %2 = arith.minsi %1, %c15_i32 : i32
    %c0_i32 = arith.constant 0 : i32
    %c0_i32_0 = arith.constant 0 : i32
    %c0_i32_1 = arith.constant 0 : i32
    return %arg0, %2, %c0_i32, %c0_i32_0 : i32, i32, i32, i32
  }
  func.func @transform_3(%arg0: i32, %arg1: i32) -> (i32, i32, i32) {
    %c0_i32 = arith.constant 0 : i32
    %c0_i32_0 = arith.constant 0 : i32
    %c0_i32_1 = arith.constant 0 : i32
    %c0_i32_2 = arith.constant 0 : i32
    return %c0_i32, %c0_i32_0, %c0_i32_1 : i32, i32, i32
  }
  func.func @transform_4(%arg0: i32, %arg1: i32) -> (i32, i32) {
    %c0_i32 = arith.constant 0 : i32
    %c0_i32_0 = arith.constant 0 : i32
    %c0_i32_1 = arith.constant 0 : i32
    return %c0_i32, %c0_i32_0 : i32, i32
  }
  func.func @transform_5(%arg0: i32, %arg1: i32) -> (i32, i32) {
    %c0_i32 = arith.constant 0 : i32
    %c0_i32_0 = arith.constant 0 : i32
    %c0_i32_1 = arith.constant 0 : i32
    return %c0_i32, %c0_i32_0 : i32, i32
  }
  func.func @transform_6(%arg0: i32, %arg1: i32) -> (i32, i32, i32, i32) {
    %c0_i32 = arith.constant 0 : i32
    %c0_i32_0 = arith.constant 0 : i32
    %c0_i32_1 = arith.constant 0 : i32
    return %arg0, %arg1, %c0_i32, %c0_i32_0 : i32, i32, i32, i32
  }
  func.func @transform_7(%arg0: i32, %arg1: i32) -> (i32, i32, i32, i32) {
    %c0_i32 = arith.constant 0 : i32
    %c0_i32_0 = arith.constant 0 : i32
    %c0_i32_1 = arith.constant 0 : i32
    return %arg0, %arg1, %c0_i32, %c0_i32_0 : i32, i32, i32, i32
  }
}

</mosaic_0001>

<bundles_post_ra>
// kernel: vgg_block.5
= control target key start
LH: loop header
LB: loop body
LE: loop exit
PB: predicated region body
PF: predicated region fallthrough
CT: control target
= control target key end

     0   :  { %s679_s12 = smov 0   ;;  %s681_s13 = smov 0   ;;  %s842_s0 = inlined_call_operand.vmem [shape: bf16[2,16,16,128], index: 0, kind: input, shape index: {}]   ;;  %s843_s1 = inlined_call_operand.vmem [shape: f32[1,128], index: 1, kind: input, shape index: {}]   ;;  %s844_s2 = inlined_call_operand.vmem [shape: f32[1,128], index: 2, kind: input, shape index: {}]   ;;  %s845_s3 = inlined_call_operand.vmem [shape: f32[2,16,16,128], index: 3, kind: output, shape index: {}]  }
   0x1   :  { %s683_s14 = smov 0  }
   0x2 LB: > { %s25_s15 = sadd.s32 1, %s653_s13  ;;  %p521_p0 = scmp.ge.s32.totalorder %s657_s14, 1  ;;  %s657_s14 = sphi %s683_s14, %s13_s14   ;;  %s653_s13 = sphi %s681_s13, %s847_s13   ;;  %s649_s12 = sphi %s679_s12, %s846_s12  }
   0x3   : > { %p27_p1 = scmp.ge.s32.totalorder %s25_s15, 2  ;;  %p159_p2 = scmp.lt.s32.totalorder %s657_s14, 3 }
   0x5   : > { %s849_s15 = smov (%p27_p1, %s25_s15), 0  ;;  %p160_p3 = pnand %p521_p0, %p159_p2 }
   0x6   : > { %p194_p4 = scmp.lt.s32.totalorder (!%p160_p3), %s649_s12, 1  ;;  %v708_v0 = vld [vmem:[%s843_s1] ss:$0 sm:$0xff] (!%p160_p3) }
   0x7   : > { %163 = sbr.rel (%p160_p3) target bundleno = 54 (0x36), region = 32  ;;  %v717_v9 = vld [vmem:[%s844_s2] ss:$0 sm:$0xff] (!%p160_p3) }
   0xe   : > { %s851_s12 = smov (!%p194_p4, %s649_s12), 1 }
   0xf   : > { %s530_s16 = sshll.u32 %s851_s12, 7  ;;  %s531_s24 = sshll.u32 %s851_s12, 8 }
  0x10   : > { %s703_s19 = scalar_lea.vmem %s842_s0, %s530_s16  ;;  %s735_s27 = scalar_lea.vmem %s845_s3, %s531_s24 }
  0x11   : > { %v533_v1 = vld [vmem:[%s703_s19] sm:$0xff]   ;;  %v596_v2 = vld [vmem:[%s703_s19 + $0x8] sm:$0xff]   ;;  %v597_v3 = vld [vmem:[%s703_s19 + $0x10] sm:$0xff]  }
  0x12   : > { %v534_v4 = vunpack.c.l.bf16 %v533_v1  ;;  %v535_v5 = vunpack.c.h.bf16 %v533_v1  ;;  %v538_v6 = vunpack.c.l.bf16 %v596_v2  ;;  %v539_v7 = vunpack.c.h.bf16 %v596_v2  ;;  %v598_v8 = vld [vmem:[%s703_s19 + $0x18] sm:$0xff]   ;;  %v599_v30 = vld [vmem:[%s703_s19 + $0x20] sm:$0xff]   ;;  %v600_v31 = vld [vmem:[%s703_s19 + $0x28] sm:$0xff]  }
  0x13   : > { %v542_v10 = vunpack.c.l.bf16 %v597_v3  ;;  %v543_v11 = vunpack.c.h.bf16 %v597_v3  ;;  %v546_v12 = vunpack.c.l.bf16 %v598_v8  ;;  %v547_v13 = vunpack.c.h.bf16 %v598_v8  ;;  %v601_v36 = vld [vmem:[%s703_s19 + $0x30] sm:$0xff]   ;;  %v602_v37 = vld [vmem:[%s703_s19 + $0x38] sm:$0xff]   ;;  %v603_v3 = vld [vmem:[%s703_s19 + $0x40] sm:$0xff]  }
  0x14   : > { %v286_v14 = vmul.f32 %v534_v4, %v708_v0  ;;  %v287_v15 = vmul.f32 %v535_v5, %v708_v0  ;;  %v288_v16 = vmul.f32 %v538_v6, %v708_v0  ;;  %v289_v17 = vmul.f32 %v539_v7, %v708_v0  ;;  %v604_v4 = vld [vmem:[%s703_s19 + $0x48] sm:$0xff]  }
  0x15   : > { %v290_v18 = vmul.f32 %v542_v10, %v708_v0  ;;  %v291_v19 = vmul.f32 %v543_v11, %v708_v0  ;;  %v292_v20 = vmul.f32 %v546_v12, %v708_v0  ;;  %v293_v21 = vmul.f32 %v547_v13, %v708_v0  ;;  %v605_v10 = vld [vmem:[%s703_s19 + $0x50] sm:$0xff]   ;;  %v606_v11 = vld [vmem:[%s703_s19 + $0x58] sm:$0xff]  }
  0x16   : > { %v325_v22 = vadd.f32 %v717_v9, %v286_v14  ;;  %v326_v23 = vadd.f32 %v717_v9, %v287_v15  ;;  %v327_v24 = vadd.f32 %v717_v9, %v288_v16  ;;  %v328_v25 = vadd.f32 %v717_v9, %v289_v17 }
  0x17   : > { %v329_v26 = vadd.f32 %v717_v9, %v290_v18  ;;  %v330_v27 = vadd.f32 %v717_v9, %v291_v19  ;;  %v331_v28 = vadd.f32 %v717_v9, %v292_v20  ;;  %v332_v29 = vadd.f32 %v717_v9, %v293_v21 }
  0x18   : > { %v357_v32 = vmax.f32 %v325_v22, 0.0  ;;  %v358_v33 = vmax.f32 %v326_v23, 0.0  ;;  %v359_v34 = vmax.f32 %v327_v24, 0.0  ;;  %v360_v35 = vmax.f32 %v328_v25, 0.0 }
  0x19   : > { %v361_v38 = vmax.f32 %v329_v26, 0.0  ;;  %v362_v39 = vmax.f32 %v330_v27, 0.0  ;;  %v363_v40 = vmax.f32 %v331_v28, 0.0  ;;  %v364_v41 = vmax.f32 %v332_v29, 0.0 }
  0x1a   : > { %389 = vst [vmem:[%s735_s27] sm:$0xff] %v357_v32  ;;  %390 = vst [vmem:[%s735_s27 + $0x8] sm:$0xff] %v358_v33  ;;  %v550_v42 = vunpack.c.l.bf16 %v599_v30  ;;  %v551_v43 = vunpack.c.h.bf16 %v599_v30  ;;  %v554_v44 = vunpack.c.l.bf16 %v600_v31  ;;  %v555_v45 = vunpack.c.h.bf16 %v600_v31 }
  0x1b   : > { %391 = vst [vmem:[%s735_s27 + $0x10] sm:$0xff] %v359_v34  ;;  %392 = vst [vmem:[%s735_s27 + $0x18] sm:$0xff] %v360_v35  ;;  %v558_v46 = vunpack.c.l.bf16 %v601_v36  ;;  %v559_v47 = vunpack.c.h.bf16 %v601_v36  ;;  %v562_v48 = vunpack.c.l.bf16 %v602_v37  ;;  %v563_v49 = vunpack.c.h.bf16 %v602_v37 }
  0x1c   : > { %393 = vst [vmem:[%s735_s27 + $0x20] sm:$0xff] %v361_v38  ;;  %394 = vst [vmem:[%s735_s27 + $0x28] sm:$0xff] %v362_v39  ;;  %v294_v50 = vmul.f32 %v550_v42, %v708_v0  ;;  %v295_v51 = vmul.f32 %v551_v43, %v708_v0  ;;  %v296_v52 = vmul.f32 %v554_v44, %v708_v0  ;;  %v566_v16 = vunpack.c.l.bf16 %v603_v3 }
  0x1d   : > { %395 = vst [vmem:[%s735_s27 + $0x30] sm:$0xff] %v363_v40  ;;  %396 = vst [vmem:[%s735_s27 + $0x38] sm:$0xff] %v364_v41  ;;  %v297_v53 = vmul.f32 %v555_v45, %v708_v0  ;;  %v298_v54 = vmul.f32 %v558_v46, %v708_v0  ;;  %v299_v55 = vmul.f32 %v559_v47, %v708_v0  ;;  %v567_v17 = vunpack.c.h.bf16 %v603_v3  ;;  %v607_v40 = vld [vmem:[%s703_s19 + $0x60] sm:$0xff]   ;;  %v608_v41 = vld [vmem:[%s703_s19 + $0x68] sm:$0xff]  }
  0x1e   : > { %v300_v56 = vmul.f32 %v562_v48, %v708_v0  ;;  %v301_v57 = vmul.f32 %v563_v49, %v708_v0  ;;  %v333_v58 = vadd.f32 %v717_v9, %v294_v50  ;;  %v334_v59 = vadd.f32 %v717_v9, %v295_v51  ;;  %v609_v46 = vld [vmem:[%s703_s19 + $0x70] sm:$0xff]   ;;  %v610_v47 = vld [vmem:[%s703_s19 + $0x78] sm:$0xff]  }
  0x1f   : > { %v335_v60 = vadd.f32 %v717_v9, %v296_v52  ;;  %v336_v61 = vadd.f32 %v717_v9, %v297_v53  ;;  %v337_v62 = vadd.f32 %v717_v9, %v298_v54  ;;  %v338_v63 = vadd.f32 %v717_v9, %v299_v55 }
  0x20   : > { %v339_v1 = vadd.f32 %v717_v9, %v300_v56  ;;  %v340_v2 = vadd.f32 %v717_v9, %v301_v57  ;;  %v365_v5 = vmax.f32 %v333_v58, 0.0  ;;  %v366_v6 = vmax.f32 %v334_v59, 0.0 }
  0x21   : > { %v367_v7 = vmax.f32 %v335_v60, 0.0  ;;  %v368_v8 = vmax.f32 %v336_v61, 0.0  ;;  %v369_v12 = vmax.f32 %v337_v62, 0.0  ;;  %v370_v13 = vmax.f32 %v338_v63, 0.0 }
  0x22   : > { %v371_v14 = vmax.f32 %v339_v1, 0.0  ;;  %v372_v15 = vmax.f32 %v340_v2, 0.0  ;;  %397 = vst [vmem:[%s735_s27 + $0x40] sm:$0xff] %v365_v5  ;;  %398 = vst [vmem:[%s735_s27 + $0x48] sm:$0xff] %v366_v6  ;;  %v570_v18 = vunpack.c.l.bf16 %v604_v4  ;;  %v571_v19 = vunpack.c.h.bf16 %v604_v4 }
  0x23   : > { %399 = vst [vmem:[%s735_s27 + $0x50] sm:$0xff] %v367_v7  ;;  %400 = vst [vmem:[%s735_s27 + $0x58] sm:$0xff] %v368_v8  ;;  %v574_v20 = vunpack.c.l.bf16 %v605_v10  ;;  %v575_v21 = vunpack.c.h.bf16 %v605_v10  ;;  %v578_v22 = vunpack.c.l.bf16 %v606_v11  ;;  %v579_v23 = vunpack.c.h.bf16 %v606_v11 }
  0x24   : > { %401 = vst [vmem:[%s735_s27 + $0x60] sm:$0xff] %v369_v12  ;;  %402 = vst [vmem:[%s735_s27 + $0x68] sm:$0xff] %v370_v13  ;;  %v302_v24 = vmul.f32 %v566_v16, %v708_v0  ;;  %v303_v25 = vmul.f32 %v567_v17, %v708_v0  ;;  %v304_v26 = vmul.f32 %v570_v18, %v708_v0  ;;  %v582_v52 = vunpack.c.l.bf16 %v607_v40 }
  0x25   : > { %403 = vst [vmem:[%s735_s27 + $0x70] sm:$0xff] %v371_v14  ;;  %404 = vst [vmem:[%s735_s27 + $0x78] sm:$0xff] %v372_v15  ;;  %v305_v27 = vmul.f32 %v571_v19, %v708_v0  ;;  %v306_v28 = vmul.f32 %v574_v20, %v708_v0  ;;  %v307_v29 = vmul.f32 %v575_v21, %v708_v0  ;;  %v583_v53 = vunpack.c.h.bf16 %v607_v40 }
  0x26   : > { %v308_v30 = vmul.f32 %v578_v22, %v708_v0  ;;  %v309_v31 = vmul.f32 %v579_v23, %v708_v0  ;;  %v341_v32 = vadd.f32 %v717_v9, %v302_v24  ;;  %v342_v33 = vadd.f32 %v717_v9, %v303_v25 }
  0x27   : > { %v343_v34 = vadd.f32 %v717_v9, %v304_v26  ;;  %v344_v35 = vadd.f32 %v717_v9, %v305_v27  ;;  %v345_v36 = vadd.f32 %v717_v9, %v306_v28  ;;  %v346_v37 = vadd.f32 %v717_v9, %v307_v29 }
  0x28   : > { %v347_v38 = vadd.f32 %v717_v9, %v308_v30  ;;  %v348_v39 = vadd.f32 %v717_v9, %v309_v31  ;;  %v373_v42 = vmax.f32 %v341_v32, 0.0  ;;  %v374_v43 = vmax.f32 %v342_v33, 0.0 }
  0x29   : > { %v375_v44 = vmax.f32 %v343_v34, 0.0  ;;  %v376_v45 = vmax.f32 %v344_v35, 0.0  ;;  %v377_v48 = vmax.f32 %v345_v36, 0.0  ;;  %v378_v49 = vmax.f32 %v346_v37, 0.0 }
  0x2a   : > { %v379_v50 = vmax.f32 %v347_v38, 0.0  ;;  %v380_v51 = vmax.f32 %v348_v39, 0.0  ;;  %405 = vst [vmem:[%s735_s27 + $0x80] sm:$0xff] %v373_v42  ;;  %406 = vst [vmem:[%s735_s27 + $0x88] sm:$0xff] %v374_v43  ;;  %v586_v54 = vunpack.c.l.bf16 %v608_v41  ;;  %v587_v55 = vunpack.c.h.bf16 %v608_v41 }
  0x2b   : > { %407 = vst [vmem:[%s735_s27 + $0x90] sm:$0xff] %v375_v44  ;;  %408 = vst [vmem:[%s735_s27 + $0x98] sm:$0xff] %v376_v45  ;;  %v590_v56 = vunpack.c.l.bf16 %v609_v46  ;;  %v591_v57 = vunpack.c.h.bf16 %v609_v46  ;;  %v594_v58 = vunpack.c.l.bf16 %v610_v47  ;;  %v595_v59 = vunpack.c.h.bf16 %v610_v47 }
  0x2c   : > { %409 = vst [vmem:[%s735_s27 + $0xa0] sm:$0xff] %v377_v48  ;;  %410 = vst [vmem:[%s735_s27 + $0xa8] sm:$0xff] %v378_v49  ;;  %v310_v60 = vmul.f32 %v582_v52, %v708_v0  ;;  %v311_v61 = vmul.f32 %v583_v53, %v708_v0  ;;  %v312_v62 = vmul.f32 %v586_v54, %v708_v0 }
  0x2d   : > { %411 = vst [vmem:[%s735_s27 + $0xb0] sm:$0xff] %v379_v50  ;;  %412 = vst [vmem:[%s735_s27 + $0xb8] sm:$0xff] %v380_v51  ;;  %v313_v63 = vmul.f32 %v587_v55, %v708_v0  ;;  %v314_v1 = vmul.f32 %v590_v56, %v708_v0  ;;  %v315_v2 = vmul.f32 %v591_v57, %v708_v0 }
  0x2e   : > { %v316_v3 = vmul.f32 %v594_v58, %v708_v0  ;;  %v317_v4 = vmul.f32 %v595_v59, %v708_v0  ;;  %v349_v5 = vadd.f32 %v717_v9, %v310_v60  ;;  %v350_v6 = vadd.f32 %v717_v9, %v311_v61 }
  0x2f   : > { %v351_v7 = vadd.f32 %v717_v9, %v312_v62  ;;  %v352_v8 = vadd.f32 %v717_v9, %v313_v63  ;;  %v353_v10 = vadd.f32 %v717_v9, %v314_v1  ;;  %v354_v11 = vadd.f32 %v717_v9, %v315_v2 }
  0x30   : > { %v355_v0 = vadd.f32 %v717_v9, %v316_v3  ;;  %v356_v12 = vadd.f32 %v717_v9, %v317_v4  ;;  %v381_v13 = vmax.f32 %v349_v5, 0.0  ;;  %v382_v14 = vmax.f32 %v350_v6, 0.0 }
  0x31   : > { %v383_v15 = vmax.f32 %v351_v7, 0.0  ;;  %v384_v16 = vmax.f32 %v352_v8, 0.0  ;;  %v385_v17 = vmax.f32 %v353_v10, 0.0  ;;  %v386_v18 = vmax.f32 %v354_v11, 0.0 }
  0x32   : > { %v387_v19 = vmax.f32 %v355_v0, 0.0  ;;  %v388_v20 = vmax.f32 %v356_v12, 0.0  ;;  %413 = vst [vmem:[%s735_s27 + $0xc0] sm:$0xff] %v381_v13  ;;  %414 = vst [vmem:[%s735_s27 + $0xc8] sm:$0xff] %v382_v14 }
  0x33   : > { %415 = vst [vmem:[%s735_s27 + $0xd0] sm:$0xff] %v383_v15  ;;  %416 = vst [vmem:[%s735_s27 + $0xd8] sm:$0xff] %v384_v16 }
  0x34   : > { %417 = vst [vmem:[%s735_s27 + $0xe0] sm:$0xff] %v385_v17  ;;  %418 = vst [vmem:[%s735_s27 + $0xe8] sm:$0xff] %v386_v18 }
  0x35   : > { %419 = vst [vmem:[%s735_s27 + $0xf0] sm:$0xff] %v387_v19  ;;  %420 = vst [vmem:[%s735_s27 + $0xf8] sm:$0xff] %v388_v20 }
  0x36 PF: > { %s13_s14 = sadd.s32 1, %s657_s14   ;;  %s846_s12 = smov %s653_s13 }
  0x37   : > { %p10_p5 = scmp.ge.s32.totalorder %s13_s14, 4   ;;  %s847_s13 = smov %s849_s15 }
  0x39   :  { %12 = sbr.rel (!%p10_p5) target bundleno = 2 (0x2), region = 62 }

// kernel: vgg_block.4
= control target key start
LH: loop header
LB: loop body
LE: loop exit
PB: predicated region body
PF: predicated region fallthrough
CT: control target
= control target key end

     0   :  { %s3485_s24 = smov 0   ;;  %s3487_s25 = smov 0   ;;  %s4381_s0 = inlined_call_operand.vmem [shape: bf16[2,16,16,128], index: 0, kind: input, shape index: {}, may-alias: {0,1,2}]   ;;  %s4382_s1 = inlined_call_operand.vmem [shape: bf16[2,16,16,128], index: 1, kind: input, shape index: {}, may-alias: {0,1,2}]   ;;  %s4383_s2 = inlined_call_operand.vmem [shape: bf16[2,16,16,128], index: 2, kind: input, shape index: {}, may-alias: {0,1,2}]   ;;  %s4384_s3 = inlined_call_operand.vmem [shape: bf16[3,384,128], index: 3, kind: input, shape index: {}]   ;;  %s4385_s4 = inlined_call_operand.vmem [shape: f32[1,128], index: 4, kind: input, shape index: {}]   ;;  %s4386_s5 = inlined_call_operand.vmem [shape: f32[1,128], index: 5, kind: input, shape index: {}]   ;;  %s4387_s6 = inlined_call_operand.vmem [shape: bf16[2,16,16,128], index: 6, kind: output, shape index: {0}]   ;;  %s4388_s7 = inlined_call_operand.vmem [shape: f32[2,2,2,128], index: 7, kind: output, shape index: {1}]  }
   0x1   :  { %s3489_s26 = smov 0   ;;  %s3491_s27 = smov 0  }
   0x2   :  { %s3493_s28 = smov 0  }
   0x3 LB: > { %s27_s29 = sadd.s32 1, %s3434_s26  ;;  %s30_s30 = sadd.s32 1, %s3438_s27  ;;  %s3442_s28 = sphi %s3493_s28, %s18_s28   ;;  %s3438_s27 = sphi %s3491_s27, %s4397_s27   ;;  %s3434_s26 = sphi %s3489_s26, %s4396_s26   ;;  %s3430_s25 = sphi %s3487_s25, %s4395_s25   ;;  %s3426_s24 = sphi %s3485_s24, %s4394_s24  }
   0x4   : > { %p28_p0 = scmp.ge.s32.totalorder %s27_s29, 2  ;;  %p2381_p1 = scmp.ge.s32.totalorder %s3442_s28, 1 }
   0x5   : > { %p328_p2 = scmp.lt.s32.totalorder %s3442_s28, 5 }
   0x6   : > { %s4399_s29 = smov (%p28_p0, %s27_s29), 0  ;;  %s4401_s30 = smov (!%p28_p0, %s30_s30), %s3438_s27 }
   0x7   : > { %p329_p3 = pnand %p2381_p1, %p328_p2  ;;  %p32_p4 = scmp.ge.s32.totalorder %s4401_s30, 2 }
   0x8   : > { %v3332_v0 = vld [vmem:[%s4384_s3 + $0x100] sm:$0xff] (!%p329_p3)   ;;  %s3526_s12 = sshll.u32 (!%p329_p3), %s3426_s24, 3  ;;  %v3335_v3 = vld [vmem:[%s4384_s3 + $0x108] sm:$0xff] (!%p329_p3)   ;;  %p405_p5 = scmp.lt.s32.totalorder (!%p329_p3), %s3430_s25, 1  ;;  %v3338_v6 = vld [vmem:[%s4384_s3 + $0x110] sm:$0xff] (!%p329_p3)   ;;  %v595_v16 = vlaneseq (!%p329_p3)  ;;  %vm3444_vm4 = vmmov (!%p329_p3), 1  }
   0x9   : > { %s4403_s30 = smov (%p32_p4, %s4401_s30), 0  ;;  %332 = sbr.rel (%p329_p3) target bundleno = 434 (0x1b2), region = 44 }
   0xa   : > { %v3333_v1 = vld [vmem:[%s4384_s3 + $0x140] sm:$0xff] (!%p329_p3)   ;;  %2859 = vmatprep.subr.bf16.mxu0 (!%p329_p3), %v3332_v0  ;;  %v3336_v4 = vld [vmem:[%s4384_s3 + $0x148] sm:$0xff] (!%p329_p3)   ;;  %p407_p6 = scmp.lt.s32.totalorder (!%p329_p3), %s3526_s12, 15  ;;  %v3339_v7 = vld [vmem:[%s4384_s3 + $0x150] sm:$0xff] (!%p329_p3)   ;;  %s3590_s21 = sadd.s32 (!%p329_p3), 4294967295, %s3526_s12  ;;  %v3595_v20 = vshrl.u32 (!%p329_p3), %v595_v16, 7 }
   0xb   : > { %v3334_v2 = vld [vmem:[%s4384_s3 + $0xc0] sm:$0xff] (!%p329_p3)   ;;  %3099 = vmatprep.subr.bf16.mxu1 (!%p329_p3), %v3333_v1  ;;  %v3337_v5 = vld [vmem:[%s4384_s3 + $0xc8] sm:$0xff] (!%p329_p3)   ;;  %v3340_v8 = vld [vmem:[%s4384_s3 + $0xd0] sm:$0xff] (!%p329_p3)   ;;  %p417_p7 = scmp.gt.s32.totalorder (!%p329_p3), %s3590_s21, 0  ;;  %p2388_p9 = scmp.lt.s32.totalorder (!%p329_p3), %s3590_s21, 15  ;;  %vm2180_vm7 = vcmask (!%p329_p3), 1040384  }
   0xc   : > { %2860 = vmatpush3.bf16.msra.mxu0 (!%p329_p3), %v3334_v2  ;;  %3100 = vmatpush3.bf16.msra.mxu1 (!%p329_p3), %v3333_v1  ;;  %v3341_v9 = vld [vmem:[%s4384_s3 + $0x118] sm:$0xff] (!%p329_p3)   ;;  %v3344_v12 = vld [vmem:[%s4384_s3 + $0x120] sm:$0xff] (!%p329_p3)   ;;  %v3347_v15 = vld [vmem:[%s4384_s3 + $0x128] sm:$0xff] (!%p329_p3)   ;;  %v597_v26 = vadd.s32 (!%p329_p3), 8, %v3595_v20  ;;  %vm680_vm0 = vcmp.ne.s32.totalorder (!%p329_p3), %v3595_v20, 0  ;;  %vm659_vm2 = vcmp.lt.s32.totalorder (!%p329_p3), %v3595_v20, 7 }
   0xd   : > { %2861 = vmatprep.subr.bf16.mxu0 (!%p329_p3), %v3335_v3  ;;  %3101 = vmatprep.subr.bf16.mxu1 (!%p329_p3), %v3336_v4  ;;  %v3342_v10 = vld [vmem:[%s4384_s3 + $0x158] sm:$0xff] (!%p329_p3)   ;;  %v3345_v13 = vld [vmem:[%s4384_s3 + $0x160] sm:$0xff] (!%p329_p3)   ;;  %v3348_v17 = vld [vmem:[%s4384_s3 + $0x168] sm:$0xff] (!%p329_p3)   ;;  %vm618_vm3 = vcmp.lt.s32.totalorder (!%p329_p3), %v3595_v20, 1  ;;  %p462_p10 = scmp.lt.s32.totalorder (!%p329_p3), %s3426_s24, 1  ;;  %p493_p11 = scmp.gt.s32.totalorder (!%p329_p3), %s3426_s24, 0 }
   0xe   : > { %v3343_v11 = vld [vmem:[%s4384_s3 + $0xd8] sm:$0xff] (!%p329_p3)   ;;  %v3346_v14 = vld [vmem:[%s4384_s3 + $0xe0] sm:$0xff] (!%p329_p3)   ;;  %v3349_v18 = vld [vmem:[%s4384_s3 + $0xe8] sm:$0xff] (!%p329_p3)   ;;  %vm707_vm1 = vcmp.ne.s32.totalorder (!%p329_p3), %v597_v26, 15 }
   0xf   : > { %v3350_v19 = vld [vmem:[%s4384_s3 + $0x130] sm:$0xff] (!%p329_p3)   ;;  %v3353_v23 = vld [vmem:[%s4384_s3 + $0x138] sm:$0xff] (!%p329_p3)   ;;  %v3622_v24 = vld [vmem:[%s4385_s4] ss:$0 sm:$0xff] (!%p329_p3) }
  0x10   : > { %s4405_s25 = smov (!%p405_p5, %s3430_s25), 1  ;;  %2862 = vmatpush3.bf16.msra.mxu0 %v3337_v5  ;;  %3102 = vmatpush3.bf16.msra.mxu1 %v3336_v4  ;;  %v3351_v21 = vld [vmem:[%s4384_s3 + $0x170] sm:$0xff]   ;;  %v3354_v27 = vld [vmem:[%s4384_s3 + $0x178] sm:$0xff]   ;;  %v3634_v31 = vld [vmem:[%s4386_s5] ss:$0 sm:$0xff] }
  0x11   : > { %s408_s11 = scalar_select %p407_p6, %s3526_s12, 15  ;;  %2863 = vmatprep.subr.bf16.mxu0 %v3338_v6  ;;  %3103 = vmatprep.subr.bf16.mxu1 %v3339_v7  ;;  %v3352_v22 = vld [vmem:[%s4384_s3 + $0xf0] sm:$0xff]   ;;  %v3355_v34 = vld [vmem:[%s4384_s3 + $0xf8] sm:$0xff]   ;;  %v3356_v39 = vld [vmem:[%s4384_s3 + $0x40] sm:$0xff]  }
  0x12   : > { %s3565_s19 = sshll.u32 %s4405_s25, 5  ;;  %v3357_v42 = vld [vmem:[%s4384_s3 + $0x1c0] sm:$0xff]   ;;  %vm3674_vm5 = vmpackc.low %vm3444_vm4, %vm680_vm0  ;;  %s2407_s16 = sshll.u32 %s4405_s25, 1 }
  0x13   : > { %s2383_s22 = sshll.u32 %s408_s11, 1  ;;  %s2604_s11 = sadd.s32 8, %s3526_s12  ;;  %v3359_v55 = vld [vmem:[%s4384_s3 + $0x180] sm:$0xff]   ;;  %vm3684_vm6 = vmpackc.low %vm707_vm1, %vm3444_vm4 }
  0x14   : > { %2864 = vmatpush3.bf16.msra.mxu0 %v3340_v8  ;;  %3104 = vmatpush3.bf16.msra.mxu1 %v3339_v7  ;;  %s3577_s13 = sadd.s32 %s3565_s19, %s2383_s22  ;;  %p3612_p8 = scmp.lt.s32.totalorder %s2604_s11, 15  ;;  %v3358_v0 = vld [vmem:[%s4384_s3] sm:$0xff]   ;;  %v3360_v7 = vld [vmem:[%s4384_s3 + $0x48] sm:$0xff]  }
  0x15   : > { %2865 = vmatprep.subr.bf16.mxu0 %v3341_v9  ;;  %3105 = vmatprep.subr.bf16.mxu1 %v3342_v10  ;;  %s2385_s17 = sshll.u32 %s3577_s13, 2 }
  0x16   : > { %s3605_s15 = scalar_lea.vmem %s4381_s0, %s2385_s17  ;;  %s4407_s11 = smov (!%p3612_p8, %s2604_s11), 15 }
  0x17   : > { %v2630_v25 = vld [vmem:[%s3605_s15] sm:$0xff]   ;;  %v2701_v30 = vld [vmem:[%s3605_s15 + $0x8] sm:$0xff]   ;;  %s418_s18 = scalar_select %p417_p7, %s3590_s21, 0  ;;  %v2702_v49 = vld [vmem:[%s3605_s15 + $0x10] sm:$0xff]  }
  0x18   : > { %2866 = vmatpush3.bf16.msra.mxu0 %v3343_v11  ;;  %3106 = vmatpush3.bf16.msra.mxu1 %v3342_v10  ;;  %v2631_v28 = vunpack.c.l.bf16 %v2630_v25  ;;  %v2632_v29 = vunpack.c.h.bf16 %v2630_v25  ;;  %v2635_v32 = vunpack.c.l.bf16 %v2701_v30  ;;  %v2636_v33 = vunpack.c.h.bf16 %v2701_v30  ;;  %s4409_s11 = smov (!%p3612_p8, %s4407_s11), 15  ;;  %v2703_v61 = vld [vmem:[%s3605_s15 + $0x18] sm:$0xff]  }
  0x19   : > { %2867 = vmatprep.subr.bf16.mxu0 %v3344_v12  ;;  %3107 = vmatprep.subr.bf16.mxu1 %v3345_v13  ;;  %s4411_s18 = smov (!%p2388_p9, %s418_s18), 15  ;;  %s3668_s20 = sshll.u32 %s4409_s11, 1  ;;  %v2639_v1 = vunpack.c.l.bf16 %v2702_v49  ;;  %v2640_v2 = vunpack.c.h.bf16 %v2702_v49  ;;  %v3363_v12 = vld [vmem:[%s4384_s3 + $0x1c8] sm:$0xff]   ;;  %v2643_v16 = vunpack.c.l.bf16 %v2703_v61 }
  0x1a   : > { %v547_v35 = vmul.f32 %v2631_v28, %v3622_v24  ;;  %v548_v36 = vmul.f32 %v2632_v29, %v3622_v24  ;;  %v549_v37 = vmul.f32 %v2635_v32, %v3622_v24  ;;  %v550_v38 = vmul.f32 %v2636_v33, %v3622_v24  ;;  %s442_s11 = sadd.s32 %s3668_s20, %s3565_s19  ;;  %s2393_s12 = sshll.u32 %s4411_s18, 1  ;;  %v2705_v29 = vld [vmem:[%s3605_s15 + $0x28] sm:$0xff]  }
  0x1b   : > { %v551_v10 = vmul.f32 %v2639_v1, %v3622_v24  ;;  %v552_v11 = vmul.f32 %v2640_v2, %v3622_v24  ;;  %s463_s25 = scalar_select %p462_p10, %s3426_s24, 1 }
  0x1c   : > { %2868 = vmatpush3.bf16.msra.mxu0 %v3346_v14  ;;  %3108 = vmatpush3.bf16.msra.mxu1 %v3345_v13  ;;  %v563_v40 = vadd.f32 %v3634_v31, %v547_v35  ;;  %v564_v41 = vadd.f32 %v3634_v31, %v548_v36  ;;  %v565_v43 = vadd.f32 %v3634_v31, %v549_v37  ;;  %s3755_s8 = sadd.s32 %s2393_s12, %s3565_s19  ;;  %v3362_v35 = vld [vmem:[%s4384_s3 + $0x50] sm:$0xff]   ;;  %s4349_s19 = scalar_lea.vmem %s4387_s6, %s2385_s17 }
  0x1d   : > { %2869 = vmatprep.subr.bf16.mxu0 %v3347_v15  ;;  %3109 = vmatprep.subr.bf16.mxu1 %v3348_v17  ;;  %v566_v44 = vadd.f32 %v3634_v31, %v550_v38  ;;  %v3369_v36 = vld [vmem:[%s4384_s3 + $0x1d0] sm:$0xff]   ;;  %s3767_s18 = sadd.s32 %s2407_s16, %s463_s25  ;;  %s2395_s16 = sshll.u32 %s3755_s8, 2 }
  0x1e   : > { %v579_v45 = vmax.f32 %v563_v40, 0.0  ;;  %v580_v46 = vmax.f32 %v564_v41, 0.0  ;;  %v581_v47 = vmax.f32 %v565_v43, 0.0  ;;  %v2651_v40 = vunpack.c.l.bf16 %v2705_v29  ;;  %s3812_s21 = scalar_select %p493_p11, 1, 0 }
  0x1f   : > { %v582_v48 = vmax.f32 %v566_v44, 0.0  ;;  %s427_s12 = scalar_lea.vmem %s4382_s1, %s2395_s16  ;;  %s2402_s16 = sshll.u32 %s442_s11, 2 }
  0x20   : > { %2870 = vmatpush3.bf16.msra.mxu0 %v3349_v18  ;;  %3110 = vmatpush3.bf16.msra.mxu1 %v3348_v17  ;;  %v599_v50 = vrot.slane %v579_v45, 7  ;;  %v609_v51 = vrot.slane %v580_v46, 7  ;;  %v3670_v52 = vpack.c.bf16 %v580_v46, %v579_v45  ;;  %v640_v53 = vrot.slane %v579_v45, 1  ;;  %v3365_v17 = vld [vmem:[%s4384_s3 + $0x188] sm:$0xff]   ;;  %v3371_v45 = vld [vmem:[%s4384_s3 + $0x190] sm:$0xff]   ;;  %s495_s14 = scvt.s32.f32 %s3812_s21  ;;  %s444_s22 = scalar_lea.vmem %s4383_s2, %s2402_s16 }
  0x21   : > { %2871 = vmatprep.subr.bf16.mxu0 %v3350_v19  ;;  %3111 = vmatprep.subr.bf16.mxu1 %v3351_v21  ;;  %v650_v56 = vrot.slane %v580_v46, 1  ;;  %v641_v58 = vrot.slane %v581_v47, 1  ;;  %v651_v59 = vrot.slane %v582_v48, 1  ;;  %v3688_v60 = vpack.c.bf16 %v582_v48, %v581_v47  ;;  %v3361_v18 = vld [vmem:[%s4384_s3 + $0x8] sm:$0xff]   ;;  %s510_s11 = scalar_select %p462_p10, 1, 0 }
  0x22   : > { %1114 = vmatprep.mubr.bf16.mxu0 %v3670_v52  ;;  %v620_v62 = vsel %vm618_vm3, %v599_v50, %v609_v51  ;;  %v630_v63 = vsel %vm618_vm3, %v609_v51, %v599_v50  ;;  %v600_v14 = vrot.slane %v581_v47, 7  ;;  %v610_v15 = vrot.slane %v582_v48, 7  ;;  %s2408_s13 = sshll.u32 %s3767_s18, 1 }
  0x23   : > { %v661_v3 = vsel %vm659_vm2, %v640_v53, %v650_v56  ;;  %v671_v4 = vsel %vm659_vm2, %v650_v56, %v640_v53  ;;  %v3703_v5 = vpack.c.bf16 %v620_v62, %v630_v63  ;;  %v662_v6 = vsel %vm659_vm2, %v641_v58, %v651_v59  ;;  %v3366_v56 = vld [vmem:[%s4384_s3 + $0x58] sm:$0xff]   ;;  %s511_s21 = scvt.s32.f32 %s510_s11  ;;  %s467_s11 = scalar_lea.vmem %s4388_s7, %s2408_s13 }
  0x24   : > { %2872 = vmatpush3.bf16.msra.mxu0 %v3352_v22  ;;  %3112 = vmatpush3.bf16.msra.mxu1 %v3351_v21  ;;  %v3711_v8 = vpack.c.bf16 %v671_v4, %v661_v3  ;;  %v672_v9 = vsel %vm659_vm2, %v651_v59, %v641_v58  ;;  %v567_v19 = vadd.f32 %v3634_v31, %v551_v10  ;;  %v2644_v22 = vunpack.c.h.bf16 %v2703_v61  ;;  %v2706_v4 = vld [vmem:[%s3605_s15 + $0x30] sm:$0xff]  }
  0x25   : > { %2873 = vmatprep.subr.bf16.mxu0 %v3353_v23  ;;  %3113 = vmatprep.subr.bf16.mxu1 %v3354_v27  ;;  %v3724_v13 = vpack.c.bf16 %v672_v9, %v662_v6  ;;  %v568_v21 = vadd.f32 %v3634_v31, %v552_v11  ;;  %v2704_v23 = vld [vmem:[%s3605_s15 + $0x20] sm:$0xff]   ;;  %v621_v25 = vsel %vm618_vm3, %v600_v14, %v610_v15  ;;  %v2652_v3 = vunpack.c.h.bf16 %v2705_v29  ;;  %v3367_v6 = vld [vmem:[%s4384_s3 + $0x18] sm:$0xff]  }
  0x26   : > { %3115 = vmatprep.mubr.msk.bf16.mxu1 %vm3684_vm6, %v3711_v8  ;;  %v631_v26 = vsel %vm618_vm3, %v610_v15, %v600_v14  ;;  %v2647_v28 = vunpack.c.l.bf16 %v2704_v23  ;;  %v583_v30 = vmax.f32 %v567_v19, 0.0  ;;  %v2648_v38 = vunpack.c.h.bf16 %v2704_v23 }
  0x27   : > { %v584_v32 = vmax.f32 %v568_v21, 0.0  ;;  %v3758_v33 = vpack.c.bf16 %v621_v25, %v631_v26  ;;  %v557_v11 = vmul.f32 %v2651_v40, %v3622_v24  ;;  %v2655_v23 = vunpack.c.l.bf16 %v2706_v4  ;;  %v3370_v26 = vld [vmem:[%s4384_s3 + $0x20] sm:$0xff]  }
  0x28   : > { %2874 = vmatpush3.bf16.msra.mxu0 %v3355_v34  ;;  %3114 = vmatpush3.bf16.msra.mxu1 %v3354_v27  ;;  %v553_v27 = vmul.f32 %v2643_v16, %v3622_v24  ;;  %v554_v34 = vmul.f32 %v2644_v22, %v3622_v24  ;;  %v642_v41 = vrot.slane %v583_v30, 1  ;;  %v556_v47 = vmul.f32 %v2648_v38, %v3622_v24  ;;  %v3368_v22 = vld [vmem:[%s4384_s3 + $0x60] sm:$0xff]  }
  0x29   : > { %2939 = vmatprep.subr.bf16.mxu1 %v3356_v39  ;;  %3019 = vmatprep.subr.bf16.mxu0 %v3357_v42  ;;  %v555_v39 = vmul.f32 %v2647_v28, %v3622_v24  ;;  %v652_v42 = vrot.slane %v584_v32, 1  ;;  %v3772_v44 = vpack.c.bf16 %v584_v32, %v583_v30  ;;  %v601_v49 = vrot.slane %v583_v30, 7  ;;  %v2707_v30 = vld [vmem:[%s3605_s15 + $0x38] sm:$0xff]  }
  0x2a   : > { %v569_v37 = vadd.f32 %v3634_v31, %v553_v27  ;;  %v570_v43 = vadd.f32 %v3634_v31, %v554_v34  ;;  %v611_v58 = vrot.slane %v584_v32, 7  ;;  %v572_v62 = vadd.f32 %v3634_v31, %v556_v47  ;;  %v3377_v32 = vld [vmem:[%s4384_s3 + $0x198] sm:$0xff]  }
  0x2b   : > { %2717 = vmatmul.mubr.msk.bf16.vlgmr.msra.gmra.mrb[0].mxu0 %vm3674_vm5, %v3703_v5  ;;  %3116 = vmatmul.mubr.msk.bf16.vlgmr.msra.gmra.mrb[0].mxu1 %vm3684_vm6, %v3724_v13  ;;  %v571_v48 = vadd.f32 %v3634_v31, %v555_v39  ;;  %v663_v50 = vsel %vm659_vm2, %v642_v41, %v652_v42  ;;  %v673_v51 = vsel %vm659_vm2, %v652_v42, %v642_v41  ;;  %v2656_v27 = vunpack.c.h.bf16 %v2706_v4 }
  0x2c   : > { %3020 = vmatpush3.bf16.msra.mxu0 %v3359_v55  ;;  %1122 = vmatprep.mubr.bf16.mxu0 %v3688_v60  ;;  %v3778_v46 = vmax.f32 %v569_v37, 0.0  ;;  %v3786_v53 = vmax.f32 %v570_v43, 0.0  ;;  %v3364_v55 = vld [vmem:[%s4384_s3 + $0x10] sm:$0xff]   ;;  %v3794_v59 = vpack.c.bf16 %v673_v51, %v663_v50  ;;  %v622_v1 = vsel %vm618_vm3, %v601_v49, %v611_v58  ;;  %v3372_v37 = vld [vmem:[%s4384_s3 + $0x68] sm:$0xff]   ;;  %v2622_v43 = vld [vmem:[%s427_s12] sm:$0xff]  }
  0x2d   : > { %2940 = vmatpush3.bf16.msra.mxu1 %v3358_v0  ;;  %3021 = vmatprep.subr.bf16.mxu0 %v3363_v12  ;;  %v3801_v63 = vmax.f32 %v571_v48, 0.0  ;;  %v632_v2 = vsel %vm618_vm3, %v611_v58, %v601_v49  ;;  %v3375_v12 = vld [vmem:[%s4384_s3 + $0x1d8] sm:$0xff]   ;;  %v558_v16 = vmul.f32 %v2652_v3, %v3622_v24  ;;  %v573_v21 = vadd.f32 %v3634_v31, %v557_v11  ;;  %v3380_v49 = vld [vmem:[%s4384_s3 + $0x1e0] sm:$0xff]   ;;  %v3373_v51 = vld [vmem:[%s4384_s3 + $0x28] sm:$0xff]  }
  0x2e   : > { %2941 = vmatprep.subr.bf16.mxu1 %v3360_v7  ;;  %v643_v61 = vrot.slane %v3778_v46, 1  ;;  %v653_v0 = vrot.slane %v3786_v53, 1  ;;  %3119 = vmatprep.mubr.msk.bf16.mxu1 %vm3684_vm6, %v3794_v59  ;;  %v3820_v7 = vmax.f32 %v572_v62, 0.0  ;;  %v3823_v10 = vpack.c.bf16 %v622_v1, %v632_v2  ;;  %v3381_v58 = vld [vmem:[%s4384_s3 + $0x1a0] sm:$0xff]   ;;  %v3382_v2 = vld [vmem:[%s4384_s3 + $0x1e8] sm:$0xff]  }
  0x2f   : > { %v644_v9 = vrot.slane %v3801_v63, 1  ;;  %v574_v25 = vadd.f32 %v3634_v31, %v558_v16  ;;  %v602_v28 = vrot.slane %v3778_v46, 7  ;;  %v612_v29 = vrot.slane %v3786_v53, 7  ;;  %v3383_v11 = vld [vmem:[%s4384_s3 + $0x1a8] sm:$0xff]   ;;  %v3374_v16 = vld [vmem:[%s4384_s3 + $0x70] sm:$0xff]  }
  0x30   : > { %3022 = vmatpush3.bf16.msra.mxu0 %v3365_v17  ;;  %v664_v14 = vsel %vm659_vm2, %v643_v61, %v653_v0  ;;  %v674_v15 = vsel %vm659_vm2, %v653_v0, %v643_v61  ;;  %v3836_v17 = vpack.c.bf16 %v3786_v53, %v3778_v46  ;;  %v654_v19 = vrot.slane %v3820_v7, 1 }
  0x31   : > { %3023 = vmatprep.subr.bf16.mxu0 %v3369_v36  ;;  %2942 = vmatpush3.bf16.msra.mxu1 %v3361_v18  ;;  %v3838_v18 = vpack.c.bf16 %v674_v15, %v664_v14  ;;  %v3867_v36 = vmax.f32 %v573_v21, 0.0  ;;  %v559_v38 = vmul.f32 %v2655_v23, %v3622_v24  ;;  %v3875_v40 = vmax.f32 %v574_v25, 0.0 }
  0x32   : > { %2943 = vmatprep.subr.bf16.mxu1 %v3362_v35  ;;  %v665_v34 = vsel %vm659_vm2, %v644_v9, %v654_v19  ;;  %v675_v35 = vsel %vm659_vm2, %v654_v19, %v644_v9  ;;  %v560_v41 = vmul.f32 %v2656_v27, %v3622_v24  ;;  %v623_v42 = vsel %vm618_vm3, %v602_v28, %v612_v29  ;;  %v3376_v27 = vld [vmem:[%s4384_s3 + $0x30] sm:$0xff]  }
  0x33   : > { %2720 = vmatmul.mubr.msk.bf16.gmra.mrb[4].mxu0 %vm3674_vm5, %v3758_v33  ;;  %3120 = vmatmul.mubr.msk.bf16.gmra.mrb[4].mxu1 %vm3684_vm6, %v3838_v18  ;;  %v3873_v39 = vpack.c.bf16 %v675_v35, %v665_v34  ;;  %v575_v46 = vadd.f32 %v3634_v31, %v559_v38  ;;  %v633_v47 = vsel %vm618_vm3, %v612_v29, %v602_v28  ;;  %v2659_v48 = vunpack.c.l.bf16 %v2707_v30 }
  0x34   : > { %1130 = vmatprep.mubr.bf16.mxu0 %v3772_v44  ;;  %3024 = vmatpush3.bf16.msra.mxu0 %v3371_v45  ;;  %v645_v45 = vrot.slane %v3867_v36, 1  ;;  %v655_v50 = vrot.slane %v3875_v40, 1  ;;  %v576_v53 = vadd.f32 %v3634_v31, %v560_v41  ;;  %v3909_v0 = vpack.c.bf16 %v3820_v7, %v3801_v63  ;;  %v3378_v41 = vld [vmem:[%s4384_s3 + $0x78] sm:$0xff]  }
  0x35   : > { %2944 = vmatpush3.bf16.msra.mxu1 %v3364_v55  ;;  %3025 = vmatprep.subr.bf16.mxu0 %v3375_v12  ;;  %v3899_v55 = vpack.c.bf16 %v623_v42, %v633_v47  ;;  %v3904_v61 = vmax.f32 %v575_v46, 0.0  ;;  %v561_v62 = vmul.f32 %v2659_v48, %v3622_v24  ;;  %v2623_v1 = vunpack.c.l.bf16 %v2622_v43 }
  0x36   : > { %2945 = vmatprep.subr.bf16.mxu1 %v3366_v56  ;;  %3123 = vmatprep.mubr.msk.bf16.mxu1 %vm3684_vm6, %v3873_v39  ;;  %v2660_v56 = vunpack.c.h.bf16 %v2707_v30  ;;  %v666_v3 = vsel %vm659_vm2, %v645_v45, %v655_v50  ;;  %v676_v4 = vsel %vm659_vm2, %v655_v50, %v645_v45  ;;  %v2624_v19 = vunpack.c.h.bf16 %v2622_v43  ;;  %v3385_v30 = vld [vmem:[%s4384_s3 + $0x1f0] sm:$0xff]   ;;  %v3379_v50 = vld [vmem:[%s4384_s3 + $0x38] sm:$0xff]  }
  0x37   : > { %v3924_v12 = vpack.c.bf16 %v676_v4, %v666_v3  ;;  %v646_v14 = vrot.slane %v3904_v61, 1  ;;  %v577_v15 = vadd.f32 %v3634_v31, %v561_v62  ;;  %v480_v23 = vmul.f32 %v2623_v1, %v3622_v24  ;;  %v3389_v62 = vld [vmem:[%s4384_s3 + $0x1b8] sm:$0xff]  }
  0x38   : > { %3026 = vmatpush3.bf16.msra.mxu0 %v3377_v32  ;;  %v562_v9 = vmul.f32 %v2660_v56, %v3622_v24  ;;  %v603_v25 = vrot.slane %v3801_v63, 7  ;;  %v481_v28 = vmul.f32 %v2624_v19, %v3622_v24  ;;  %v613_v29 = vrot.slane %v3820_v7, 7  ;;  %v3386_v7 = vld [vmem:[%s4384_s3 + $0x1b0] sm:$0xff]  }
  0x39   : > { %2946 = vmatpush3.bf16.msra.mxu1 %v3367_v6  ;;  %3027 = vmatprep.subr.bf16.mxu0 %v3380_v49  ;;  %v3918_v6 = vmax.f32 %v576_v53, 0.0  ;;  %v489_v35 = vadd.f32 %v3634_v31, %v480_v23  ;;  %v496_v43 = vstv %s495_s14  ;;  %v3388_v49 = vld [vmem:[%s4384_s3 + $0x1f8] sm:$0xff]   ;;  %v604_v4 = vrot.slane %v3867_v36, 7 }
  0x3a   : > { %2947 = vmatprep.subr.bf16.mxu1 %v3368_v22  ;;  %v578_v22 = vadd.f32 %v3634_v31, %v562_v9  ;;  %v490_v42 = vadd.f32 %v3634_v31, %v481_v28  ;;  %v624_v47 = vsel %vm618_vm3, %v603_v25, %v613_v29  ;;  %v634_v48 = vsel %vm618_vm3, %v613_v29, %v603_v25  ;;  %v3384_v9 = vld [vmem:[%s4384_s3 + $0x80] sm:$0xff]   ;;  %v3387_v28 = vld [vmem:[%s4384_s3 + $0x88] sm:$0xff]  }
  0x3b   : > { %2723 = vmatmul.mubr.msk.bf16.gmra.mrb[8].mxu0 %vm3674_vm5, %v3823_v10  ;;  %v656_v21 = vrot.slane %v3918_v6, 1  ;;  %3124 = vmatmul.mubr.msk.bf16.gmra.mrb[8].mxu1 %vm3684_vm6, %v3924_v12  ;;  %v491_v46 = vmax.f32 %v489_v35, 0.0  ;;  %v3997_v3 = vpack.c.bf16 %v624_v47, %v634_v48  ;;  %v4043_v29 = vpack.c.bf16 %v3918_v6, %v3904_v61 }
  0x3c   : > { %1138 = vmatprep.mubr.bf16.mxu0 %v3836_v17  ;;  %3028 = vmatpush3.bf16.msra.mxu0 %v3381_v58  ;;  %v3953_v34 = vmax.f32 %v578_v22, 0.0 }
  0x3d   : > { %2948 = vmatpush3.bf16.msra.mxu1 %v3370_v26  ;;  %3029 = vmatprep.subr.bf16.mxu0 %v3382_v2  ;;  %v3939_v26 = vmax.f32 %v577_v15, 0.0  ;;  %v667_v63 = vsel %vm659_vm2, %v646_v14, %v656_v21  ;;  %v677_v32 = vsel %vm659_vm2, %v656_v21, %v646_v14  ;;  %v3988_v58 = vmul.f32 %v496_v43, %v491_v46  ;;  %v4018_v21 = vld [vmem:[%s4384_s3 + $0x200] sm:$0xff]  }
  0x3e   : > { %2949 = vmatprep.subr.bf16.mxu1 %v3372_v37  ;;  %v3959_v37 = vpack.c.bf16 %v677_v32, %v667_v63  ;;  %v657_v45 = vrot.slane %v3953_v34, 1  ;;  %v4006_v14 = vpack.c.bf16 %v3875_v40, %v3867_v36  ;;  %v614_v15 = vrot.slane %v3875_v40, 7 }
  0x3f   : > { %v647_v38 = vrot.slane %v3939_v26, 1  ;;  %v615_v63 = vrot.slane %v3918_v6, 7  ;;  %v2626_v6 = vld [vmem:[%s444_s22] sm:$0xff]   ;;  %v606_v46 = vrot.slane %v3939_v26, 7  ;;  %v616_v47 = vrot.slane %v3953_v34, 7 }
  0x40   : > { %3030 = vmatpush3.bf16.msra.mxu0 %v3383_v11  ;;  %3127 = vmatprep.mubr.msk.bf16.mxu1 %vm3684_vm6, %v3959_v37  ;;  %v598_v11 = vrot.slane %v3988_v58, 7  ;;  %v625_v22 = vsel %vm618_vm3, %v604_v4, %v614_v15  ;;  %v635_v23 = vsel %vm618_vm3, %v614_v15, %v604_v4  ;;  %v2627_v35 = vunpack.c.l.bf16 %v2626_v6  ;;  %v3396_v15 = vld [vmem:[%s4384_s3 + $0xa8] sm:$0xff]  }
  0x41   : > { %2950 = vmatpush3.bf16.msra.mxu1 %v3373_v51  ;;  %3031 = vmatprep.subr.bf16.mxu0 %v3385_v30  ;;  %v492_v51 = vmax.f32 %v490_v42, 0.0  ;;  %v668_v53 = vsel %vm659_vm2, %v647_v38, %v657_v45  ;;  %v678_v56 = vsel %vm659_vm2, %v657_v45, %v647_v38  ;;  %v605_v30 = vrot.slane %v3904_v61, 7  ;;  %v3390_v61 = vld [vmem:[%s4384_s3 + $0x90] sm:$0xff]   ;;  %v3392_v45 = vld [vmem:[%s4384_s3 + $0x98] sm:$0xff]  }
  0x42   : > { %2951 = vmatprep.subr.bf16.mxu1 %v3374_v16  ;;  %v3993_v1 = vpack.c.bf16 %v678_v56, %v668_v53  ;;  %v503_v38 = vmul.f32 %v2627_v35, %v3622_v24 }
  0x43   : > { %2726 = vmatmul.mubr.msk.bf16.gmra.mrb[12].mxu0 %vm3674_vm5, %v3899_v55  ;;  %v3995_v2 = vmul.f32 %v496_v43, %v492_v51  ;;  %v626_v32 = vsel %vm618_vm3, %v605_v30, %v615_v63  ;;  %v4072_v43 = vpack.c.bf16 %v3953_v34, %v3939_v26  ;;  %v3394_v26 = vld [vmem:[%s4384_s3 + $0xa0] sm:$0xff]  }
  0x44   : > { %1146 = vmatprep.mubr.bf16.mxu0 %v3909_v0  ;;  %3032 = vmatpush3.bf16.msra.mxu0 %v3386_v7  ;;  %v2628_v7 = vunpack.c.h.bf16 %v2626_v6  ;;  %v505_v48 = vadd.f32 %v3634_v31, %v503_v38 }
  0x45   : > { %2952 = vmatpush3.bf16.msra.mxu1 %v3376_v27  ;;  %3033 = vmatprep.subr.bf16.mxu0 %v3388_v49  ;;  %v608_v16 = vrot.slane %v3995_v2, 7  ;;  %v752_v19 = vpack.c.bf16 %v3995_v2, %v3988_v58  ;;  %v4036_v27 = vpack.c.bf16 %v625_v22, %v635_v23  ;;  %v649_v6 = vrot.slane %v3995_v2, 1 }
  0x46   : > { %2953 = vmatprep.subr.bf16.mxu1 %v3378_v41  ;;  %3128 = vmatmul.mubr.msk.bf16.gmra.mrb[12].mxu1 %vm3684_vm6, %v3993_v1  ;;  %v504_v41 = vmul.f32 %v2628_v7, %v3622_v24  ;;  %v512_v24 = vstv %s511_s21 }
  0x47   : > { %v619_v36 = vsel %vm618_vm3, %v598_v11, %v608_v16  ;;  %v629_v40 = vsel %vm618_vm3, %v608_v16, %v598_v11  ;;  %1452 = vmatprep.mubr.bf16.mxu1 %v752_v19 }
  0x48   : > { %3034 = vmatpush3.bf16.msra.mxu0 %v3389_v62  ;;  %v2764_v25 = vpack.c.bf16 %v619_v36, %v629_v40  ;;  %v506_v49 = vadd.f32 %v3634_v31, %v504_v41  ;;  %v627_v31 = vsel %vm618_vm3, %v606_v46, %v616_v47 }
  0x49   : > { %2954 = vmatpush3.bf16.msra.mxu1 %v3379_v50  ;;  %3163 = vmatprep.subr.bf16.mxu0 %v4018_v21  ;;  %v507_v50 = vmax.f32 %v505_v48, 0.0 }
  0x4a   : > { %3131 = vmatprep.subr.bf16.mxu1 %v3384_v9  ;;  %v508_v51 = vmax.f32 %v506_v49, 0.0 }
  0x4b   : > { %2729 = vmatmul.mubr.msk.bf16.gmra.mrb[16].mxu0 %vm3674_vm5, %v3997_v3  ;;  %v4096_v34 = vmul.f32 %v512_v24, %v507_v50 }
  0x4c   : > { %1154 = vmatprep.mubr.bf16.mxu0 %v4006_v14  ;;  %v4098_v53 = vmul.f32 %v512_v24, %v508_v51 }
  0x4d   : > { %v607_v62 = vrot.slane %v4096_v34, 7 }
  0x4e   : > { %2765 = vmatmul.mubr.msk.bf16.vlgmr.msra.gmra.mrb[16].mxu1 %vm3674_vm5, %v2764_v25  ;;  %v761_v56 = vpack.c.bf16 %v4098_v53, %v4096_v34  ;;  %v617_v4 = vrot.slane %v4098_v53, 7  ;;  %v658_v16 = vrot.slane %v4098_v53, 1 }
  0x4f   : > { %1460 = vmatprep.mubr.bf16.mxu1 %v3670_v52  ;;  %3132 = vmatpush3.bf16.msra.mxu1 %v3384_v9  ;;  %v636_v52 = vsel %vm618_vm3, %v615_v63, %v605_v30  ;;  %v648_v9 = vrot.slane %v4096_v34, 1  ;;  %v3399_v30 = vld [vmem:[%s4384_s3 + $0xb8] sm:$0xff]   ;;  %v3393_v63 = vld [vmem:[%s4384_s3 + $0x208] sm:$0xff]  }
  0x50   : > { %3133 = vmatprep.subr.bf16.mxu1 %v3387_v28  ;;  %v4068_v42 = vpack.c.bf16 %v626_v32, %v636_v52  ;;  %v4113_v19 = vsel %vm618_vm3, %v607_v62, %v617_v4  ;;  %v4117_v36 = vsel %vm618_vm3, %v617_v4, %v607_v62 }
  0x51   : > { %v2833_v40 = vpack.c.bf16 %v4113_v19, %v4117_v36  ;;  %v4126_v22 = vsel %vm659_vm2, %v648_v9, %v658_v16  ;;  %v4130_v23 = vsel %vm659_vm2, %v658_v16, %v648_v9 }
  0x52   : > { %v2857_v25 = vpack.c.bf16 %v4130_v23, %v4126_v22 }
  0x53   : > { %2732 = vmatmul.mubr.msk.bf16.gmra.mrb[20].mxu0 %vm3674_vm5, %v4036_v27  ;;  %3134 = vmatpush3.bf16.msra.mxu1 %v3387_v28  ;;  %v3397_v28 = vld [vmem:[%s4384_s3 + $0xb0] sm:$0xff]  }
  0x54   : > { %1162 = vmatprep.mubr.bf16.mxu0 %v4043_v29  ;;  %3135 = vmatprep.subr.bf16.mxu1 %v3390_v61 }
  0x56   : > { %2768 = vmatmul.mubr.msk.bf16.gmra.mrb[20].mxu1 %vm3674_vm5, %v3703_v5  ;;  %v637_v5 = vsel %vm618_vm3, %v616_v47, %v606_v46 }
  0x57   : > { %1468 = vmatprep.mubr.bf16.mxu1 %v3688_v60  ;;  %3136 = vmatpush3.bf16.msra.mxu1 %v3390_v61  ;;  %v4105_v11 = vpack.c.bf16 %v627_v31, %v637_v5  ;;  %v3401_v61 = vld [vmem:[%s4384_s3 + $0x228] sm:$0xff]  }
  0x58   : > { %3137 = vmatprep.subr.bf16.mxu1 %v3392_v45 }
  0x5b   : > { %2735 = vmatmul.mubr.msk.bf16.gmra.mrb[24].mxu0 %vm3674_vm5, %v4068_v42  ;;  %3138 = vmatpush3.bf16.msra.mxu1 %v3392_v45 }
  0x5c   : > { %1170 = vmatprep.mubr.bf16.mxu0 %v4072_v43  ;;  %3139 = vmatprep.subr.bf16.mxu1 %v3394_v26 }
  0x5e   : > { %2771 = vmatmul.mubr.msk.bf16.gmra.mrb[24].mxu1 %vm3674_vm5, %v3758_v33 }
  0x5f   : > { %1476 = vmatprep.mubr.bf16.mxu1 %v3772_v44  ;;  %3140 = vmatpush3.bf16.msra.mxu1 %v3394_v26 }
  0x60   : > { %3141 = vmatprep.subr.bf16.mxu1 %v3396_v15 }
  0x63   : > { %2738 = vmatmul.mubr.msk.bf16.gmra.mrb[28].mxu0 %vm3674_vm5, %v4105_v11  ;;  %3142 = vmatpush3.bf16.msra.mxu1 %v3396_v15 }
  0x64   : > { %1864 = vmatprep.mubr.bf16.mxu0 %v3688_v60  ;;  %3143 = vmatprep.subr.bf16.mxu1 %v3397_v28  ;;  %v3395_v60 = vld [vmem:[%s4384_s3 + $0x210] sm:$0xff]  }
  0x66   : > { %2774 = vmatmul.mubr.msk.bf16.gmra.mrb[28].mxu1 %vm3674_vm5, %v3823_v10 }
  0x67   : > { %1484 = vmatprep.mubr.bf16.mxu1 %v3836_v17  ;;  %3144 = vmatpush3.bf16.msra.mxu1 %v3397_v28 }
  0x68   : > { %3145 = vmatprep.subr.bf16.mxu1 %v3399_v30 }
  0x6b   : > { %2813 = vmatmul.mubr.msk.bf16.vlgmr.msra.gmra.mrb[32].mxu0 %vm3674_vm5, %v3758_v33  ;;  %3146 = vmatpush3.bf16.msra.mxu1 %v3399_v30  ;;  %v3398_v33 = vld [vmem:[%s4384_s3 + $0x218] sm:$0xff]  }
  0x6c   : > { %3164 = vmatpush3.bf16.msra.mxu0 %v4018_v21  ;;  %1872 = vmatprep.mubr.bf16.mxu0 %v3772_v44  ;;  %v3400_v44 = vld [vmem:[%s4384_s3 + $0x220] sm:$0xff]  }
  0x6d   : > { %3165 = vmatprep.subr.bf16.mxu0 %v3393_v63  ;;  %3195 = vmatprep.subr.bf16.mxu1 %v4018_v21 }
  0x6e   : > { %2777 = vmatmul.mubr.msk.bf16.gmra.mrb[32].mxu1 %vm3674_vm5, %v3899_v55 }
  0x6f   : > { %1492 = vmatprep.mubr.bf16.mxu1 %v3909_v0 }
  0x70   : > { %3166 = vmatpush3.bf16.msra.mxu0 %v3393_v63 }
  0x71   : > { %3167 = vmatprep.subr.bf16.mxu0 %v3395_v60 }
  0x73   : > { %2816 = vmatmul.mubr.msk.bf16.gmra.mrb[36].mxu0 %vm3674_vm5, %v3823_v10  ;;  %v3402_v10 = vld [vmem:[%s4384_s3 + $0x230] sm:$0xff]  }
  0x74   : > { %1880 = vmatprep.mubr.bf16.mxu0 %v3836_v17  ;;  %3168 = vmatpush3.bf16.msra.mxu0 %v3395_v60  ;;  %v639_v17 = vrot.slane %v3988_v58, 1 }
  0x75   : > { %3169 = vmatprep.subr.bf16.mxu0 %v3398_v33 }
  0x76   : > { %2780 = vmatmul.mubr.msk.bf16.gmra.mrb[36].mxu1 %vm3674_vm5, %v3997_v3  ;;  %v670_v58 = vsel %vm659_vm2, %v649_v6, %v639_v17 }
  0x77   : > { %1500 = vmatprep.mubr.bf16.mxu1 %v4006_v14 }
  0x78   : > { %3170 = vmatpush3.bf16.msra.mxu0 %v3398_v33 }
  0x79   : > { %3171 = vmatprep.subr.bf16.mxu0 %v3400_v44 }
  0x7b   : > { %2819 = vmatmul.mubr.msk.bf16.gmra.mrb[40].mxu0 %vm3674_vm5, %v3899_v55  ;;  %v3403_v55 = vld [vmem:[%s4384_s3 + $0x238] sm:$0xff]  }
  0x7c   : > { %1888 = vmatprep.mubr.bf16.mxu0 %v3909_v0  ;;  %3172 = vmatpush3.bf16.msra.mxu0 %v3400_v44  ;;  %v660_v0 = vsel %vm659_vm2, %v639_v17, %v649_v6 }
  0x7d   : > { %3173 = vmatprep.subr.bf16.mxu0 %v3401_v61  ;;  %v2788_v2 = vpack.c.bf16 %v670_v58, %v660_v0 }
  0x7e   : > { %2783 = vmatmul.mubr.msk.bf16.gmra.mrb[40].mxu1 %vm3674_vm5, %v4036_v27 }
  0x7f   : > { %1508 = vmatprep.mubr.bf16.mxu1 %v4043_v29 }
  0x80   : > { %3174 = vmatpush3.bf16.msra.mxu0 %v3401_v61 }
  0x81   : > { %3175 = vmatprep.subr.bf16.mxu0 %v3402_v10 }
  0x83   : > { %2822 = vmatmul.mubr.msk.bf16.gmra.mrb[44].mxu0 %vm3674_vm5, %v3997_v3 }
  0x84   : > { %1896 = vmatprep.mubr.bf16.mxu0 %v4006_v14  ;;  %3176 = vmatpush3.bf16.msra.mxu0 %v3402_v10 }
  0x85   : > { %3177 = vmatprep.subr.bf16.mxu0 %v3403_v55 }
  0x86   : > { %2786 = vmatmul.mubr.msk.bf16.gmra.mrb[44].mxu1 %vm3674_vm5, %v4068_v42 }
  0x87   : > { %3147 = vmatprep.mubr.msk.bf16.mxu1 %vm3684_vm6, %v2788_v2 }
  0x88   : > { %3178 = vmatpush3.bf16.msra.mxu0 %v3403_v55 }
  0x8b   : > { %2825 = vmatmul.mubr.msk.bf16.gmra.mrb[48].mxu0 %vm3674_vm5, %v4036_v27 }
  0x8c   : > { %1904 = vmatprep.mubr.bf16.mxu0 %v4043_v29 }
  0x8e   : > { %3148 = vmatmul.mubr.msk.bf16.vlgmr.msra.gmra.mrb[0].mxu1 %vm3684_vm6, %v3711_v8 }
  0x8f   : > { %3203 = vmatpush3.bf16.msra.mxu1 %v4018_v21  ;;  %3151 = vmatprep.mubr.msk.bf16.mxu1 %vm3684_vm6, %v3724_v13 }
  0x90   : > { %3196 = vmatprep.subr.bf16.mxu1 %v3393_v63 }
  0x93   : > { %2828 = vmatmul.mubr.msk.bf16.gmra.mrb[52].mxu0 %vm3674_vm5, %v4068_v42  ;;  %3204 = vmatpush3.bf16.msra.mxu1 %v3393_v63 }
  0x94   : > { %1912 = vmatprep.mubr.bf16.mxu0 %v4072_v43  ;;  %3197 = vmatprep.subr.bf16.mxu1 %v3395_v60 }
  0x96   : > { %3152 = vmatmul.mubr.msk.bf16.gmra.mrb[4].mxu1 %vm3684_vm6, %v3794_v59 }
  0x97   : > { %3205 = vmatpush3.bf16.msra.mxu1 %v3395_v60  ;;  %3155 = vmatprep.mubr.msk.bf16.mxu1 %vm3684_vm6, %v3838_v18 }
  0x98   : > { %3198 = vmatprep.subr.bf16.mxu1 %v3398_v33 }
  0x9b   : > { %2831 = vmatmul.mubr.msk.bf16.gmra.mrb[56].mxu0 %vm3674_vm5, %v4105_v11  ;;  %3206 = vmatpush3.bf16.msra.mxu1 %v3398_v33 }
  0x9c   : > { %1920 = vmatprep.mubr.bf16.mxu0 %v761_v56  ;;  %3199 = vmatprep.subr.bf16.mxu1 %v3400_v44 }
  0x9e   : > { %3156 = vmatmul.mubr.msk.bf16.gmra.mrb[8].mxu1 %vm3684_vm6, %v3873_v39 }
  0x9f   : > { %3207 = vmatpush3.bf16.msra.mxu1 %v3400_v44  ;;  %3159 = vmatprep.mubr.msk.bf16.mxu1 %vm3684_vm6, %v3924_v12 }
  0xa0   : > { %3200 = vmatprep.subr.bf16.mxu1 %v3401_v61 }
  0xa3   : > { %2834 = vmatmul.mubr.msk.bf16.gmra.mrb[60].mxu0 %vm3674_vm5, %v2833_v40  ;;  %3208 = vmatpush3.bf16.msra.mxu1 %v3401_v61 }
  0xa4   : > { %3179 = vmatprep.mubr.msk.bf16.mxu0 %vm3684_vm6, %v3724_v13  ;;  %3201 = vmatprep.subr.bf16.mxu1 %v3402_v10 }
  0xa6   : > { %3160 = vmatmul.mubr.msk.bf16.gmra.mrb[12].mxu1 %vm3684_vm6, %v3959_v37 }
  0xa7   : > { %3209 = vmatpush3.bf16.msra.mxu1 %v3402_v10  ;;  %3187 = vmatprep.mubr.msk.bf16.mxu1 %vm3684_vm6, %v3924_v12 }
  0xa8   : > { %3202 = vmatprep.subr.bf16.mxu1 %v3403_v55 }
  0xab   : > { %3180 = vmatmul.mubr.msk.bf16.vlgmr.msra.gmra.mrb[64].mxu0 %vm3684_vm6, %v3794_v59  ;;  %3210 = vmatpush3.bf16.msra.mxu1 %v3403_v55 }
  0xac   : > { %3183 = vmatprep.mubr.msk.bf16.mxu0 %vm3684_vm6, %v3838_v18 }
  0xae   : > { %3188 = vmatmul.mubr.msk.bf16.vlgmr.msra.gmra.mrb[8].mxu1 %vm3684_vm6, %v3959_v37 }
  0xaf   : > { %3191 = vmatprep.mubr.msk.bf16.mxu1 %vm3684_vm6, %v3993_v1 }
  0xb3   : > { %3184 = vmatmul.mubr.msk.bf16.gmra.mrb[68].mxu0 %vm3684_vm6, %v3873_v39 }
  0xb6   : > { %3192 = vmatmul.mubr.msk.bf16.gmra.mrb[12].mxu1 %vm3684_vm6, %v2857_v25 }
  0xfe   : > { %v2875_v20 = vpop.f32.mrb[0].mxu0 }
  0xff   : > { %v2876_v54 = vpop.f32.mrb[1].mxu0 }
 0x100   : > { %v2877_v8 = vadd.f32 %v2876_v54, %v2875_v20  ;;  %v2878_v13 = vpop.f32.mrb[2].mxu0 }
 0x101   : > { %v2879_v59 = vpop.f32.mrb[3].mxu0 }
 0x102   : > { %v2880_v18 = vadd.f32 %v2879_v59, %v2878_v13 }
 0x106   : > { %v2881_v12 = vpop.f32.mrb[4].mxu0 }
 0x107   : > { %v2882_v37 = vpop.f32.mrb[5].mxu0 }
 0x108   : > { %v2883_v3 = vadd.f32 %v2882_v37, %v2881_v12  ;;  %v2884_v1 = vpop.f32.mrb[6].mxu0 }
 0x109   : > { %v2885_v14 = vpop.f32.mrb[7].mxu0 }
 0x10a   : > { %v2886_v21 = vadd.f32 %v2885_v14, %v2884_v1 }
 0x10e   : > { %v2887_v27 = vpop.f32.mrb[8].mxu0 }
 0x10f   : > { %v2888_v39 = vpop.f32.mrb[9].mxu0 }
 0x110   : > { %v2889_v29 = vadd.f32 %v2888_v39, %v2887_v27  ;;  %v2890_v32 = vpop.f32.mrb[10].mxu0 }
 0x111   : > { %v2891_v52 = vpop.f32.mrb[11].mxu0 }
 0x112   : > { %v2892_v35 = vadd.f32 %v2891_v52, %v2890_v32 }
 0x116   : > { %v2893_v57 = vpop.f32.mrb[12].mxu0 }
 0x117   : > { %v2894_v7 = vpop.f32.mrb[13].mxu0 }
 0x118   : > { %v2895_v38 = vadd.f32 %v2894_v7, %v2893_v57  ;;  %v2896_v41 = vpop.f32.mrb[14].mxu0 }
 0x119   : > { %v2897_v42 = vpop.f32.mrb[15].mxu0 }
 0x11a   : > { %v2898_v43 = vadd.f32 %v2897_v42, %v2896_v41 }
 0x11e   : > { %v2899_v45 = vpop.f32.mrb[16].mxu0 }
 0x11f   : > { %v2900_v46 = vpop.f32.mrb[17].mxu0 }
 0x120   : > { %v4278_v47 = vadd.f32 %v2900_v46, %v2899_v45  ;;  %v2902_v48 = vpop.f32.mrb[18].mxu0 }
 0x121   : > { %v2903_v49 = vpop.f32.mrb[19].mxu0  ;;  %v2955_v50 = vpop.f32.mrb[16].mxu1 }
 0x122   : > { %v4280_v24 = vadd.f32 %v2903_v49, %v2902_v48  ;;  %v2956_v51 = vpop.f32.mrb[17].mxu1 }
 0x123   : > { %v2957_v26 = vadd.f32 %v2956_v51, %v2955_v50  ;;  %v2958_v31 = vpop.f32.mrb[18].mxu1 }
 0x124   : > { %v2959_v34 = vpop.f32.mrb[19].mxu1 }
 0x125   : > { %v2960_v56 = vadd.f32 %v2959_v34, %v2958_v31  ;;  %v4284_v9 = vadd.f32 %v2957_v26, %v2877_v8 }
 0x126   : > { %v2905_v5 = vpop.f32.mrb[20].mxu0 }
 0x127   : > { %v2906_v53 = vpop.f32.mrb[21].mxu0  ;;  %v4288_v16 = vadd.f32 %v2960_v56, %v2880_v18 }
 0x128   : > { %v4282_v62 = vadd.f32 %v2906_v53, %v2905_v5  ;;  %v2908_v4 = vpop.f32.mrb[22].mxu0 }
 0x129   : > { %v2909_v11 = vpop.f32.mrb[23].mxu0  ;;  %v2961_v19 = vpop.f32.mrb[20].mxu1 }
 0x12a   : > { %v4286_v15 = vadd.f32 %v2909_v11, %v2908_v4  ;;  %v2962_v36 = vpop.f32.mrb[21].mxu1 }
 0x12b   : > { %v2963_v40 = vadd.f32 %v2962_v36, %v2961_v19  ;;  %v2964_v22 = vpop.f32.mrb[22].mxu1 }
 0x12c   : > { %v2965_v25 = vpop.f32.mrb[23].mxu1 }
 0x12d   : > { %v2966_v30 = vadd.f32 %v2965_v25, %v2964_v22  ;;  %v4292_v33 = vadd.f32 %v2963_v40, %v2883_v3 }
 0x12e   : > { %v2911_v23 = vpop.f32.mrb[24].mxu0 }
 0x12f   : > { %v2912_v28 = vpop.f32.mrb[25].mxu0  ;;  %v4296_v10 = vadd.f32 %v2966_v30, %v2886_v21 }
 0x130   : > { %v4290_v63 = vadd.f32 %v2912_v28, %v2911_v23  ;;  %v2914_v60 = vpop.f32.mrb[26].mxu0 }
 0x131   : > { %v2915_v44 = vpop.f32.mrb[27].mxu0  ;;  %v2967_v17 = vpop.f32.mrb[24].mxu1 }
 0x132   : > { %v4294_v61 = vadd.f32 %v2915_v44, %v2914_v60  ;;  %v2968_v6 = vpop.f32.mrb[25].mxu1 }
 0x133   : > { %v2969_v55 = vadd.f32 %v2968_v6, %v2967_v17  ;;  %v2970_v0 = vpop.f32.mrb[26].mxu1 }
 0x134   : > { %v2971_v2 = vpop.f32.mrb[27].mxu1 }
 0x135   : > { %v2972_v54 = vadd.f32 %v2971_v2, %v2970_v0  ;;  %v4300_v59 = vadd.f32 %v2969_v55, %v2889_v29 }
 0x136   : > { %v2917_v58 = vpop.f32.mrb[28].mxu0 }
 0x137   : > { %v2918_v20 = vpop.f32.mrb[29].mxu0  ;;  %v4304_v37 = vadd.f32 %v2972_v54, %v2892_v35 }
 0x138   : > { %v4298_v8 = vadd.f32 %v2918_v20, %v2917_v58  ;;  %v2920_v13 = vpop.f32.mrb[30].mxu0 }
 0x139   : > { %v2921_v18 = vpop.f32.mrb[31].mxu0  ;;  %v2973_v3 = vpop.f32.mrb[28].mxu1 }
 0x13a   : > { %v4302_v12 = vadd.f32 %v2921_v18, %v2920_v13  ;;  %v2974_v1 = vpop.f32.mrb[29].mxu1 }
 0x13b   : > { %v2975_v14 = vadd.f32 %v2974_v1, %v2973_v3  ;;  %v2976_v21 = vpop.f32.mrb[30].mxu1 }
 0x13c   : > { %v2977_v39 = vpop.f32.mrb[31].mxu1 }
 0x13d   : > { %v2978_v52 = vadd.f32 %v2977_v39, %v2976_v21  ;;  %v4308_v41 = vadd.f32 %v2975_v14, %v2895_v38 }
 0x13e   : > { %v3035_v27 = vpop.f32.mrb[32].mxu0 }
 0x13f   : > { %v3036_v32 = vpop.f32.mrb[33].mxu0  ;;  %v4312_v45 = vadd.f32 %v2978_v52, %v2898_v43 }
 0x140   : > { %v4306_v57 = vadd.f32 %v3036_v32, %v3035_v27  ;;  %v3038_v7 = vpop.f32.mrb[34].mxu0 }
 0x141   : > { %v3039_v29 = vpop.f32.mrb[35].mxu0  ;;  %v2979_v35 = vpop.f32.mrb[32].mxu1 }
 0x142   : > { %v4310_v42 = vadd.f32 %v3039_v29, %v3038_v7  ;;  %v2980_v46 = vpop.f32.mrb[33].mxu1 }
 0x143   : > { %v2981_v48 = vadd.f32 %v2980_v46, %v2979_v35  ;;  %v2982_v49 = vpop.f32.mrb[34].mxu1 }
 0x144   : > { %v2983_v51 = vpop.f32.mrb[35].mxu1 }
 0x145   : > { %v3246_v31 = vadd.f32 %v2981_v48, %v4278_v47  ;;  %v2984_v5 = vadd.f32 %v2983_v51, %v2982_v49 }
 0x146   : > { %v3041_v50 = vpop.f32.mrb[36].mxu0 }
 0x147   : > { %v3042_v26 = vpop.f32.mrb[37].mxu0  ;;  %v3252_v38 = vadd.f32 %v2984_v5, %v4280_v24 }
 0x148   : > { %v3043_v34 = vadd.f32 %v3042_v26, %v3041_v50  ;;  %v3044_v53 = vpop.f32.mrb[38].mxu0 }
 0x149   : > { %v3045_v56 = vpop.f32.mrb[39].mxu0  ;;  %v2985_v11 = vpop.f32.mrb[36].mxu1 }
 0x14a   : > { %v3046_v4 = vadd.f32 %v3045_v56, %v3044_v53  ;;  %v2986_v19 = vpop.f32.mrb[37].mxu1 }
 0x14b   : > { %v2987_v43 = vadd.f32 %v2986_v19, %v2985_v11  ;;  %v2988_v36 = vpop.f32.mrb[38].mxu1 }
 0x14c   : > { %v2989_v22 = vpop.f32.mrb[39].mxu1 }
 0x14d   : > { %v3243_v25 = vadd.f32 %v2987_v43, %v4282_v62  ;;  %v2990_v28 = vadd.f32 %v2989_v22, %v2988_v36 }
 0x14e   : > { %v3047_v40 = vpop.f32.mrb[40].mxu0 }
 0x14f   : > { %v3048_v23 = vpop.f32.mrb[41].mxu0  ;;  %v3249_v44 = vadd.f32 %v2990_v28, %v4286_v15 }
 0x150   : > { %v4317_v30 = vadd.f32 %v3048_v23, %v3047_v40  ;;  %v3050_v47 = vpop.f32.mrb[42].mxu0 }
 0x151   : > { %v3051_v60 = vpop.f32.mrb[43].mxu0  ;;  %v2991_v24 = vpop.f32.mrb[40].mxu1 }
 0x152   : > { %v4320_v17 = vadd.f32 %v3051_v60, %v3050_v47  ;;  %v2992_v6 = vpop.f32.mrb[41].mxu1 }
 0x153   : > { %v2993_v55 = vadd.f32 %v2992_v6, %v2991_v24  ;;  %v2994_v0 = vpop.f32.mrb[42].mxu1 }
 0x154   : > { %v2995_v2 = vpop.f32.mrb[43].mxu1 }
 0x155   : > { %v3258_v54 = vadd.f32 %v2993_v55, %v4290_v63  ;;  %v2996_v13 = vadd.f32 %v2995_v2, %v2994_v0 }
 0x156   : > { %v3053_v58 = vpop.f32.mrb[44].mxu0 }
 0x157   : > { %v3054_v20 = vpop.f32.mrb[45].mxu0  ;;  %v3264_v1 = vadd.f32 %v2996_v13, %v4294_v61 }
 0x158   : > { %v3055_v62 = vadd.f32 %v3054_v20, %v3053_v58  ;;  %v3056_v18 = vpop.f32.mrb[46].mxu0 }
 0x159   : > { %v3057_v3 = vpop.f32.mrb[47].mxu0  ;;  %v2997_v21 = vpop.f32.mrb[44].mxu1 }
 0x15a   : > { %v3058_v14 = vadd.f32 %v3057_v3, %v3056_v18  ;;  %v2998_v15 = vpop.f32.mrb[45].mxu1 }
 0x15b   : > { %v2999_v27 = vadd.f32 %v2998_v15, %v2997_v21  ;;  %v3000_v39 = vpop.f32.mrb[46].mxu1 }
 0x15c   : > { %v3001_v52 = vpop.f32.mrb[47].mxu1 }
 0x15d   : > { %v3255_v29 = vadd.f32 %v2999_v27, %v4298_v8  ;;  %v3002_v35 = vadd.f32 %v3001_v52, %v3000_v39 }
 0x15e   : > { %v3059_v32 = vpop.f32.mrb[48].mxu0 }
 0x15f   : > { %v3060_v7 = vpop.f32.mrb[49].mxu0  ;;  %v3261_v49 = vadd.f32 %v3002_v35, %v4302_v12 }
 0x160   : > { %v3061_v46 = vadd.f32 %v3060_v7, %v3059_v32  ;;  %v3062_v48 = vpop.f32.mrb[50].mxu0 }
 0x161   : > { %v3063_v63 = vpop.f32.mrb[51].mxu0  ;;  %v3149_v61 = vpop.f32.mrb[0].mxu1 }
 0x162   : > { %v3064_v50 = vadd.f32 %v3063_v63, %v3062_v48  ;;  %v4326_v51 = vadd.f32 %v3246_v31, %v3061_v46  ;;  %v3212_v5 = vadd.f32 %v4292_v33, %v3149_v61  ;;  %v1551_v53 = vpop.f32.mrb[1].mxu1 }
 0x163   : > { %v3216_v56 = vadd.f32 %v4284_v9, %v1551_v53  ;;  %v3150_v11 = vpop.f32.mrb[2].mxu1 }
 0x164   : > { %v4328_v26 = vadd.f32 %v3252_v38, %v3064_v50  ;;  %v3220_v8 = vadd.f32 %v4296_v10, %v3150_v11  ;;  %v1554_v43 = vpop.f32.mrb[3].mxu1  ;;  %v3213_v40 = vadd.f32 %v3212_v5, %v3043_v34 }
 0x165   : > { %v3224_v12 = vadd.f32 %v4288_v16, %v1554_v43  ;;  %v3217_v23 = vadd.f32 %v3216_v56, %v4306_v57 }
 0x166   : > { %v3065_v19 = vpop.f32.mrb[52].mxu0  ;;  %v3221_v28 = vadd.f32 %v3220_v8, %v3046_v4 }
 0x167   : > { %v3066_v36 = vpop.f32.mrb[53].mxu0  ;;  %v3225_v60 = vadd.f32 %v3224_v12, %v4310_v42 }
 0x168   : > { %v3067_v22 = vadd.f32 %v3066_v36, %v3065_v19  ;;  %v3068_v31 = vpop.f32.mrb[54].mxu0 }
 0x169   : > { %v3069_v38 = vpop.f32.mrb[55].mxu0  ;;  %v3153_v9 = vpop.f32.mrb[4].mxu1 }
 0x16a   : > { %v3070_v47 = vadd.f32 %v3069_v38, %v3068_v31  ;;  %v3244_v33 = vadd.f32 %v3243_v25, %v3067_v22  ;;  %v3228_v6 = vadd.f32 %v4308_v41, %v3153_v9  ;;  %v1567_v10 = vpop.f32.mrb[5].mxu1 }
 0x16b   : > { %v3232_v55 = vadd.f32 %v4300_v59, %v1567_v10  ;;  %v3154_v34 = vpop.f32.mrb[6].mxu1 }
 0x16c   : > { %v3250_v24 = vadd.f32 %v3249_v44, %v3070_v47  ;;  %v3236_v16 = vadd.f32 %v4312_v45, %v3154_v34  ;;  %v1570_v58 = vpop.f32.mrb[7].mxu1  ;;  %v3229_v57 = vadd.f32 %v3228_v6, %v3055_v62 }
 0x16d   : > { %v3240_v4 = vadd.f32 %v4304_v37, %v1570_v58  ;;  %v3233_v42 = vadd.f32 %v3232_v55, %v4317_v30 }
 0x16e   : > { %v3071_v0 = vpop.f32.mrb[56].mxu0  ;;  %v3237_v44 = vadd.f32 %v3236_v16, %v3058_v14 }
 0x16f   : > { %v3072_v2 = vpop.f32.mrb[57].mxu0  ;;  %v3241_v3 = vadd.f32 %v3240_v4, %v4320_v17 }
 0x170   : > { %v3073_v20 = vadd.f32 %v3072_v2, %v3071_v0  ;;  %v3074_v25 = vpop.f32.mrb[58].mxu0 }
 0x171   : > { %v3075_v13 = vpop.f32.mrb[59].mxu0 }
 0x172   : > { %v3076_v18 = vadd.f32 %v3075_v13, %v3074_v25  ;;  %v3259_v41 = vadd.f32 %v3258_v54, %v3073_v20 }
 0x174   : > { %v4342_v59 = vadd.f32 %v3264_v1, %v3076_v18 }
 0x176   : > { %v3077_v21 = vpop.f32.mrb[60].mxu0 }
 0x177   : > { %v3078_v45 = vpop.f32.mrb[61].mxu0 }
 0x178   : > { %v3079_v15 = vadd.f32 %v3078_v45, %v3077_v21  ;;  %v3080_v27 = vpop.f32.mrb[62].mxu0 }
 0x179   : > { %v3081_v62 = vpop.f32.mrb[63].mxu0 }
 0x17a   : > { %v3082_v39 = vadd.f32 %v3081_v62, %v3080_v27  ;;  %v3256_v37 = vadd.f32 %v3255_v29, %v3079_v15 }
 0x17c   : > { %v3262_v32 = vadd.f32 %v3261_v49, %v3082_v39 }
 0x17e   : > { %v3181_v52 = vpop.f32.mrb[64].mxu0 }
 0x17f   : > { %v3214_v7 = vadd.f32 %v3213_v40, %v3181_v52  ;;  %v1963_v30 = vpop.f32.mrb[65].mxu0 }
 0x180   : > { %v3218_v35 = vadd.f32 %v3217_v23, %v1963_v30  ;;  %v3182_v14 = vpop.f32.mrb[66].mxu0 }
 0x181   : > { %v3222_v46 = vadd.f32 %v3221_v28, %v3182_v14  ;;  %v1966_v54 = vpop.f32.mrb[67].mxu0  ;;  %v3189_v48 = vpop.f32.mrb[8].mxu1  ;;  %v2145_v53 = vmul.f32 %v3214_v7, %v3214_v7 }
 0x182   : > { %v3226_v17 = vadd.f32 %v3225_v60, %v1966_v54  ;;  %v2143_v29 = vmul.f32 %v3218_v35, %v3218_v35  ;;  %v3245_v61 = vadd.f32 %v3244_v33, %v3189_v48  ;;  %v1995_v5 = vpop.f32.mrb[9].mxu1 }
 0x183   : > { %v2669_v1 = vpack.c.bf16 %v3222_v46, %v3214_v7  ;;  %v3248_v56 = vadd.f32 %v4326_v51, %v1995_v5  ;;  %v3190_v11 = vpop.f32.mrb[10].mxu1  ;;  %v2146_v31 = vmul.f32 %v3222_v46, %v3222_v46 }
 0x184   : > { %v2664_v63 = vpack.c.bf16 %v3226_v17, %v3218_v35  ;;  %v2122_v49 = vadd.f32 %v3226_v17, %v3218_v35  ;;  %v2144_v50 = vmul.f32 %v3226_v17, %v3226_v17  ;;  %v3251_v36 = vadd.f32 %v3250_v24, %v3190_v11  ;;  %v1998_v40 = vpop.f32.mrb[11].mxu1 }
 0x185   : > { %2708 = vst [vmem:[%s4349_s19 + $0x8] sm:$0xff] %v2669_v1   ;;  %v3254_v38 = vadd.f32 %v4328_v26, %v1998_v40  ;;  %v2153_v14 = vmul.f32 %v3245_v61, %v3245_v61 }
 0x186   : > { %2665 = vst [vmem:[%s4349_s19] sm:$0xff] %v2664_v63   ;;  %v2123_v19 = vadd.f32 %v3214_v7, %v2122_v49  ;;  %v2159_v8 = vadd.f32 %v2144_v50, %v2143_v29  ;;  %v3185_v43 = vpop.f32.mrb[68].mxu0  ;;  %v2689_v33 = vpack.c.bf16 %v3251_v36, %v3245_v61  ;;  %v2154_v17 = vmul.f32 %v3251_v36, %v3251_v36 }
 0x187   : > { %v3230_v12 = vadd.f32 %v3229_v57, %v3185_v43  ;;  %v1979_v22 = vpop.f32.mrb[69].mxu0  ;;  %v2684_v9 = vpack.c.bf16 %v3254_v38, %v3248_v56  ;;  %v2152_v30 = vmul.f32 %v3254_v38, %v3254_v38 }
 0x188   : > { %v2160_v23 = vadd.f32 %v2159_v8, %v2145_v53  ;;  %v3234_v28 = vadd.f32 %v3233_v42, %v1979_v22  ;;  %v3186_v47 = vpop.f32.mrb[70].mxu0  ;;  %v2124_v60 = vadd.f32 %v3222_v46, %v2123_v19  ;;  %2712 = vst [vmem:[%s4349_s19 + $0x28] sm:$0xff] %v2689_v33  }
 0x189   : > { %v1982_v51 = vpop.f32.mrb[71].mxu0  ;;  %v3238_v24 = vadd.f32 %v3237_v44, %v3186_v47  ;;  %2711 = vst [vmem:[%s4349_s19 + $0x20] sm:$0xff] %v2684_v9   ;;  %v3193_v0 = vpop.f32.mrb[12].mxu1  ;;  %v2149_v21 = vmul.f32 %v3230_v12, %v3230_v12 }
 0x18a   : > { %v2147_v6 = vmul.f32 %v3234_v28, %v3234_v28  ;;  %v2161_v10 = vadd.f32 %v2160_v23, %v2146_v31  ;;  %v2125_v55 = vadd.f32 %v3234_v28, %v2124_v60  ;;  %v3242_v34 = vadd.f32 %v3241_v3, %v1982_v51  ;;  %v2011_v2 = vpop.f32.mrb[13].mxu1 }
 0x18b   : > { %v3257_v58 = vadd.f32 %v3256_v37, %v3193_v0  ;;  %v2679_v26 = vpack.c.bf16 %v3238_v24, %v3230_v12  ;;  %v3260_v4 = vadd.f32 %v3259_v41, %v2011_v2  ;;  %v3194_v20 = vpop.f32.mrb[14].mxu1  ;;  %v2150_v27 = vmul.f32 %v3238_v24, %v3238_v24 }
 0x18c   : > { %v2162_v16 = vadd.f32 %v2161_v10, %v2147_v6  ;;  %v2674_v57 = vpack.c.bf16 %v3242_v34, %v3234_v28  ;;  %v2126_v25 = vadd.f32 %v3242_v34, %v2125_v55  ;;  %v2148_v42 = vmul.f32 %v3242_v34, %v3242_v34  ;;  %v2014_v18 = vpop.f32.mrb[15].mxu1 }
 0x18d   : > { %2710 = vst [vmem:[%s4349_s19 + $0x18] sm:$0xff] %v2679_v26   ;;  %v3263_v13 = vadd.f32 %v3262_v32, %v3194_v20  ;;  %v3266_v45 = vadd.f32 %v4342_v59, %v2014_v18  ;;  %v2151_v41 = vmul.f32 %v3248_v56, %v3248_v56  ;;  %v2155_v59 = vmul.f32 %v3260_v4, %v3260_v4 }
 0x18e   : > { %2709 = vst [vmem:[%s4349_s19 + $0x10] sm:$0xff] %v2674_v57   ;;  %v2127_v44 = vadd.f32 %v3230_v12, %v2126_v25  ;;  %v2163_v3 = vadd.f32 %v2162_v16, %v2148_v42  ;;  %v2157_v53 = vmul.f32 %v3257_v58, %v3257_v58 }
 0x18f   : > { %v2699_v15 = vpack.c.bf16 %v3263_v13, %v3257_v58  ;;  %v2694_v37 = vpack.c.bf16 %v3266_v45, %v3260_v4  ;;  %v2156_v50 = vmul.f32 %v3266_v45, %v3266_v45  ;;  %v2158_v19 = vmul.f32 %v3263_v13, %v3263_v13 }
 0x190   : > { %v2128_v62 = vadd.f32 %v3238_v24, %v2127_v44  ;;  %v2164_v39 = vadd.f32 %v2163_v3, %v2149_v21 }
 0x191   : > { %2714 = vst [vmem:[%s4349_s19 + $0x38] sm:$0xff] %v2699_v15   ;;  %2713 = vst [vmem:[%s4349_s19 + $0x30] sm:$0xff] %v2694_v37  }
 0x192   : > { %v2129_v52 = vadd.f32 %v3248_v56, %v2128_v62  ;;  %v2165_v7 = vadd.f32 %v2164_v39, %v2150_v27 }
 0x194   : > { %v2166_v32 = vadd.f32 %v2165_v7, %v2151_v41  ;;  %v2130_v35 = vadd.f32 %v3254_v38, %v2129_v52 }
 0x196   : > { %v2131_v46 = vadd.f32 %v3245_v61, %v2130_v35  ;;  %v2167_v54 = vadd.f32 %v2166_v32, %v2152_v30 }
 0x198   : > { %v2132_v1 = vadd.f32 %v3251_v36, %v2131_v46  ;;  %v2168_v48 = vadd.f32 %v2167_v54, %v2153_v14 }
 0x19a   : > { %v2133_v29 = vadd.f32 %v3260_v4, %v2132_v1  ;;  %v2169_v63 = vadd.f32 %v2168_v48, %v2154_v17 }
 0x19c   : > { %v2134_v49 = vadd.f32 %v3266_v45, %v2133_v29  ;;  %v2170_v5 = vadd.f32 %v2169_v63, %v2155_v59 }
 0x19e   : > { %v2135_v56 = vadd.f32 %v3257_v58, %v2134_v49  ;;  %v2171_v11 = vadd.f32 %v2170_v5, %v2156_v50 }
 0x1a0   : > { %v2136_v8 = vadd.f32 %v3263_v13, %v2135_v56  ;;  %v2172_v43 = vadd.f32 %v2171_v11, %v2157_v53 }
 0x1a2   : > { %v2137_v40 = vrot.slane %v2136_v8, 4  ;;  %v2173_v12 = vadd.f32 %v2172_v43, %v2158_v19 }
 0x1a4   : > { %v2138_v61 = vadd.f32 %v2137_v40, %v2136_v8  ;;  %v2174_v22 = vrot.slane %v2173_v12, 4 }
 0x1a6   : > { %v2139_v31 = vrot.slane %v2138_v61, 2  ;;  %v2175_v36 = vadd.f32 %v2174_v22, %v2173_v12 }
 0x1a8   : > { %v2140_v23 = vadd.f32 %v2139_v31, %v2138_v61  ;;  %v2176_v38 = vrot.slane %v2175_v36, 2 }
 0x1aa   : > { %v2141_v28 = vrot.slane %v2140_v23, 1  ;;  %v2177_v47 = vadd.f32 %v2176_v38, %v2175_v36 }
 0x1ac   : > { %v2178_v33 = vrot.slane %v2177_v47, 1  ;;  %v2142_v60 = vadd.f32 %v2141_v28, %v2140_v23 }
 0x1ae   : > { %v2179_v51 = vadd.f32 %v2178_v33, %v2177_v47 }
 0x1b0   : > { %v2181_v9 = vsel %vm2180_vm7, %v2142_v60, %v2179_v51 }
 0x1b1   : > { %2182 = vst [vmem:[%s467_s11] sm:$0x3] %v2181_v9 }
 0x1b2 PF: > { %s18_s28 = sadd.s32 1, %s3442_s28   ;;  %s4394_s24 = smov %s3434_s26 }
 0x1b3   : > { %p15_p12 = scmp.ge.s32.totalorder %s18_s28, 6   ;;  %s4395_s25 = smov %s3438_s27 }
 0x1b4   : > { %s4396_s26 = smov %s4399_s29  ;;  %s4397_s27 = smov %s4403_s30 }
 0x1b5   :  { %17 = sbr.rel (!%p15_p12) target bundleno = 3 (0x3), region = 96 }

// kernel: vgg_block.3
= control target key start
LH: loop header
LB: loop body
LE: loop exit
PB: predicated region body
PF: predicated region fallthrough
CT: control target
= control target key end

     0   :  { %s3342_s24 = smov 0   ;;  %s3344_s25 = smov 0   ;;  %s4192_s0 = inlined_call_operand.vmem [shape: f32[2,16,16,128], index: 0, kind: input, shape index: {}, may-alias: {0,1,2}]   ;;  %s4193_s1 = inlined_call_operand.vmem [shape: f32[2,16,16,128], index: 1, kind: input, shape index: {}, may-alias: {0,1,2}]   ;;  %s4194_s2 = inlined_call_operand.vmem [shape: f32[2,16,16,128], index: 2, kind: input, shape index: {}, may-alias: {0,1,2}]   ;;  %s4195_s3 = inlined_call_operand.vmem [shape: bf16[3,384,128], index: 3, kind: input, shape index: {}]   ;;  %s4196_s4 = inlined_call_operand.vmem [shape: f32[1,128], index: 4, kind: input, shape index: {}]   ;;  %s4197_s5 = inlined_call_operand.vmem [shape: f32[1,128], index: 5, kind: input, shape index: {}]   ;;  %s4198_s6 = inlined_call_operand.vmem [shape: bf16[2,16,16,128], index: 6, kind: output, shape index: {0}]   ;;  %s4199_s7 = inlined_call_operand.vmem [shape: f32[2,2,2,128], index: 7, kind: output, shape index: {1}]  }
   0x1   :  { %s3346_s26 = smov 0   ;;  %s3348_s27 = smov 0  }
   0x2   :  { %s3350_s28 = smov 0  }
   0x3 LB: > { %s27_s4 = sadd.s32 1, %s3291_s26  ;;  %s30_s5 = sadd.s32 1, %s3295_s27  ;;  %s3299_s28 = sphi %s3350_s28, %s18_s28   ;;  %s3295_s27 = sphi %s3348_s27, %s4208_s27   ;;  %s3291_s26 = sphi %s3346_s26, %s4207_s26   ;;  %s3287_s25 = sphi %s3344_s25, %s4206_s25   ;;  %s3283_s24 = sphi %s3342_s24, %s4205_s24  }
   0x4   : > { %p28_p0 = scmp.ge.s32.totalorder %s27_s4, 2  ;;  %p2287_p1 = scmp.ge.s32.totalorder %s3299_s28, 1 }
   0x5   : > { %p328_p2 = scmp.lt.s32.totalorder %s3299_s28, 5 }
   0x6   : > { %s4210_s4 = smov (%p28_p0, %s27_s4), 0  ;;  %s4212_s5 = smov (!%p28_p0, %s30_s5), %s3295_s27 }
   0x7   : > { %p329_p3 = pnand %p2287_p1, %p328_p2  ;;  %p32_p4 = scmp.ge.s32.totalorder %s4212_s5, 2 }
   0x8   : > { %v3189_v0 = vld [vmem:[%s4195_s3 + $0x100] sm:$0xff] (!%p329_p3)   ;;  %s3378_s8 = sshll.u32 (!%p329_p3), %s3283_s24, 3  ;;  %p405_p5 = scmp.lt.s32.totalorder (!%p329_p3), %s3287_s25, 1  ;;  %v3192_v3 = vld [vmem:[%s4195_s3 + $0x108] sm:$0xff] (!%p329_p3)   ;;  %v3195_v6 = vld [vmem:[%s4195_s3 + $0x110] sm:$0xff] (!%p329_p3)   ;;  %v501_v7 = vlaneseq (!%p329_p3)  ;;  %vm3301_vm4 = vmmov (!%p329_p3), 1  }
   0x9   : > { %s4214_s5 = smov (%p32_p4, %s4212_s5), 0  ;;  %332 = sbr.rel (%p329_p3) target bundleno = 434 (0x1b2), region = 44 }
   0xa   : > { %v3190_v1 = vld [vmem:[%s4195_s3 + $0x140] sm:$0xff] (!%p329_p3)   ;;  %2716 = vmatprep.subr.bf16.mxu0 (!%p329_p3), %v3189_v0  ;;  %p407_p6 = scmp.lt.s32.totalorder (!%p329_p3), %s3378_s8, 15  ;;  %v3193_v4 = vld [vmem:[%s4195_s3 + $0x148] sm:$0xff] (!%p329_p3)   ;;  %v3196_v8 = vld [vmem:[%s4195_s3 + $0x150] sm:$0xff] (!%p329_p3)   ;;  %v3417_v12 = vshrl.u32 (!%p329_p3), %v501_v7, 7  ;;  %s3437_s9 = sadd.s32 (!%p329_p3), 4294967295, %s3378_s8 }
   0xb   : > { %v3191_v2 = vld [vmem:[%s4195_s3 + $0xc0] sm:$0xff] (!%p329_p3)   ;;  %2956 = vmatprep.subr.bf16.mxu1 (!%p329_p3), %v3190_v1  ;;  %v3194_v5 = vld [vmem:[%s4195_s3 + $0xc8] sm:$0xff] (!%p329_p3)   ;;  %v3197_v9 = vld [vmem:[%s4195_s3 + $0xd0] sm:$0xff] (!%p329_p3)   ;;  %p417_p7 = scmp.gt.s32.totalorder (!%p329_p3), %s3437_s9, 0  ;;  %p2294_p8 = scmp.lt.s32.totalorder (!%p329_p3), %s3437_s9, 15  ;;  %vm2086_vm7 = vcmask (!%p329_p3), 1040384  }
   0xc   : > { %2717 = vmatpush3.bf16.msra.mxu0 (!%p329_p3), %v3191_v2  ;;  %2957 = vmatpush3.bf16.msra.mxu1 (!%p329_p3), %v3190_v1  ;;  %v3198_v10 = vld [vmem:[%s4195_s3 + $0x118] sm:$0xff] (!%p329_p3)   ;;  %v3201_v14 = vld [vmem:[%s4195_s3 + $0x120] sm:$0xff] (!%p329_p3)   ;;  %v503_v16 = vadd.s32 (!%p329_p3), 8, %v3417_v12  ;;  %v3204_v18 = vld [vmem:[%s4195_s3 + $0x128] sm:$0xff] (!%p329_p3)   ;;  %vm565_vm0 = vcmp.lt.s32.totalorder (!%p329_p3), %v3417_v12, 7  ;;  %vm586_vm1 = vcmp.ne.s32.totalorder (!%p329_p3), %v3417_v12, 0 }
   0xd   : > { %2718 = vmatprep.subr.bf16.mxu0 (!%p329_p3), %v3192_v3  ;;  %2958 = vmatprep.subr.bf16.mxu1 (!%p329_p3), %v3193_v4  ;;  %v3199_v11 = vld [vmem:[%s4195_s3 + $0x158] sm:$0xff] (!%p329_p3)   ;;  %v3202_v15 = vld [vmem:[%s4195_s3 + $0x160] sm:$0xff] (!%p329_p3)   ;;  %v3205_v19 = vld [vmem:[%s4195_s3 + $0x168] sm:$0xff] (!%p329_p3)   ;;  %s2508_s11 = sadd.s32 (!%p329_p3), 8, %s3378_s8  ;;  %p471_p9 = scmp.gt.s32.totalorder (!%p329_p3), %s3283_s24, 0  ;;  %vm524_vm3 = vcmp.lt.s32.totalorder (!%p329_p3), %v3417_v12, 1 }
   0xe   : > { %v3200_v13 = vld [vmem:[%s4195_s3 + $0xd8] sm:$0xff] (!%p329_p3)   ;;  %v3203_v17 = vld [vmem:[%s4195_s3 + $0xe0] sm:$0xff] (!%p329_p3)   ;;  %v3206_v20 = vld [vmem:[%s4195_s3 + $0xe8] sm:$0xff] (!%p329_p3)   ;;  %p3474_p10 = scmp.lt.s32.totalorder (!%p329_p3), %s2508_s11, 15  ;;  %vm613_vm2 = vcmp.ne.s32.totalorder (!%p329_p3), %v503_v16, 15  ;;  %p462_p11 = scmp.lt.s32.totalorder (!%p329_p3), %s3283_s24, 1 }
   0xf   : > { %v3207_v21 = vld [vmem:[%s4195_s3 + $0x130] sm:$0xff] (!%p329_p3)   ;;  %v3210_v24 = vld [vmem:[%s4195_s3 + $0x138] sm:$0xff] (!%p329_p3)   ;;  %vm3497_vm5 = vmpackc.low (!%p329_p3), %vm3301_vm4, %vm586_vm1 }
  0x10   : > { %s4216_s25 = smov (!%p405_p5, %s3287_s25), 1  ;;  %2719 = vmatpush3.bf16.msra.mxu0 %v3194_v5  ;;  %2959 = vmatpush3.bf16.msra.mxu1 %v3193_v4  ;;  %v3208_v22 = vld [vmem:[%s4195_s3 + $0x170] sm:$0xff]   ;;  %v3211_v25 = vld [vmem:[%s4195_s3 + $0x178] sm:$0xff]   ;;  %vm3506_vm6 = vmpackc.low %vm613_vm2, %vm3301_vm4  ;;  %s4220_s11 = smov (!%p3474_p10, %s2508_s11), 15 }
  0x11   : > { %s408_s17 = scalar_select %p407_p6, %s3378_s8, 15  ;;  %2720 = vmatprep.subr.bf16.mxu0 %v3195_v6  ;;  %2960 = vmatprep.subr.bf16.mxu1 %v3196_v8  ;;  %v3209_v23 = vld [vmem:[%s4195_s3 + $0xf0] sm:$0xff]   ;;  %v3212_v34 = vld [vmem:[%s4195_s3 + $0xf8] sm:$0xff]   ;;  %v3213_v46 = vld [vmem:[%s4195_s3 + $0x40] sm:$0xff]  }
  0x12   : > { %s3406_s29 = sshll.u32 %s4216_s25, 5  ;;  %v3214_v48 = vld [vmem:[%s4195_s3 + $0x1c0] sm:$0xff]   ;;  %v3217_v55 = vld [vmem:[%s4195_s3 + $0x48] sm:$0xff]   ;;  %s2313_s12 = sshll.u32 %s4216_s25, 1 }
  0x13   : > { %s2289_s10 = sshll.u32 %s408_s17, 1  ;;  %v3215_v50 = vld [vmem:[%s4195_s3] sm:$0xff]   ;;  %v3218_v63 = vld [vmem:[%s4195_s3 + $0x8] sm:$0xff]  }
  0x14   : > { %s3423_s18 = sadd.s32 %s3406_s29, %s2289_s10  ;;  %2721 = vmatpush3.bf16.msra.mxu0 %v3197_v9  ;;  %2961 = vmatpush3.bf16.msra.mxu1 %v3196_v8  ;;  %v3216_v54 = vld [vmem:[%s4195_s3 + $0x180] sm:$0xff]   ;;  %v3220_v3 = vld [vmem:[%s4195_s3 + $0x1c8] sm:$0xff]  }
  0x15   : > { %2722 = vmatprep.subr.bf16.mxu0 %v3198_v10  ;;  %2962 = vmatprep.subr.bf16.mxu1 %v3199_v11  ;;  %s2291_s22 = sshll.u32 %s3423_s18, 3  ;;  %v3219_v10 = vld [vmem:[%s4195_s3 + $0x50] sm:$0xff]  }
  0x16   : > { %s418_s19 = scalar_select %p417_p7, %s3437_s9, 0 }
  0x17   : > { %s3462_s10 = scalar_lea.vmem %s4192_s0, %s2291_s22 }
  0x18   : > { %2723 = vmatpush3.bf16.msra.mxu0 %v3200_v13  ;;  %2963 = vmatpush3.bf16.msra.mxu1 %v3199_v11  ;;  %v485_v26 = vld [vmem:[%s3462_s10] sm:$0xff]  ;;  %v486_v27 = vld [vmem:[%s3462_s10 + $0x8] sm:$0xff]  ;;  %s4218_s19 = smov (!%p2294_p8, %s418_s19), 15  ;;  %v487_v32 = vld [vmem:[%s3462_s10 + $0x10] sm:$0xff] }
  0x19   : > { %2724 = vmatprep.subr.bf16.mxu0 %v3201_v14  ;;  %2964 = vmatprep.subr.bf16.mxu1 %v3202_v15  ;;  %v505_v28 = vrot.slane %v485_v26, 7  ;;  %v515_v29 = vrot.slane %v486_v27, 7  ;;  %v546_v30 = vrot.slane %v485_v26, 1  ;;  %v556_v31 = vrot.slane %v486_v27, 1  ;;  %v488_v33 = vld [vmem:[%s3462_s10 + $0x18] sm:$0xff]  ;;  %s439_s22 = scalar_select %p3474_p10, %s4220_s11, 15 }
  0x1a   : > { %v3493_v35 = vpack.c.bf16 %v486_v27, %v485_v26  ;;  %v547_v37 = vrot.slane %v487_v32, 1  ;;  %v557_v38 = vrot.slane %v488_v33, 1  ;;  %v506_v49 = vrot.slane %v487_v32, 7  ;;  %v3554_v56 = vld [vmem:[%s3462_s10 + $0x20] sm:$0xff]  ;;  %v490_v57 = vld [vmem:[%s3462_s10 + $0x28] sm:$0xff]  ;;  %v3565_v61 = vld [vmem:[%s3462_s10 + $0x30] sm:$0xff] }
  0x1b   : > { %v567_v39 = vsel %vm565_vm0, %v546_v30, %v556_v31  ;;  %v577_v40 = vsel %vm565_vm0, %v556_v31, %v546_v30  ;;  %v526_v42 = vsel %vm524_vm3, %v505_v28, %v515_v29  ;;  %v536_v44 = vsel %vm524_vm3, %v515_v29, %v505_v28  ;;  %s3559_s21 = scalar_select %p471_p9, 1, 0  ;;  %v3568_v62 = vld [vmem:[%s3462_s10 + $0x38] sm:$0xff]  ;;  %v3222_v11 = vld [vmem:[%s4195_s3 + $0x188] sm:$0xff]  }
  0x1c   : > { %2725 = vmatpush3.bf16.msra.mxu0 %v3203_v17  ;;  %2965 = vmatpush3.bf16.msra.mxu1 %v3202_v15  ;;  %v3518_v43 = vpack.c.bf16 %v577_v40, %v567_v39  ;;  %v568_v45 = vsel %vm565_vm0, %v547_v37, %v557_v38  ;;  %v578_v47 = vsel %vm565_vm0, %v557_v38, %v547_v37  ;;  %v516_v51 = vrot.slane %v488_v33, 7  ;;  %s463_s17 = scalar_select %p462_p11, %s3283_s24, 1  ;;  %v3221_v17 = vld [vmem:[%s4195_s3 + $0x10] sm:$0xff]   ;;  %v3224_v28 = vld [vmem:[%s4195_s3 + $0x18] sm:$0xff]   ;;  %v3225_v39 = vld [vmem:[%s4195_s3 + $0x60] sm:$0xff]  }
  0x1d   : > { %2726 = vmatprep.subr.bf16.mxu0 %v3204_v18  ;;  %2966 = vmatprep.subr.bf16.mxu1 %v3205_v19  ;;  %v3540_v52 = vpack.c.bf16 %v526_v42, %v536_v44  ;;  %v3542_v53 = vpack.c.bf16 %v578_v47, %v568_v45  ;;  %v3561_v58 = vpack.c.bf16 %v488_v33, %v487_v32  ;;  %v548_v59 = vrot.slane %v3554_v56, 1  ;;  %v3620_v18 = vld [vmem:[%s3462_s10 + $0x40] sm:$0xff]  ;;  %s2299_s23 = sshll.u32 %s4218_s19, 1  ;;  %s3627_s8 = sshll.u32 %s439_s22, 1  ;;  %v3226_v33 = vld [vmem:[%s4195_s3 + $0x1d0] sm:$0xff]   ;;  %v3705_v47 = vld [vmem:[%s3462_s10 + $0x68] sm:$0xff] }
  0x1e   : > { %1020 = vmatprep.mubr.bf16.mxu0 %v3493_v35  ;;  %2972 = vmatprep.mubr.msk.bf16.mxu1 %vm3506_vm6, %v3518_v43  ;;  %v558_v60 = vrot.slane %v490_v57, 1  ;;  %v527_v0 = vsel %vm524_vm3, %v506_v49, %v516_v51  ;;  %v549_v1 = vrot.slane %v3565_v61, 1  ;;  %v559_v2 = vrot.slane %v3568_v62, 1  ;;  %s442_s30 = sadd.s32 %s3627_s8, %s3406_s29  ;;  %s3651_s22 = sadd.s32 %s2313_s12, %s463_s17  ;;  %v3228_v40 = vld [vmem:[%s4195_s3 + $0x190] sm:$0xff]   ;;  %v3227_v45 = vld [vmem:[%s4195_s3 + $0x20] sm:$0xff]  }
  0x1f   : > { %v537_v6 = vsel %vm524_vm3, %v516_v51, %v506_v49  ;;  %v507_v13 = vrot.slane %v3554_v56, 7  ;;  %v517_v14 = vrot.slane %v490_v57, 7  ;;  %s3686_s9 = sadd.s32 %s2299_s23, %s3406_s29  ;;  %v518_v49 = vrot.slane %v3568_v62, 7  ;;  %s473_s13 = scvt.s32.f32 %s3559_s21 }
  0x20   : > { %2727 = vmatpush3.bf16.msra.mxu0 %v3206_v20  ;;  %2967 = vmatpush3.bf16.msra.mxu1 %v3205_v19  ;;  %v569_v4 = vsel %vm565_vm0, %v548_v59, %v558_v60  ;;  %v579_v5 = vsel %vm565_vm0, %v558_v60, %v548_v59  ;;  %v570_v8 = vsel %vm565_vm0, %v549_v1, %v559_v2  ;;  %v3633_v20 = vld [vmem:[%s3462_s10 + $0x48] sm:$0xff]  ;;  %s2301_s16 = sshll.u32 %s3686_s9, 3  ;;  %s2308_s17 = sshll.u32 %s442_s30, 3 }
  0x21   : > { %2728 = vmatprep.subr.bf16.mxu0 %v3207_v21  ;;  %2968 = vmatprep.subr.bf16.mxu1 %v3208_v22  ;;  %v3592_v7 = vpack.c.bf16 %v579_v5, %v569_v4  ;;  %v580_v9 = vsel %vm565_vm0, %v559_v2, %v549_v1  ;;  %v3612_v15 = vpack.c.bf16 %v527_v0, %v537_v6  ;;  %v550_v21 = vrot.slane %v3620_v18, 1  ;;  %v3230_v0 = vld [vmem:[%s4195_s3 + $0x28] sm:$0xff]   ;;  %s427_s12 = scalar_lea.vmem %s4193_s1, %s2301_s16  ;;  %v3234_v6 = vld [vmem:[%s4195_s3 + $0x198] sm:$0xff]   ;;  %s444_s30 = scalar_lea.vmem %s4194_s2, %s2308_s17 }
  0x22   : > { %v3614_v16 = vpack.c.bf16 %v580_v9, %v570_v8  ;;  %v3630_v19 = vpack.c.bf16 %v490_v57, %v3554_v56  ;;  %v528_v29 = vsel %vm524_vm3, %v507_v13, %v517_v14  ;;  %v538_v32 = vsel %vm524_vm3, %v517_v14, %v507_v13  ;;  %v3720_v56 = vld [vmem:[%s3462_s10 + $0x78] sm:$0xff]  ;;  %v3229_v57 = vld [vmem:[%s4195_s3 + $0x68] sm:$0xff]   ;;  %v3231_v9 = vld [vmem:[%s4195_s3 + $0x70] sm:$0xff]   ;;  %s480_s20 = scalar_select %p462_p11, 1, 0 }
  0x23   : > { %v3694_v42 = vpack.c.bf16 %v528_v29, %v538_v32  ;;  %v563_v60 = vrot.slane %v3720_v56, 1  ;;  %v474_v8 = vstv %s473_s13  ;;  %v509_v13 = vrot.slane %v3620_v18, 7  ;;  %v3235_v29 = vld [vmem:[%s4195_s3 + $0x78] sm:$0xff]   ;;  %s2312_s24 = sshll.u32 %s3423_s18, 2  ;;  %s2314_s18 = sshll.u32 %s3651_s22, 1 }
  0x24   : > { %2729 = vmatpush3.bf16.msra.mxu0 %v3209_v23  ;;  %2969 = vmatpush3.bf16.msra.mxu1 %v3208_v22  ;;  %v3637_v22 = vld [vmem:[%s3462_s10 + $0x50] sm:$0xff]  ;;  %v3640_v23 = vld [vmem:[%s3462_s10 + $0x58] sm:$0xff]  ;;  %s481_s9 = scvt.s32.f32 %s480_s20  ;;  %s4148_s16 = scalar_lea.vmem %s4198_s6, %s2312_s24 }
  0x25   : > { %2730 = vmatprep.subr.bf16.mxu0 %v3210_v24  ;;  %2970 = vmatprep.subr.bf16.mxu1 %v3211_v25  ;;  %v3223_v24 = vld [vmem:[%s4195_s3 + $0x58] sm:$0xff]   ;;  %v551_v26 = vrot.slane %v3637_v22, 1  ;;  %v561_v27 = vrot.slane %v3640_v23, 1  ;;  %s467_s13 = scalar_lea.vmem %s4199_s7, %s2314_s18 }
  0x27   : > { %v572_v37 = vsel %vm565_vm0, %v551_v26, %v561_v27  ;;  %v582_v38 = vsel %vm565_vm0, %v561_v27, %v551_v26  ;;  %v3780_v26 = vpack.c.bf16 %v3633_v20, %v3620_v18  ;;  %v3238_v18 = vld [vmem:[%s4195_s3 + $0x1a0] sm:$0xff]  }
  0x28   : > { %2731 = vmatpush3.bf16.msra.mxu0 %v3212_v34  ;;  %2971 = vmatpush3.bf16.msra.mxu1 %v3211_v25  ;;  %v560_v25 = vrot.slane %v3633_v20, 1  ;;  %v3696_v44 = vpack.c.bf16 %v582_v38, %v572_v37  ;;  %v3236_v37 = vld [vmem:[%s4195_s3 + $0x38] sm:$0xff]  }
  0x29   : > { %2796 = vmatprep.subr.bf16.mxu1 %v3213_v46  ;;  %2876 = vmatprep.subr.bf16.mxu0 %v3214_v48  ;;  %v3702_v46 = vld [vmem:[%s3462_s10 + $0x60] sm:$0xff]  ;;  %v508_v48 = vrot.slane %v3565_v61, 7 }
  0x2a   : > { %v571_v30 = vsel %vm565_vm0, %v550_v21, %v560_v25  ;;  %v581_v31 = vsel %vm565_vm0, %v560_v25, %v550_v21  ;;  %v552_v51 = vrot.slane %v3702_v46, 1  ;;  %v470_v21 = vld [vmem:[%s427_s12 + $0x8] sm:$0xff]  ;;  %v519_v25 = vrot.slane %v3633_v20, 7 }
  0x2b   : > { %2574 = vmatmul.mubr.msk.bf16.vlgmr.msra.gmra.mrb[0].mxu0 %vm3497_vm5, %v3540_v52  ;;  %2973 = vmatmul.mubr.msk.bf16.vlgmr.msra.gmra.mrb[0].mxu1 %vm3506_vm6, %v3542_v53  ;;  %v3674_v34 = vpack.c.bf16 %v581_v31, %v571_v30  ;;  %v529_v2 = vsel %vm524_vm3, %v508_v48, %v518_v49  ;;  %v3782_v27 = vmul.f32 %v474_v8, %v470_v21  ;;  %v477_v21 = vld [vmem:[%s444_s30] sm:$0xff] }
  0x2c   : > { %2797 = vmatpush3.bf16.msra.mxu1 %v3215_v50  ;;  %2877 = vmatpush3.bf16.msra.mxu0 %v3216_v54  ;;  %v3712_v50 = vpack.c.bf16 %v3568_v62, %v3565_v61  ;;  %v562_v54 = vrot.slane %v3705_v47, 1  ;;  %v3232_v61 = vld [vmem:[%s4195_s3 + $0x1d8] sm:$0xff]   ;;  %v530_v20 = vsel %vm524_vm3, %v509_v13, %v519_v25 }
  0x2d   : > { %2798 = vmatprep.subr.bf16.mxu1 %v3217_v55  ;;  %1028 = vmatprep.mubr.bf16.mxu0 %v3561_v58  ;;  %v3717_v55 = vld [vmem:[%s3462_s10 + $0x70] sm:$0xff]  ;;  %v514_v31 = vrot.slane %v3782_v27, 7 }
  0x2e   : > { %2976 = vmatprep.mubr.msk.bf16.mxu1 %vm3506_vm6, %v3592_v7  ;;  %2878 = vmatprep.subr.bf16.mxu0 %v3220_v3  ;;  %v553_v59 = vrot.slane %v3717_v55, 1  ;;  %v573_v62 = vsel %vm565_vm0, %v552_v51, %v562_v54  ;;  %v539_v3 = vsel %vm524_vm3, %v518_v49, %v508_v48  ;;  %v3240_v48 = vld [vmem:[%s4195_s3 + $0x1a8] sm:$0xff]  }
  0x2f   : > { %v3771_v14 = vpack.c.bf16 %v529_v2, %v539_v3  ;;  %v3865_v3 = vpack.c.bf16 %v3705_v47, %v3702_v46 }
  0x30   : > { %2799 = vmatpush3.bf16.msra.mxu1 %v3218_v63  ;;  %2879 = vmatpush3.bf16.msra.mxu0 %v3222_v11  ;;  %v583_v63 = vsel %vm565_vm0, %v562_v54, %v552_v51  ;;  %v574_v4 = vsel %vm565_vm0, %v553_v59, %v563_v60  ;;  %v584_v5 = vsel %vm565_vm0, %v563_v60, %v553_v59  ;;  %v469_v11 = vld [vmem:[%s427_s12] sm:$0xff]  ;;  %v510_v54 = vrot.slane %v3637_v22, 7  ;;  %v3242_v60 = vld [vmem:[%s4195_s3 + $0x1f0] sm:$0xff]  }
  0x31   : > { %2800 = vmatprep.subr.bf16.mxu1 %v3219_v10  ;;  %2880 = vmatprep.subr.bf16.mxu0 %v3226_v33  ;;  %v3744_v1 = vpack.c.bf16 %v583_v63, %v573_v62  ;;  %v3233_v10 = vld [vmem:[%s4195_s3 + $0x30] sm:$0xff]   ;;  %v3239_v33 = vld [vmem:[%s4195_s3 + $0x1e8] sm:$0xff]   ;;  %v520_v59 = vrot.slane %v3640_v23, 7 }
  0x32   : > { %v3244_v62 = vld [vmem:[%s4195_s3 + $0x88] sm:$0xff]  }
  0x33   : > { %2577 = vmatmul.mubr.msk.bf16.gmra.mrb[4].mxu0 %vm3497_vm5, %v3612_v15  ;;  %2977 = vmatmul.mubr.msk.bf16.gmra.mrb[4].mxu1 %vm3506_vm6, %v3614_v16  ;;  %v541_v63 = vsel %vm524_vm3, %v520_v59, %v510_v54 }
  0x34   : > { %2801 = vmatpush3.bf16.msra.mxu1 %v3221_v17  ;;  %1036 = vmatprep.mubr.bf16.mxu0 %v3630_v19  ;;  %v3773_v17 = vpack.c.bf16 %v584_v5, %v574_v4  ;;  %v511_v4 = vrot.slane %v3702_v46, 7  ;;  %v521_v5 = vrot.slane %v3705_v47, 7 }
  0x35   : > { %2802 = vmatprep.subr.bf16.mxu1 %v3223_v24  ;;  %2980 = vmatprep.mubr.msk.bf16.mxu1 %vm3506_vm6, %v3674_v34  ;;  %v3775_v24 = vmul.f32 %v474_v8, %v469_v11  ;;  %v3249_v8 = vld [vmem:[%s4195_s3 + $0x98] sm:$0xff]   ;;  %v512_v11 = vrot.slane %v3717_v55, 7 }
  0x36   : > { %2881 = vmatpush3.bf16.msra.mxu0 %v3228_v40  ;;  %v540_v40 = vsel %vm524_vm3, %v519_v25, %v509_v13  ;;  %v532_v46 = vsel %vm524_vm3, %v511_v4, %v521_v5  ;;  %v542_v47 = vsel %vm524_vm3, %v521_v5, %v511_v4  ;;  %v522_v13 = vrot.slane %v3720_v56, 7  ;;  %v478_v25 = vld [vmem:[%s444_s30 + $0x8] sm:$0xff] }
  0x37   : > { %2882 = vmatprep.subr.bf16.mxu0 %v3232_v61  ;;  %v504_v30 = vrot.slane %v3775_v24, 7  ;;  %v658_v32 = vpack.c.bf16 %v3782_v27, %v3775_v24  ;;  %v3824_v49 = vpack.c.bf16 %v530_v20, %v540_v40  ;;  %v3243_v61 = vld [vmem:[%s4195_s3 + $0x1b0] sm:$0xff]  }
  0x38   : > { %2803 = vmatpush3.bf16.msra.mxu1 %v3224_v28  ;;  %v3237_v28 = vld [vmem:[%s4195_s3 + $0x1e0] sm:$0xff]  }
  0x39   : > { %2804 = vmatprep.subr.bf16.mxu1 %v3225_v39  ;;  %v525_v38 = vsel %vm524_vm3, %v504_v30, %v514_v31  ;;  %v535_v39 = vsel %vm524_vm3, %v514_v31, %v504_v30  ;;  %v533_v30 = vsel %vm524_vm3, %v512_v11, %v522_v13  ;;  %v543_v31 = vsel %vm524_vm3, %v522_v13, %v512_v11 }
  0x3a   : > { %2883 = vmatpush3.bf16.msra.mxu0 %v3234_v6  ;;  %v2621_v51 = vpack.c.bf16 %v525_v38, %v535_v39  ;;  %v3872_v6 = vld [vmem:[%s4195_s3 + $0x200] sm:$0xff]   ;;  %v3935_v38 = vpack.c.bf16 %v533_v30, %v543_v31 }
  0x3b   : > { %2580 = vmatmul.mubr.msk.bf16.gmra.mrb[8].mxu0 %vm3497_vm5, %v3694_v42  ;;  %2981 = vmatmul.mubr.msk.bf16.gmra.mrb[8].mxu1 %vm3506_vm6, %v3696_v44 }
  0x3c   : > { %2805 = vmatpush3.bf16.msra.mxu1 %v3227_v45  ;;  %1044 = vmatprep.mubr.bf16.mxu0 %v3712_v50  ;;  %v3241_v45 = vld [vmem:[%s4195_s3 + $0x80] sm:$0xff]  }
  0x3d   : > { %2806 = vmatprep.subr.bf16.mxu1 %v3229_v57  ;;  %2984 = vmatprep.mubr.msk.bf16.mxu1 %vm3506_vm6, %v3744_v1  ;;  %v3829_v57 = vpack.c.bf16 %v3640_v23, %v3637_v22  ;;  %v3245_v22 = vld [vmem:[%s4195_s3 + $0x1f8] sm:$0xff]   ;;  %v531_v23 = vsel %vm524_vm3, %v510_v54, %v520_v59 }
  0x3e   : > { %2884 = vmatprep.subr.bf16.mxu0 %v3237_v28  ;;  %v3861_v2 = vpack.c.bf16 %v531_v23, %v541_v63  ;;  %v3253_v28 = vld [vmem:[%s4195_s3 + $0xa8] sm:$0xff]   ;;  %v3256_v59 = vld [vmem:[%s4195_s3 + $0xb8] sm:$0xff]  }
  0x3f   : > { %2885 = vmatpush3.bf16.msra.mxu0 %v3238_v18 }
  0x40   : > { %2807 = vmatpush3.bf16.msra.mxu1 %v3230_v0  ;;  %2886 = vmatprep.subr.bf16.mxu0 %v3239_v33  ;;  %v3246_v0 = vld [vmem:[%s4195_s3 + $0x1b8] sm:$0xff]   ;;  %v3254_v33 = vld [vmem:[%s4195_s3 + $0xb0] sm:$0xff]  }
  0x41   : > { %2808 = vmatprep.subr.bf16.mxu1 %v3231_v9  ;;  %v3901_v9 = vpack.c.bf16 %v532_v46, %v542_v47 }
  0x43   : > { %2583 = vmatmul.mubr.msk.bf16.gmra.mrb[12].mxu0 %vm3497_vm5, %v3771_v14  ;;  %2985 = vmatmul.mubr.msk.bf16.gmra.mrb[12].mxu1 %vm3506_vm6, %v3773_v17 }
  0x44   : > { %2809 = vmatpush3.bf16.msra.mxu1 %v3233_v10  ;;  %1052 = vmatprep.mubr.bf16.mxu0 %v3780_v26  ;;  %v3905_v10 = vpack.c.bf16 %v3720_v56, %v3717_v55 }
  0x45   : > { %2810 = vmatprep.subr.bf16.mxu1 %v3235_v29  ;;  %1358 = vmatprep.mubr.bf16.mxu1 %v658_v32  ;;  %v482_v29 = vstv %s481_s9 }
  0x46   : > { %2887 = vmatpush3.bf16.msra.mxu0 %v3240_v48  ;;  %v3918_v55 = vmul.f32 %v482_v29, %v477_v21  ;;  %v3920_v56 = vmul.f32 %v482_v29, %v478_v25 }
  0x47   : > { %2888 = vmatprep.subr.bf16.mxu0 %v3242_v60  ;;  %v3250_v60 = vld [vmem:[%s4195_s3 + $0x208] sm:$0xff]  }
  0x48   : > { %2811 = vmatpush3.bf16.msra.mxu1 %v3236_v37  ;;  %v513_v32 = vrot.slane %v3918_v55, 7  ;;  %v523_v18 = vrot.slane %v3920_v56, 7  ;;  %v554_v20 = vrot.slane %v3918_v55, 1  ;;  %v564_v37 = vrot.slane %v3920_v56, 1 }
  0x49   : > { %2988 = vmatprep.subr.bf16.mxu1 %v3241_v45  ;;  %v667_v12 = vpack.c.bf16 %v3920_v56, %v3918_v55 }
  0x4a   : > { %2889 = vmatpush3.bf16.msra.mxu0 %v3243_v61  ;;  %v3939_v39 = vsel %vm524_vm3, %v513_v32, %v523_v18  ;;  %v3943_v40 = vsel %vm524_vm3, %v523_v18, %v513_v32  ;;  %v3949_v48 = vsel %vm565_vm0, %v554_v20, %v564_v37  ;;  %v3255_v61 = vld [vmem:[%s4195_s3 + $0x218] sm:$0xff]  }
  0x4b   : > { %2586 = vmatmul.mubr.msk.bf16.gmra.mrb[16].mxu0 %vm3497_vm5, %v3824_v49  ;;  %2622 = vmatmul.mubr.msk.bf16.vlgmr.msra.gmra.mrb[16].mxu1 %vm3497_vm5, %v2621_v51  ;;  %v3953_v51 = vsel %vm565_vm0, %v564_v37, %v554_v20 }
  0x4c   : > { %1060 = vmatprep.mubr.bf16.mxu0 %v3829_v57  ;;  %1366 = vmatprep.mubr.bf16.mxu1 %v3493_v35  ;;  %v3247_v35 = vld [vmem:[%s4195_s3 + $0x90] sm:$0xff]   ;;  %v2714_v54 = vpack.c.bf16 %v3953_v51, %v3949_v48 }
  0x4d   : > { %2989 = vmatpush3.bf16.msra.mxu1 %v3241_v45  ;;  %2890 = vmatprep.subr.bf16.mxu0 %v3245_v22  ;;  %v2690_v45 = vpack.c.bf16 %v3939_v39, %v3943_v40 }
  0x4e   : > { %2990 = vmatprep.subr.bf16.mxu1 %v3244_v62  ;;  %2891 = vmatpush3.bf16.msra.mxu0 %v3246_v0 }
  0x4f   : > { %3020 = vmatprep.subr.bf16.mxu0 %v3872_v6 }
  0x51   : > { %2991 = vmatpush3.bf16.msra.mxu1 %v3244_v62  ;;  %v555_v62 = vrot.slane %v3782_v27, 1  ;;  %v3259_v27 = vld [vmem:[%s4195_s3 + $0x230] sm:$0xff]  }
  0x52   : > { %2992 = vmatprep.subr.bf16.mxu1 %v3247_v35 }
  0x53   : > { %2589 = vmatmul.mubr.msk.bf16.gmra.mrb[20].mxu0 %vm3497_vm5, %v3861_v2  ;;  %2625 = vmatmul.mubr.msk.bf16.gmra.mrb[20].mxu1 %vm3497_vm5, %v3540_v52  ;;  %v3251_v52 = vld [vmem:[%s4195_s3 + $0xa0] sm:$0xff]  }
  0x54   : > { %1068 = vmatprep.mubr.bf16.mxu0 %v3865_v3  ;;  %1374 = vmatprep.mubr.bf16.mxu1 %v3561_v58 }
  0x55   : > { %2993 = vmatpush3.bf16.msra.mxu1 %v3247_v35 }
  0x56   : > { %2994 = vmatprep.subr.bf16.mxu1 %v3249_v8 }
  0x59   : > { %2995 = vmatpush3.bf16.msra.mxu1 %v3249_v8 }
  0x5a   : > { %2996 = vmatprep.subr.bf16.mxu1 %v3251_v52 }
  0x5b   : > { %2592 = vmatmul.mubr.msk.bf16.gmra.mrb[24].mxu0 %vm3497_vm5, %v3901_v9  ;;  %2628 = vmatmul.mubr.msk.bf16.gmra.mrb[24].mxu1 %vm3497_vm5, %v3612_v15 }
  0x5c   : > { %1076 = vmatprep.mubr.bf16.mxu0 %v3905_v10  ;;  %1382 = vmatprep.mubr.bf16.mxu1 %v3630_v19 }
  0x5d   : > { %2997 = vmatpush3.bf16.msra.mxu1 %v3251_v52 }
  0x5e   : > { %2998 = vmatprep.subr.bf16.mxu1 %v3253_v28 }
  0x61   : > { %2999 = vmatpush3.bf16.msra.mxu1 %v3253_v28 }
  0x62   : > { %3000 = vmatprep.subr.bf16.mxu1 %v3254_v33 }
  0x63   : > { %2595 = vmatmul.mubr.msk.bf16.gmra.mrb[28].mxu0 %vm3497_vm5, %v3935_v38  ;;  %2631 = vmatmul.mubr.msk.bf16.gmra.mrb[28].mxu1 %vm3497_vm5, %v3694_v42 }
  0x64   : > { %1390 = vmatprep.mubr.bf16.mxu1 %v3712_v50  ;;  %1770 = vmatprep.mubr.bf16.mxu0 %v3561_v58  ;;  %v3252_v58 = vld [vmem:[%s4195_s3 + $0x210] sm:$0xff]  }
  0x65   : > { %3001 = vmatpush3.bf16.msra.mxu1 %v3254_v33 }
  0x66   : > { %3002 = vmatprep.subr.bf16.mxu1 %v3256_v59 }
  0x69   : > { %3003 = vmatpush3.bf16.msra.mxu1 %v3256_v59 }
  0x6a   : > { %3052 = vmatprep.subr.bf16.mxu1 %v3872_v6 }
  0x6b   : > { %2634 = vmatmul.mubr.msk.bf16.gmra.mrb[32].mxu1 %vm3497_vm5, %v3771_v14  ;;  %2670 = vmatmul.mubr.msk.bf16.vlgmr.msra.gmra.mrb[32].mxu0 %vm3497_vm5, %v3612_v15  ;;  %v3257_v15 = vld [vmem:[%s4195_s3 + $0x220] sm:$0xff]  }
  0x6c   : > { %3021 = vmatpush3.bf16.msra.mxu0 %v3872_v6  ;;  %1398 = vmatprep.mubr.bf16.mxu1 %v3780_v26 }
  0x6d   : > { %1778 = vmatprep.mubr.bf16.mxu0 %v3630_v19  ;;  %3022 = vmatprep.subr.bf16.mxu0 %v3250_v60  ;;  %v545_v19 = vrot.slane %v3775_v24, 1 }
  0x6f   : > { %v576_v24 = vsel %vm565_vm0, %v555_v62, %v545_v19 }
  0x70   : > { %3023 = vmatpush3.bf16.msra.mxu0 %v3250_v60 }
  0x71   : > { %3024 = vmatprep.subr.bf16.mxu0 %v3252_v58 }
  0x73   : > { %2637 = vmatmul.mubr.msk.bf16.gmra.mrb[36].mxu1 %vm3497_vm5, %v3824_v49  ;;  %2673 = vmatmul.mubr.msk.bf16.gmra.mrb[36].mxu0 %vm3497_vm5, %v3694_v42  ;;  %v3258_v42 = vld [vmem:[%s4195_s3 + $0x228] sm:$0xff]  }
  0x74   : > { %1406 = vmatprep.mubr.bf16.mxu1 %v3829_v57  ;;  %1786 = vmatprep.mubr.bf16.mxu0 %v3712_v50  ;;  %v566_v50 = vsel %vm565_vm0, %v545_v19, %v555_v62 }
  0x75   : > { %3025 = vmatpush3.bf16.msra.mxu0 %v3252_v58  ;;  %v2645_v22 = vpack.c.bf16 %v576_v24, %v566_v50 }
  0x76   : > { %3026 = vmatprep.subr.bf16.mxu0 %v3255_v61 }
  0x79   : > { %3027 = vmatpush3.bf16.msra.mxu0 %v3255_v61 }
  0x7a   : > { %3028 = vmatprep.subr.bf16.mxu0 %v3257_v15 }
  0x7b   : > { %2640 = vmatmul.mubr.msk.bf16.gmra.mrb[40].mxu1 %vm3497_vm5, %v3861_v2  ;;  %2676 = vmatmul.mubr.msk.bf16.gmra.mrb[40].mxu0 %vm3497_vm5, %v3771_v14  ;;  %v3260_v14 = vld [vmem:[%s4195_s3 + $0x238] sm:$0xff]  }
  0x7c   : > { %1414 = vmatprep.mubr.bf16.mxu1 %v3865_v3  ;;  %1794 = vmatprep.mubr.bf16.mxu0 %v3780_v26 }
  0x7d   : > { %3029 = vmatpush3.bf16.msra.mxu0 %v3257_v15 }
  0x7e   : > { %3030 = vmatprep.subr.bf16.mxu0 %v3258_v42 }
  0x81   : > { %3031 = vmatpush3.bf16.msra.mxu0 %v3258_v42 }
  0x82   : > { %3032 = vmatprep.subr.bf16.mxu0 %v3259_v27 }
  0x83   : > { %2643 = vmatmul.mubr.msk.bf16.gmra.mrb[44].mxu1 %vm3497_vm5, %v3901_v9  ;;  %2679 = vmatmul.mubr.msk.bf16.gmra.mrb[44].mxu0 %vm3497_vm5, %v3824_v49 }
  0x84   : > { %3004 = vmatprep.mubr.msk.bf16.mxu1 %vm3506_vm6, %v2645_v22  ;;  %1802 = vmatprep.mubr.bf16.mxu0 %v3829_v57 }
  0x85   : > { %3033 = vmatpush3.bf16.msra.mxu0 %v3259_v27 }
  0x86   : > { %3034 = vmatprep.subr.bf16.mxu0 %v3260_v14 }
  0x89   : > { %3035 = vmatpush3.bf16.msra.mxu0 %v3260_v14 }
  0x8b   : > { %3005 = vmatmul.mubr.msk.bf16.vlgmr.msra.gmra.mrb[0].mxu1 %vm3506_vm6, %v3518_v43  ;;  %2682 = vmatmul.mubr.msk.bf16.gmra.mrb[48].mxu0 %vm3497_vm5, %v3861_v2 }
  0x8c   : > { %3060 = vmatpush3.bf16.msra.mxu1 %v3872_v6  ;;  %3008 = vmatprep.mubr.msk.bf16.mxu1 %vm3506_vm6, %v3542_v53 }
  0x8d   : > { %3053 = vmatprep.subr.bf16.mxu1 %v3250_v60  ;;  %1810 = vmatprep.mubr.bf16.mxu0 %v3865_v3 }
  0x90   : > { %3061 = vmatpush3.bf16.msra.mxu1 %v3250_v60 }
  0x91   : > { %3054 = vmatprep.subr.bf16.mxu1 %v3252_v58 }
  0x93   : > { %3009 = vmatmul.mubr.msk.bf16.gmra.mrb[4].mxu1 %vm3506_vm6, %v3592_v7  ;;  %2685 = vmatmul.mubr.msk.bf16.gmra.mrb[52].mxu0 %vm3497_vm5, %v3901_v9 }
  0x94   : > { %3062 = vmatpush3.bf16.msra.mxu1 %v3252_v58  ;;  %3012 = vmatprep.mubr.msk.bf16.mxu1 %vm3506_vm6, %v3614_v16 }
  0x95   : > { %3055 = vmatprep.subr.bf16.mxu1 %v3255_v61  ;;  %1818 = vmatprep.mubr.bf16.mxu0 %v3905_v10 }
  0x98   : > { %3063 = vmatpush3.bf16.msra.mxu1 %v3255_v61 }
  0x99   : > { %3056 = vmatprep.subr.bf16.mxu1 %v3257_v15 }
  0x9b   : > { %3013 = vmatmul.mubr.msk.bf16.gmra.mrb[8].mxu1 %vm3506_vm6, %v3674_v34  ;;  %2688 = vmatmul.mubr.msk.bf16.gmra.mrb[56].mxu0 %vm3497_vm5, %v3935_v38 }
  0x9c   : > { %3064 = vmatpush3.bf16.msra.mxu1 %v3257_v15  ;;  %3016 = vmatprep.mubr.msk.bf16.mxu1 %vm3506_vm6, %v3696_v44 }
  0x9d   : > { %3057 = vmatprep.subr.bf16.mxu1 %v3258_v42  ;;  %1826 = vmatprep.mubr.bf16.mxu0 %v667_v12 }
  0xa0   : > { %3065 = vmatpush3.bf16.msra.mxu1 %v3258_v42 }
  0xa1   : > { %3058 = vmatprep.subr.bf16.mxu1 %v3259_v27 }
  0xa3   : > { %3017 = vmatmul.mubr.msk.bf16.gmra.mrb[12].mxu1 %vm3506_vm6, %v3744_v1  ;;  %2691 = vmatmul.mubr.msk.bf16.gmra.mrb[60].mxu0 %vm3497_vm5, %v2690_v45 }
  0xa4   : > { %3066 = vmatpush3.bf16.msra.mxu1 %v3259_v27  ;;  %3036 = vmatprep.mubr.msk.bf16.mxu0 %vm3506_vm6, %v3542_v53 }
  0xa5   : > { %3059 = vmatprep.subr.bf16.mxu1 %v3260_v14  ;;  %3044 = vmatprep.mubr.msk.bf16.mxu1 %vm3506_vm6, %v3696_v44 }
  0xa8   : > { %3067 = vmatpush3.bf16.msra.mxu1 %v3260_v14 }
  0xab   : > { %3037 = vmatmul.mubr.msk.bf16.vlgmr.msra.gmra.mrb[64].mxu0 %vm3506_vm6, %v3592_v7  ;;  %3045 = vmatmul.mubr.msk.bf16.vlgmr.msra.gmra.mrb[8].mxu1 %vm3506_vm6, %v3744_v1 }
  0xac   : > { %3040 = vmatprep.mubr.msk.bf16.mxu0 %vm3506_vm6, %v3614_v16  ;;  %3048 = vmatprep.mubr.msk.bf16.mxu1 %vm3506_vm6, %v3773_v17 }
  0xb3   : > { %3041 = vmatmul.mubr.msk.bf16.gmra.mrb[68].mxu0 %vm3506_vm6, %v3674_v34  ;;  %3049 = vmatmul.mubr.msk.bf16.gmra.mrb[12].mxu1 %vm3506_vm6, %v2714_v54 }
  0xfe   : > { %v2732_v36 = vpop.f32.mrb[0].mxu0 }
  0xff   : > { %v2733_v43 = vpop.f32.mrb[1].mxu0 }
 0x100   : > { %v2734_v53 = vadd.f32 %v2733_v43, %v2732_v36  ;;  %v2735_v7 = vpop.f32.mrb[2].mxu0 }
 0x101   : > { %v2736_v44 = vpop.f32.mrb[3].mxu0 }
 0x102   : > { %v2737_v16 = vadd.f32 %v2736_v44, %v2735_v7 }
 0x106   : > { %v2738_v1 = vpop.f32.mrb[4].mxu0 }
 0x107   : > { %v2739_v26 = vpop.f32.mrb[5].mxu0 }
 0x108   : > { %v2740_v49 = vadd.f32 %v2739_v26, %v2738_v1  ;;  %v2741_v17 = vpop.f32.mrb[6].mxu0 }
 0x109   : > { %v2742_v57 = vpop.f32.mrb[7].mxu0 }
 0x10a   : > { %v2743_v23 = vadd.f32 %v2742_v57, %v2741_v17 }
 0x10e   : > { %v2744_v63 = vpop.f32.mrb[8].mxu0 }
 0x10f   : > { %v2745_v34 = vpop.f32.mrb[9].mxu0 }
 0x110   : > { %v2746_v0 = vadd.f32 %v2745_v34, %v2744_v63  ;;  %v2747_v35 = vpop.f32.mrb[10].mxu0 }
 0x111   : > { %v2748_v2 = vpop.f32.mrb[11].mxu0 }
 0x112   : > { %v2749_v3 = vadd.f32 %v2748_v2, %v2747_v35 }
 0x116   : > { %v2750_v41 = vpop.f32.mrb[12].mxu0 }
 0x117   : > { %v2751_v4 = vpop.f32.mrb[13].mxu0 }
 0x118   : > { %v2752_v5 = vadd.f32 %v2751_v4, %v2750_v41  ;;  %v2753_v6 = vpop.f32.mrb[14].mxu0 }
 0x119   : > { %v2754_v8 = vpop.f32.mrb[15].mxu0 }
 0x11a   : > { %v2755_v46 = vadd.f32 %v2754_v8, %v2753_v6 }
 0x11e   : > { %v2756_v47 = vpop.f32.mrb[16].mxu0  ;;  %v2812_v52 = vpop.f32.mrb[16].mxu1 }
 0x11f   : > { %v2757_v9 = vpop.f32.mrb[17].mxu0  ;;  %v2813_v10 = vpop.f32.mrb[17].mxu1 }
 0x120   : > { %v2758_v11 = vadd.f32 %v2757_v9, %v2756_v47  ;;  %v2814_v13 = vadd.f32 %v2813_v10, %v2812_v52  ;;  %v2759_v21 = vpop.f32.mrb[18].mxu0  ;;  %v2815_v25 = vpop.f32.mrb[18].mxu1 }
 0x121   : > { %v2760_v28 = vpop.f32.mrb[19].mxu0  ;;  %v2816_v29 = vpop.f32.mrb[19].mxu1 }
 0x122   : > { %v2761_v55 = vadd.f32 %v2760_v28, %v2759_v21  ;;  %v2817_v56 = vadd.f32 %v2816_v29, %v2815_v25  ;;  %v4096_v30 = vadd.f32 %v2814_v13, %v2734_v53 }
 0x124   : > { %v4098_v31 = vadd.f32 %v2817_v56, %v2737_v16 }
 0x126   : > { %v2762_v32 = vpop.f32.mrb[20].mxu0  ;;  %v2818_v18 = vpop.f32.mrb[20].mxu1 }
 0x127   : > { %v2763_v20 = vpop.f32.mrb[21].mxu0  ;;  %v2819_v33 = vpop.f32.mrb[21].mxu1 }
 0x128   : > { %v2764_v37 = vadd.f32 %v2763_v20, %v2762_v32  ;;  %v2820_v38 = vadd.f32 %v2819_v33, %v2818_v18  ;;  %v2765_v39 = vpop.f32.mrb[22].mxu0  ;;  %v2821_v40 = vpop.f32.mrb[22].mxu1 }
 0x129   : > { %v2766_v45 = vpop.f32.mrb[23].mxu0  ;;  %v2822_v48 = vpop.f32.mrb[23].mxu1 }
 0x12a   : > { %v2767_v51 = vadd.f32 %v2766_v45, %v2765_v39  ;;  %v2823_v54 = vadd.f32 %v2822_v48, %v2821_v40  ;;  %v4100_v59 = vadd.f32 %v2820_v38, %v2740_v49 }
 0x12c   : > { %v4102_v60 = vadd.f32 %v2823_v54, %v2743_v23 }
 0x12e   : > { %v2768_v58 = vpop.f32.mrb[24].mxu0  ;;  %v2824_v61 = vpop.f32.mrb[24].mxu1 }
 0x12f   : > { %v2769_v15 = vpop.f32.mrb[25].mxu0  ;;  %v2825_v19 = vpop.f32.mrb[25].mxu1 }
 0x130   : > { %v2770_v62 = vadd.f32 %v2769_v15, %v2768_v58  ;;  %v2826_v42 = vadd.f32 %v2825_v19, %v2824_v61  ;;  %v2771_v50 = vpop.f32.mrb[26].mxu0  ;;  %v2827_v24 = vpop.f32.mrb[26].mxu1 }
 0x131   : > { %v2772_v27 = vpop.f32.mrb[27].mxu0  ;;  %v2828_v22 = vpop.f32.mrb[27].mxu1 }
 0x132   : > { %v2773_v14 = vadd.f32 %v2772_v27, %v2771_v50  ;;  %v2829_v12 = vadd.f32 %v2828_v22, %v2827_v24  ;;  %v4104_v36 = vadd.f32 %v2826_v42, %v2746_v0 }
 0x134   : > { %v4106_v43 = vadd.f32 %v2829_v12, %v2749_v3 }
 0x136   : > { %v2774_v53 = vpop.f32.mrb[28].mxu0  ;;  %v2830_v7 = vpop.f32.mrb[28].mxu1 }
 0x137   : > { %v2775_v44 = vpop.f32.mrb[29].mxu0  ;;  %v2831_v16 = vpop.f32.mrb[29].mxu1 }
 0x138   : > { %v2776_v1 = vadd.f32 %v2775_v44, %v2774_v53  ;;  %v2832_v26 = vadd.f32 %v2831_v16, %v2830_v7  ;;  %v2777_v49 = vpop.f32.mrb[30].mxu0  ;;  %v2833_v17 = vpop.f32.mrb[30].mxu1 }
 0x139   : > { %v2778_v57 = vpop.f32.mrb[31].mxu0  ;;  %v2834_v23 = vpop.f32.mrb[31].mxu1 }
 0x13a   : > { %v2779_v63 = vadd.f32 %v2778_v57, %v2777_v49  ;;  %v2835_v34 = vadd.f32 %v2834_v23, %v2833_v17  ;;  %v4108_v35 = vadd.f32 %v2832_v26, %v2752_v5 }
 0x13c   : > { %v4110_v2 = vadd.f32 %v2835_v34, %v2755_v46 }
 0x13e   : > { %v2836_v0 = vpop.f32.mrb[32].mxu1  ;;  %v2892_v41 = vpop.f32.mrb[32].mxu0 }
 0x13f   : > { %v2837_v3 = vpop.f32.mrb[33].mxu1  ;;  %v2893_v4 = vpop.f32.mrb[33].mxu0 }
 0x140   : > { %v2838_v6 = vadd.f32 %v2837_v3, %v2836_v0  ;;  %v4112_v8 = vadd.f32 %v2893_v4, %v2892_v41  ;;  %v2839_v47 = vpop.f32.mrb[34].mxu1  ;;  %v2895_v52 = vpop.f32.mrb[34].mxu0 }
 0x141   : > { %v2840_v9 = vpop.f32.mrb[35].mxu1  ;;  %v2896_v10 = vpop.f32.mrb[35].mxu0 }
 0x142   : > { %v3103_v13 = vadd.f32 %v2838_v6, %v2758_v11  ;;  %v2841_v21 = vadd.f32 %v2840_v9, %v2839_v47  ;;  %v2897_v25 = vadd.f32 %v2896_v10, %v2895_v52 }
 0x144   : > { %v3109_v28 = vadd.f32 %v2841_v21, %v2761_v55 }
 0x146   : > { %v2842_v29 = vpop.f32.mrb[36].mxu1  ;;  %v2898_v5 = vpop.f32.mrb[36].mxu0 }
 0x147   : > { %v2843_v56 = vpop.f32.mrb[37].mxu1  ;;  %v2899_v46 = vpop.f32.mrb[37].mxu0 }
 0x148   : > { %v2844_v32 = vadd.f32 %v2843_v56, %v2842_v29  ;;  %v2900_v18 = vadd.f32 %v2899_v46, %v2898_v5  ;;  %v2845_v20 = vpop.f32.mrb[38].mxu1  ;;  %v2901_v33 = vpop.f32.mrb[38].mxu0 }
 0x149   : > { %v2846_v38 = vpop.f32.mrb[39].mxu1  ;;  %v2902_v39 = vpop.f32.mrb[39].mxu0 }
 0x14a   : > { %v4114_v40 = vadd.f32 %v2844_v32, %v2764_v37  ;;  %v2847_v45 = vadd.f32 %v2846_v38, %v2845_v20  ;;  %v2903_v48 = vadd.f32 %v2902_v39, %v2901_v33 }
 0x14c   : > { %v4116_v54 = vadd.f32 %v2847_v45, %v2767_v51 }
 0x14e   : > { %v2848_v11 = vpop.f32.mrb[40].mxu1  ;;  %v2904_v58 = vpop.f32.mrb[40].mxu0 }
 0x14f   : > { %v2849_v61 = vpop.f32.mrb[41].mxu1  ;;  %v2905_v55 = vpop.f32.mrb[41].mxu0 }
 0x150   : > { %v2850_v15 = vadd.f32 %v2849_v61, %v2848_v11  ;;  %v2906_v19 = vadd.f32 %v2905_v55, %v2904_v58  ;;  %v2851_v42 = vpop.f32.mrb[42].mxu1  ;;  %v2907_v50 = vpop.f32.mrb[42].mxu0 }
 0x151   : > { %v2852_v24 = vpop.f32.mrb[43].mxu1  ;;  %v2908_v27 = vpop.f32.mrb[43].mxu0 }
 0x152   : > { %v4118_v22 = vadd.f32 %v2850_v15, %v2770_v62  ;;  %v2853_v12 = vadd.f32 %v2852_v24, %v2851_v42  ;;  %v2909_v53 = vadd.f32 %v2908_v27, %v2907_v50 }
 0x154   : > { %v3121_v37 = vadd.f32 %v2853_v12, %v2773_v14 }
 0x156   : > { %v2854_v7 = vpop.f32.mrb[44].mxu1  ;;  %v2910_v44 = vpop.f32.mrb[44].mxu0 }
 0x157   : > { %v2855_v16 = vpop.f32.mrb[45].mxu1  ;;  %v2911_v51 = vpop.f32.mrb[45].mxu0 }
 0x158   : > { %v2856_v26 = vadd.f32 %v2855_v16, %v2854_v7  ;;  %v2912_v49 = vadd.f32 %v2911_v51, %v2910_v44  ;;  %v2857_v17 = vpop.f32.mrb[46].mxu1  ;;  %v2913_v57 = vpop.f32.mrb[46].mxu0 }
 0x159   : > { %v2858_v23 = vpop.f32.mrb[47].mxu1  ;;  %v2914_v34 = vpop.f32.mrb[47].mxu0 }
 0x15a   : > { %v3112_v0 = vadd.f32 %v2856_v26, %v2776_v1  ;;  %v2859_v41 = vadd.f32 %v2858_v23, %v2857_v17  ;;  %v2915_v3 = vadd.f32 %v2914_v34, %v2913_v57 }
 0x15c   : > { %v3118_v4 = vadd.f32 %v2859_v41, %v2779_v63 }
 0x15e   : > { %v3006_v6 = vpop.f32.mrb[0].mxu1  ;;  %v2916_v62 = vpop.f32.mrb[48].mxu0 }
 0x15f   : > { %v3069_v47 = vadd.f32 %v4100_v59, %v3006_v6  ;;  %v1457_v52 = vpop.f32.mrb[1].mxu1  ;;  %v2917_v14 = vpop.f32.mrb[49].mxu0 }
 0x160   : > { %v3073_v9 = vadd.f32 %v4096_v30, %v1457_v52  ;;  %v2918_v10 = vadd.f32 %v2917_v14, %v2916_v62  ;;  %v3007_v21 = vpop.f32.mrb[2].mxu1  ;;  %v2919_v29 = vpop.f32.mrb[50].mxu0 }
 0x161   : > { %v3077_v5 = vadd.f32 %v4102_v60, %v3007_v21  ;;  %v1460_v56 = vpop.f32.mrb[3].mxu1  ;;  %v2920_v46 = vpop.f32.mrb[51].mxu0  ;;  %v3070_v32 = vadd.f32 %v3069_v47, %v2900_v18 }
 0x162   : > { %v3081_v1 = vadd.f32 %v4098_v31, %v1460_v56  ;;  %v2921_v20 = vadd.f32 %v2920_v46, %v2919_v29  ;;  %v3074_v63 = vadd.f32 %v3073_v9, %v4112_v8  ;;  %v3104_v33 = vadd.f32 %v3103_v13, %v2918_v10 }
 0x163   : > { %v3078_v38 = vadd.f32 %v3077_v5, %v2903_v48 }
 0x164   : > { %v3082_v59 = vadd.f32 %v3081_v1, %v2897_v25  ;;  %v3110_v39 = vadd.f32 %v3109_v28, %v2921_v20 }
 0x166   : > { %v3010_v45 = vpop.f32.mrb[4].mxu1  ;;  %v2922_v11 = vpop.f32.mrb[52].mxu0 }
 0x167   : > { %v3085_v30 = vadd.f32 %v4108_v35, %v3010_v45  ;;  %v1473_v58 = vpop.f32.mrb[5].mxu1  ;;  %v2923_v61 = vpop.f32.mrb[53].mxu0 }
 0x168   : > { %v3089_v60 = vadd.f32 %v4104_v36, %v1473_v58  ;;  %v2924_v55 = vadd.f32 %v2923_v61, %v2922_v11  ;;  %v3011_v15 = vpop.f32.mrb[6].mxu1  ;;  %v2925_v18 = vpop.f32.mrb[54].mxu0 }
 0x169   : > { %v3093_v31 = vadd.f32 %v4110_v2, %v3011_v15  ;;  %v1476_v42 = vpop.f32.mrb[7].mxu1  ;;  %v2926_v50 = vpop.f32.mrb[55].mxu0  ;;  %v3086_v8 = vadd.f32 %v3085_v30, %v2912_v49 }
 0x16a   : > { %v3097_v13 = vadd.f32 %v4106_v43, %v1476_v42  ;;  %v2927_v25 = vadd.f32 %v2926_v50, %v2925_v18  ;;  %v3101_v28 = vadd.f32 %v4114_v40, %v2924_v55  ;;  %v3090_v48 = vadd.f32 %v3089_v60, %v2906_v19 }
 0x16b   : > { %v4130_v24 = vadd.f32 %v3093_v31, %v2915_v3 }
 0x16c   : > { %v3107_v35 = vadd.f32 %v4116_v54, %v2927_v25  ;;  %v4133_v27 = vadd.f32 %v3097_v13, %v2909_v53 }
 0x16e   : > { %v2928_v36 = vpop.f32.mrb[56].mxu0 }
 0x16f   : > { %v2929_v12 = vpop.f32.mrb[57].mxu0 }
 0x170   : > { %v2930_v7 = vadd.f32 %v2929_v12, %v2928_v36  ;;  %v2931_v44 = vpop.f32.mrb[58].mxu0 }
 0x171   : > { %v2932_v2 = vpop.f32.mrb[59].mxu0 }
 0x172   : > { %v2933_v16 = vadd.f32 %v2932_v2, %v2931_v44  ;;  %v3116_v51 = vadd.f32 %v4118_v22, %v2930_v7 }
 0x174   : > { %v4136_v43 = vadd.f32 %v3121_v37, %v2933_v16 }
 0x176   : > { %v2934_v26 = vpop.f32.mrb[60].mxu0 }
 0x177   : > { %v2935_v40 = vpop.f32.mrb[61].mxu0 }
 0x178   : > { %v2936_v19 = vadd.f32 %v2935_v40, %v2934_v26  ;;  %v2937_v49 = vpop.f32.mrb[62].mxu0 }
 0x179   : > { %v2938_v17 = vpop.f32.mrb[63].mxu0 }
 0x17a   : > { %v2939_v57 = vadd.f32 %v2938_v17, %v2937_v49  ;;  %v3113_v54 = vadd.f32 %v3112_v0, %v2936_v19 }
 0x17c   : > { %v3119_v53 = vadd.f32 %v3118_v4, %v2939_v57 }
 0x17e   : > { %v3038_v23 = vpop.f32.mrb[64].mxu0  ;;  %v3046_v34 = vpop.f32.mrb[8].mxu1 }
 0x17f   : > { %v3071_v41 = vadd.f32 %v3070_v32, %v3038_v23  ;;  %v4138_v3 = vadd.f32 %v3101_v28, %v3046_v34  ;;  %v1869_v6 = vpop.f32.mrb[65].mxu0  ;;  %v1901_v62 = vpop.f32.mrb[9].mxu1 }
 0x180   : > { %v3075_v22 = vadd.f32 %v3074_v63, %v1869_v6  ;;  %v4141_v47 = vadd.f32 %v3104_v33, %v1901_v62  ;;  %v3039_v37 = vpop.f32.mrb[66].mxu0  ;;  %v3047_v52 = vpop.f32.mrb[10].mxu1 }
 0x181   : > { %v3079_v14 = vadd.f32 %v3078_v38, %v3039_v37  ;;  %v4143_v9 = vadd.f32 %v3107_v35, %v3047_v52  ;;  %v1872_v10 = vpop.f32.mrb[67].mxu0  ;;  %v1904_v21 = vpop.f32.mrb[11].mxu1  ;;  %v2051_v63 = vmul.f32 %v3071_v41, %v3071_v41  ;;  %v2059_v6 = vmul.f32 %v4138_v3, %v4138_v3 }
 0x182   : > { %v3083_v0 = vadd.f32 %v3082_v59, %v1872_v10  ;;  %v3111_v4 = vadd.f32 %v3110_v39, %v1904_v21  ;;  %v2049_v29 = vmul.f32 %v3075_v22, %v3075_v22 }
 0x183   : > { %v2533_v5 = vpack.c.bf16 %v3079_v14, %v3071_v41  ;;  %v2553_v56 = vpack.c.bf16 %v4143_v9, %v4138_v3  ;;  %v2052_v39 = vmul.f32 %v3079_v14, %v3079_v14  ;;  %v2060_v37 = vmul.f32 %v4143_v9, %v4143_v9 }
 0x184   : > { %v2528_v46 = vpack.c.bf16 %v3083_v0, %v3075_v22  ;;  %v2028_v32 = vadd.f32 %v3083_v0, %v3075_v22  ;;  %v2050_v1 = vmul.f32 %v3083_v0, %v3083_v0  ;;  %v2548_v20 = vpack.c.bf16 %v3111_v4, %v4141_v47 }
 0x185   : > { %2565 = vst [vmem:[%s4148_s16 + $0x8] sm:$0xff] %v2533_v5   ;;  %2569 = vst [vmem:[%s4148_s16 + $0x28] sm:$0xff] %v2553_v56   ;;  %v2058_v23 = vmul.f32 %v3111_v4, %v3111_v4 }
 0x186   : > { %2529 = vst [vmem:[%s4148_s16] sm:$0xff] %v2528_v46   ;;  %v2029_v33 = vadd.f32 %v3071_v41, %v2028_v32  ;;  %v2065_v38 = vadd.f32 %v2050_v1, %v2049_v29  ;;  %2568 = vst [vmem:[%s4148_s16 + $0x20] sm:$0xff] %v2548_v20   ;;  %v3042_v45 = vpop.f32.mrb[68].mxu0  ;;  %v3050_v59 = vpop.f32.mrb[12].mxu1 }
 0x187   : > { %v3087_v11 = vadd.f32 %v3086_v8, %v3042_v45  ;;  %v3114_v30 = vadd.f32 %v3113_v54, %v3050_v59  ;;  %v1885_v58 = vpop.f32.mrb[69].mxu0  ;;  %v1917_v61 = vpop.f32.mrb[13].mxu1 }
 0x188   : > { %v2066_v60 = vadd.f32 %v2065_v38, %v2051_v63  ;;  %v3091_v55 = vadd.f32 %v3090_v48, %v1885_v58  ;;  %v2030_v15 = vadd.f32 %v3079_v14, %v2029_v33  ;;  %v3117_v18 = vadd.f32 %v3116_v51, %v1917_v61  ;;  %v3043_v31 = vpop.f32.mrb[70].mxu0  ;;  %v3051_v42 = vpop.f32.mrb[14].mxu1 }
 0x189   : > { %v3095_v50 = vadd.f32 %v4130_v24, %v3043_v31  ;;  %v3120_v13 = vadd.f32 %v3119_v53, %v3051_v42  ;;  %v1888_v25 = vpop.f32.mrb[71].mxu0  ;;  %v1920_v28 = vpop.f32.mrb[15].mxu1  ;;  %v2055_v40 = vmul.f32 %v3087_v11, %v3087_v11  ;;  %v2057_v53 = vmul.f32 %v4141_v47, %v4141_v47 }
 0x18a   : > { %v2031_v35 = vadd.f32 %v3091_v55, %v2030_v15  ;;  %v2053_v36 = vmul.f32 %v3091_v55, %v3091_v55  ;;  %v2067_v8 = vadd.f32 %v2066_v60, %v2052_v39  ;;  %v3099_v48 = vadd.f32 %v4133_v27, %v1888_v25 }
 0x18b   : > { %v2543_v12 = vpack.c.bf16 %v3095_v50, %v3087_v11  ;;  %v2563_v7 = vpack.c.bf16 %v3120_v13, %v3114_v30  ;;  %v3123_v2 = vadd.f32 %v4136_v43, %v1920_v28  ;;  %v2056_v17 = vmul.f32 %v3095_v50, %v3095_v50 }
 0x18c   : > { %v2068_v44 = vadd.f32 %v2067_v8, %v2053_v36  ;;  %v2538_v16 = vpack.c.bf16 %v3099_v48, %v3091_v55  ;;  %v2032_v51 = vadd.f32 %v3099_v48, %v2031_v35  ;;  %v2054_v24 = vmul.f32 %v3099_v48, %v3099_v48 }
 0x18d   : > { %2567 = vst [vmem:[%s4148_s16 + $0x18] sm:$0xff] %v2543_v12   ;;  %2571 = vst [vmem:[%s4148_s16 + $0x38] sm:$0xff] %v2563_v7   ;;  %v2558_v26 = vpack.c.bf16 %v3123_v2, %v3117_v18  ;;  %v2061_v10 = vmul.f32 %v3117_v18, %v3117_v18  ;;  %v2062_v29 = vmul.f32 %v3123_v2, %v3123_v2 }
 0x18e   : > { %2566 = vst [vmem:[%s4148_s16 + $0x10] sm:$0xff] %v2538_v16   ;;  %v2033_v19 = vadd.f32 %v3087_v11, %v2032_v51  ;;  %v2069_v49 = vadd.f32 %v2068_v44, %v2054_v24  ;;  %v2063_v56 = vmul.f32 %v3114_v30, %v3114_v30  ;;  %v2064_v32 = vmul.f32 %v3120_v13, %v3120_v13 }
 0x18f   : > { %2570 = vst [vmem:[%s4148_s16 + $0x30] sm:$0xff] %v2558_v26  }
 0x190   : > { %v2034_v57 = vadd.f32 %v3095_v50, %v2033_v19  ;;  %v2070_v54 = vadd.f32 %v2069_v49, %v2055_v40 }
 0x192   : > { %v2035_v27 = vadd.f32 %v4141_v47, %v2034_v57  ;;  %v2071_v43 = vadd.f32 %v2070_v54, %v2056_v17 }
 0x194   : > { %v2072_v34 = vadd.f32 %v2071_v43, %v2057_v53  ;;  %v2036_v41 = vadd.f32 %v3111_v4, %v2035_v27 }
 0x196   : > { %v2037_v62 = vadd.f32 %v4138_v3, %v2036_v41  ;;  %v2073_v22 = vadd.f32 %v2072_v34, %v2058_v23 }
 0x198   : > { %v2038_v52 = vadd.f32 %v4143_v9, %v2037_v62  ;;  %v2074_v14 = vadd.f32 %v2073_v22, %v2059_v6 }
 0x19a   : > { %v2039_v21 = vadd.f32 %v3117_v18, %v2038_v52  ;;  %v2075_v0 = vadd.f32 %v2074_v14, %v2060_v37 }
 0x19c   : > { %v2040_v47 = vadd.f32 %v3123_v2, %v2039_v21  ;;  %v2076_v5 = vadd.f32 %v2075_v0, %v2061_v10 }
 0x19e   : > { %v2041_v4 = vadd.f32 %v3114_v30, %v2040_v47  ;;  %v2077_v46 = vadd.f32 %v2076_v5, %v2062_v29 }
 0x1a0   : > { %v2042_v1 = vadd.f32 %v3120_v13, %v2041_v4  ;;  %v2078_v3 = vadd.f32 %v2077_v46, %v2063_v56 }
 0x1a2   : > { %v2043_v20 = vrot.slane %v2042_v1, 4  ;;  %v2079_v63 = vadd.f32 %v2078_v3, %v2064_v32 }
 0x1a4   : > { %v2044_v33 = vadd.f32 %v2043_v20, %v2042_v1  ;;  %v2080_v38 = vrot.slane %v2079_v63, 4 }
 0x1a6   : > { %v2045_v45 = vrot.slane %v2044_v33, 2  ;;  %v2081_v9 = vadd.f32 %v2080_v38, %v2079_v63 }
 0x1a8   : > { %v2046_v59 = vadd.f32 %v2045_v45, %v2044_v33  ;;  %v2082_v39 = vrot.slane %v2081_v9, 2 }
 0x1aa   : > { %v2047_v11 = vrot.slane %v2046_v59, 1  ;;  %v2083_v58 = vadd.f32 %v2082_v39, %v2081_v9 }
 0x1ac   : > { %v2084_v61 = vrot.slane %v2083_v58, 1  ;;  %v2048_v30 = vadd.f32 %v2047_v11, %v2046_v59 }
 0x1ae   : > { %v2085_v60 = vadd.f32 %v2084_v61, %v2083_v58 }
 0x1b0   : > { %v2087_v55 = vsel %vm2086_vm7, %v2048_v30, %v2085_v60 }
 0x1b1   : > { %2088 = vst [vmem:[%s467_s13] sm:$0x3] %v2087_v55 }
 0x1b2 PF: > { %s18_s28 = sadd.s32 1, %s3299_s28   ;;  %s4205_s24 = smov %s3291_s26 }
 0x1b3   : > { %p15_p12 = scmp.ge.s32.totalorder %s18_s28, 6   ;;  %s4206_s25 = smov %s3295_s27 }
 0x1b4   : > { %s4207_s26 = smov %s4210_s4  ;;  %s4208_s27 = smov %s4214_s5 }
 0x1b5   :  { %17 = sbr.rel (!%p15_p12) target bundleno = 3 (0x3), region = 96 }

</bundles_post_ra>
